<compile_context>
chip_gen: v5e
topology: v5e:2x2
jax: 0.10.0
libtpu: 0.0.40
codegen_flags: <defaults>
</compile_context>

<pallas_src>
import functools

import jax
import jax.numpy as jnp
from jax import lax
from jax.experimental import pallas as pl
from jax.experimental.pallas import tpu as pltpu

BN_EPS = 1e-5


# ----------------------------------------------------------------------------
# Pallas kernels
# ----------------------------------------------------------------------------
def _conv_bn_stats_kernel(x0_ref, x1_ref, x2_ref, w_ref, o_ref, stats_ref,
                          *, H, W, Cin):
    """3x3x3 conv for one (n, d) output slice + fused BN partial statistics.

    x{0,1,2}_ref : (1, 1, H+2, W+2, Cin) padded depth slices d, d+1, d+2
    w_ref        : (27, Cin, Cout) packed taps, resident in VMEM
    o_ref        : (1, 1, H*W, Cout) conv output for this (n, d)
    stats_ref    : (1, 1, 2, Cout)   [sum, sum-of-squares] over the H*W rows
    """
    planes = (x0_ref, x1_ref, x2_ref)
    cout = o_ref.shape[-1]
    acc = jnp.zeros((H * W, cout), jnp.float32)
    k = 0
    for kd in range(3):
        for kh in range(3):
            for kw in range(3):
                # Static-offset VMEM load of the shifted window (in-kernel tap).
                tap = planes[kd][0, 0, kh:kh + H, kw:kw + W, :]
                acc = acc + jnp.dot(tap.reshape(H * W, Cin), w_ref[k],
                                    preferred_element_type=jnp.float32)
                k += 1
    o_ref[0, 0] = acc
    s = jnp.sum(acc, axis=0, keepdims=True)          # (1, Cout)
    q = jnp.sum(acc * acc, axis=0, keepdims=True)    # (1, Cout)
    stats_ref[0, 0] = jnp.concatenate([s, q], axis=0)


def _scale_shift_relu_kernel(x_ref, scale_ref, shift_ref, o_ref):
    """Per-channel affine (precomputed BN scale/shift) + ReLU, row-tiled."""
    o_ref[...] = jnp.maximum(x_ref[...] * scale_ref[...] + shift_ref[...], 0.0)


def _scale_shift_add_relu_kernel(x_ref, res_ref, scale_ref, shift_ref, o_ref):
    """Per-channel affine + residual add + ReLU, row-tiled."""
    y = x_ref[...] * scale_ref[...] + shift_ref[...] + res_ref[...]
    o_ref[...] = jnp.maximum(y, 0.0)


# ----------------------------------------------------------------------------
# Pallas wrappers
# ----------------------------------------------------------------------------
def conv3x3x3_bn_stats_pallas(xp, w_taps):
    """xp: (N, D+2, H+2, W+2, Cin) padded input; w_taps: (27, Cin, Cout).

    Returns:
      conv_out: (N, D, H*W, Cout) float32
      stats:    (N, D, 2, Cout)   float32  (per-tile channel sum, sum-of-sq)
    """
    N, Dp2, Hp2, Wp2, Cin = xp.shape
    D, H, W = Dp2 - 2, Hp2 - 2, Wp2 - 2
    Cout = w_taps.shape[-1]

    kernel = functools.partial(_conv_bn_stats_kernel, H=H, W=W, Cin=Cin)

    return pl.pallas_call(
        kernel,
        out_shape=(
            jax.ShapeDtypeStruct((N, D, H * W, Cout), jnp.float32),
            jax.ShapeDtypeStruct((N, D, 2, Cout), jnp.float32),
        ),
        grid_spec=pltpu.PrefetchScalarGridSpec(
            num_scalar_prefetch=0,
            grid=(N, D),
            in_specs=[
                # Three overlapping padded depth slices (d, d+1, d+2).
                pl.BlockSpec((1, 1, Hp2, Wp2, Cin),
                             lambda n, d: (n, d, 0, 0, 0)),
                pl.BlockSpec((1, 1, Hp2, Wp2, Cin),
                             lambda n, d: (n, d + 1, 0, 0, 0)),
                pl.BlockSpec((1, 1, Hp2, Wp2, Cin),
                             lambda n, d: (n, d + 2, 0, 0, 0)),
                # Full packed weight, constant block index -> stays resident.
                pl.BlockSpec((27, Cin, Cout), lambda n, d: (0, 0, 0)),
            ],
            out_specs=(
                pl.BlockSpec((1, 1, H * W, Cout), lambda n, d: (n, d, 0, 0)),
                pl.BlockSpec((1, 1, 2, Cout), lambda n, d: (n, d, 0, 0)),
            ),
        ),
        compiler_params=pltpu.CompilerParams(
            dimension_semantics=("parallel", "parallel")),
    )(xp, xp, xp, w_taps)


def _row_tile(S):
    for t in (512, 1024, 2048, 256, 128, 64, 32, 16, 8):
        if S % t == 0:
            return t
    return S


def bn_apply_pallas(x2d, scale, shift, residual2d=None):
    """y = relu(x * scale + shift [+ residual]), tiled over rows (S)."""
    S, C = x2d.shape
    ts = _row_tile(S)
    grid = (S // ts,)
    row_spec = pl.BlockSpec((ts, C), lambda i: (i, 0))
    ch_spec = pl.BlockSpec((1, C), lambda i: (0, 0))

    if residual2d is None:
        kernel = _scale_shift_relu_kernel
        in_specs = [row_spec, ch_spec, ch_spec]
        args = (x2d, scale.reshape(1, C), shift.reshape(1, C))
    else:
        kernel = _scale_shift_add_relu_kernel
        in_specs = [row_spec, row_spec, ch_spec, ch_spec]
        args = (x2d, residual2d, scale.reshape(1, C), shift.reshape(1, C))

    return pl.pallas_call(
        kernel,
        out_shape=jax.ShapeDtypeStruct((S, C), jnp.float32),
        grid_spec=pltpu.PrefetchScalarGridSpec(
            num_scalar_prefetch=0,
            grid=grid,
            in_specs=in_specs,
            out_specs=row_spec,
        ),
        compiler_params=pltpu.CompilerParams(
            dimension_semantics=("parallel",)),
    )(*args)


# ----------------------------------------------------------------------------
# Glue (JAX): padding, weight packing, BN scale/shift from fused statistics
# ----------------------------------------------------------------------------
def pack_conv_weight(w_oikkk):
    """PyTorch Conv3d weight (O, I, 3, 3, 3) -> (27, I, O), tap order kd,kh,kw."""
    return jnp.transpose(w_oikkk, (2, 3, 4, 1, 0)).reshape(27, w_oikkk.shape[1],
                                                           w_oikkk.shape[0])


def _pad_halo(x_ndhwc):
    return jnp.pad(x_ndhwc, ((0, 0), (1, 1), (1, 1), (1, 1), (0, 0)))


def _bn_scale_shift(stats, count, gamma, beta):
    """Per-channel scale/shift from fused (sum, sumsq) partials (training BN)."""
    tot = jnp.sum(stats, axis=(0, 1))                      # (2, C)
    mean = tot[0] / count
    var = jnp.maximum(tot[1] / count - mean * mean, 0.0)   # biased variance
    scale = gamma * lax.rsqrt(var + BN_EPS)
    shift = beta - mean * scale
    return scale, shift


@jax.jit
def basic_block_forward(x_ncdhw, w1, g1, b1, w2, g2, b2):
    """BasicBlock forward. x_ncdhw: (N, C, D, H, W) float32."""
    x = jnp.transpose(x_ncdhw, (0, 2, 3, 4, 1)).astype(jnp.float32)   # NDHWC
    N, D, H, W, C = x.shape
    S = N * D * H * W
    identity = x.reshape(S, C)

    # conv1 (+ fused BN stats) -> bn1 scale/shift -> relu
    # NOTE: bf16 operands for the MXU (keeping f32 accumulation) are a further
    # bandwidth/throughput option on v6e/v7x; kept f32 here for exactness.
    c1, st1 = conv3x3x3_bn_stats_pallas(_pad_halo(x), pack_conv_weight(w1))
    s1, sh1 = _bn_scale_shift(st1, S, g1, b1)
    h1 = bn_apply_pallas(c1.reshape(S, C), s1, sh1)

    # conv2 (+ fused BN stats) -> bn2 scale/shift -> (+identity) -> relu
    c2, st2 = conv3x3x3_bn_stats_pallas(
        _pad_halo(h1.reshape(N, D, H, W, C)), pack_conv_weight(w2))
    s2, sh2 = _bn_scale_shift(st2, S, g2, b2)
    # TODO(synk): mamba_layer branch (global_att) not implemented (None default).
    # TODO(synk): downsample branch not implemented (None default, stride=1).
    out = bn_apply_pallas(c2.reshape(S, C), s2, sh2, residual2d=identity)

    return jnp.transpose(out.reshape(N, D, H, W, C), (0, 4, 1, 2, 3))  # NCDHW


# ----------------------------------------------------------------------------
# Pure-JAX reference (for verification)
# ----------------------------------------------------------------------------
def _ref_forward(x_ncdhw, w1, g1, b1, w2, g2, b2):
    x = jnp.transpose(x_ncdhw, (0, 2, 3, 4, 1)).astype(jnp.float32)

    def conv(inp, w_oikkk):
        w = jnp.transpose(w_oikkk, (2, 3, 4, 1, 0))                    # DHWIO
        return lax.conv_general_dilated(
            inp, w, window_strides=(1, 1, 1), padding="SAME",
            dimension_numbers=("NDHWC", "DHWIO", "NDHWC"))

    def bn(y, g, b):
        m = jnp.mean(y, axis=(0, 1, 2, 3), keepdims=True)
        v = jnp.mean((y - m) ** 2, axis=(0, 1, 2, 3), keepdims=True)
        return (y - m) * lax.rsqrt(v + BN_EPS) * g + b

    h = jax.nn.relu(bn(conv(x, w1), g1, b1))
    o = jax.nn.relu(bn(conv(h, w2), g2, b2) + x)
    return jnp.transpose(o, (0, 4, 1, 2, 3))


# ----------------------------------------------------------------------------
# Main
# ----------------------------------------------------------------------------
if __name__ == "__main__":
    # Small shapes: batch=2, inplanes=planes=8, D=H=W=8 (stride=1, no downsample).
    N, C, D, H, W = 2, 8, 8, 8, 8

    key = jax.random.PRNGKey(0)
    kx, k1, k2 = jax.random.split(key, 3)

    x = jax.random.normal(kx, (N, C, D, H, W), dtype=jnp.float32)

    fan_in = C * 3 * 3 * 3
    w1 = jax.random.normal(k1, (C, C, 3, 3, 3), jnp.float32) * (2.0 / fan_in) ** 0.5
    w2 = jax.random.normal(k2, (C, C, 3, 3, 3), jnp.float32) * (2.0 / fan_in) ** 0.5
    # PyTorch BatchNorm3d default affine init: weight=1, bias=0.
    g1 = jnp.ones((C,), jnp.float32)
    b1 = jnp.zeros((C,), jnp.float32)
    g2 = jnp.ones((C,), jnp.float32)
    b2 = jnp.zeros((C,), jnp.float32)

    out = basic_block_forward(x, w1, g1, b1, w2, g2, b2)
    out = jax.block_until_ready(out)

    ref = jax.block_until_ready(_ref_forward(x, w1, g1, b1, w2, g2, b2))
    assert out.shape == (N, C, D, H, W), out.shape
    assert jnp.allclose(out, ref, rtol=1e-3, atol=1e-3), (
        float(jnp.max(jnp.abs(out - ref))))

    print("KERNEL_OK")
</pallas_src>

<mosaic_0001>
module attributes {stable_mosaic.version = 11 : i64} {
  func.func @_conv_bn_stats_kernel(%arg0: i32, %arg1: i32, %arg2: memref<1x1x10x10x8xf32, #tpu.memory_space<vmem>>, %arg3: memref<1x1x10x10x8xf32, #tpu.memory_space<vmem>>, %arg4: memref<1x1x10x10x8xf32, #tpu.memory_space<vmem>>, %arg5: memref<27x8x8xf32, #tpu.memory_space<vmem>>, %arg6: memref<1x1x64x8xf32, #tpu.memory_space<vmem>>, %arg7: memref<1x1x2x8xf32, #tpu.memory_space<vmem>>) attributes {dimension_semantics = [#tpu.dimension_semantics<parallel>, #tpu.dimension_semantics<parallel>], iteration_bounds = array<i64: 2, 8>, scalar_prefetch = 0 : i64, scratch_operands = 0 : i64, tpu.core_type = #tpu.core_type<tc>, window_params = [{transform_indices = @transform_0, window_bounds = array<i64: 1, 1, 10, 10, 8>}, {transform_indices = @transform_1, window_bounds = array<i64: 1, 1, 10, 10, 8>}, {transform_indices = @transform_2, window_bounds = array<i64: 1, 1, 10, 10, 8>}, {pipeline_mode = #tpu.pipeline_mode<synchronous>, transform_indices = @transform_3, window_bounds = array<i64: 27, 8, 8>}, {transform_indices = @transform_4, window_bounds = array<i64: 1, 1, 64, 8>}, {transform_indices = @transform_5, window_bounds = array<i64: 1, 1, 2, 8>}]} {
    %cst = arith.constant 0.000000e+00 : f32
    %0 = vector.broadcast %cst : f32 to vector<64x8xf32>
    %c0 = arith.constant 0 : index
    %c0_0 = arith.constant 0 : index
    %c0_1 = arith.constant 0 : index
    %c0_2 = arith.constant 0 : index
    %c0_3 = arith.constant 0 : index
    %1 = vector.load %arg2[%c0, %c0_0, %c0_1, %c0_2, %c0_3] : memref<1x1x10x10x8xf32, #tpu.memory_space<vmem>>, vector<1x1x8x8x8xf32>
    %2 = vector.shape_cast %1 : vector<1x1x8x8x8xf32> to vector<8x8x8xf32>
    %3 = vector.shape_cast %2 : vector<8x8x8xf32> to vector<64x8xf32>
    %c0_4 = arith.constant 0 : index
    %c0_5 = arith.constant 0 : index
    %c0_6 = arith.constant 0 : index
    %4 = vector.load %arg5[%c0_4, %c0_5, %c0_6] : memref<27x8x8xf32, #tpu.memory_space<vmem>>, vector<1x8x8xf32>
    %5 = vector.shape_cast %4 : vector<1x8x8xf32> to vector<8x8xf32>
    %cst_7 = arith.constant dense<0.000000e+00> : vector<64x8xf32>
    %6 = tpu.matmul %3, %5, %cst_7 {dimension_numbers = #tpu.dot_dimension_numbers<[1], [0], [0], [1], [0, 0, 1, 1], [], []>} : vector<64x8xf32>, vector<8x8xf32>, vector<64x8xf32> -> vector<64x8xf32>
    %7 = arith.addf %0, %6 : vector<64x8xf32>
    %c0_8 = arith.constant 0 : index
    %c0_9 = arith.constant 0 : index
    %c0_10 = arith.constant 0 : index
    %c1 = arith.constant 1 : index
    %c0_11 = arith.constant 0 : index
    %8 = vector.load %arg2[%c0_8, %c0_9, %c0_10, %c1, %c0_11] : memref<1x1x10x10x8xf32, #tpu.memory_space<vmem>>, vector<1x1x8x8x8xf32>
    %9 = vector.shape_cast %8 : vector<1x1x8x8x8xf32> to vector<8x8x8xf32>
    %10 = vector.shape_cast %9 : vector<8x8x8xf32> to vector<64x8xf32>
    %c1_12 = arith.constant 1 : index
    %c0_13 = arith.constant 0 : index
    %c0_14 = arith.constant 0 : index
    %11 = vector.load %arg5[%c1_12, %c0_13, %c0_14] : memref<27x8x8xf32, #tpu.memory_space<vmem>>, vector<1x8x8xf32>
    %12 = vector.shape_cast %11 : vector<1x8x8xf32> to vector<8x8xf32>
    %cst_15 = arith.constant dense<0.000000e+00> : vector<64x8xf32>
    %13 = tpu.matmul %10, %12, %cst_15 {dimension_numbers = #tpu.dot_dimension_numbers<[1], [0], [0], [1], [0, 0, 1, 1], [], []>} : vector<64x8xf32>, vector<8x8xf32>, vector<64x8xf32> -> vector<64x8xf32>
    %14 = arith.addf %7, %13 : vector<64x8xf32>
    %c0_16 = arith.constant 0 : index
    %c0_17 = arith.constant 0 : index
    %c0_18 = arith.constant 0 : index
    %c2 = arith.constant 2 : index
    %c0_19 = arith.constant 0 : index
    %15 = vector.load %arg2[%c0_16, %c0_17, %c0_18, %c2, %c0_19] : memref<1x1x10x10x8xf32, #tpu.memory_space<vmem>>, vector<1x1x8x8x8xf32>
    %16 = vector.shape_cast %15 : vector<1x1x8x8x8xf32> to vector<8x8x8xf32>
    %17 = vector.shape_cast %16 : vector<8x8x8xf32> to vector<64x8xf32>
    %c2_20 = arith.constant 2 : index
    %c0_21 = arith.constant 0 : index
    %c0_22 = arith.constant 0 : index
    %18 = vector.load %arg5[%c2_20, %c0_21, %c0_22] : memref<27x8x8xf32, #tpu.memory_space<vmem>>, vector<1x8x8xf32>
    %19 = vector.shape_cast %18 : vector<1x8x8xf32> to vector<8x8xf32>
    %cst_23 = arith.constant dense<0.000000e+00> : vector<64x8xf32>
    %20 = tpu.matmul %17, %19, %cst_23 {dimension_numbers = #tpu.dot_dimension_numbers<[1], [0], [0], [1], [0, 0, 1, 1], [], []>} : vector<64x8xf32>, vector<8x8xf32>, vector<64x8xf32> -> vector<64x8xf32>
    %21 = arith.addf %14, %20 : vector<64x8xf32>
    %c0_24 = arith.constant 0 : index
    %c0_25 = arith.constant 0 : index
    %c1_26 = arith.constant 1 : index
    %c0_27 = arith.constant 0 : index
    %c0_28 = arith.constant 0 : index
    %22 = vector.load %arg2[%c0_24, %c0_25, %c1_26, %c0_27, %c0_28] : memref<1x1x10x10x8xf32, #tpu.memory_space<vmem>>, vector<1x1x8x8x8xf32>
    %23 = vector.shape_cast %22 : vector<1x1x8x8x8xf32> to vector<8x8x8xf32>
    %24 = vector.shape_cast %23 : vector<8x8x8xf32> to vector<64x8xf32>
    %c3 = arith.constant 3 : index
    %c0_29 = arith.constant 0 : index
    %c0_30 = arith.constant 0 : index
    %25 = vector.load %arg5[%c3, %c0_29, %c0_30] : memref<27x8x8xf32, #tpu.memory_space<vmem>>, vector<1x8x8xf32>
    %26 = vector.shape_cast %25 : vector<1x8x8xf32> to vector<8x8xf32>
    %cst_31 = arith.constant dense<0.000000e+00> : vector<64x8xf32>
    %27 = tpu.matmul %24, %26, %cst_31 {dimension_numbers = #tpu.dot_dimension_numbers<[1], [0], [0], [1], [0, 0, 1, 1], [], []>} : vector<64x8xf32>, vector<8x8xf32>, vector<64x8xf32> -> vector<64x8xf32>
    %28 = arith.addf %21, %27 : vector<64x8xf32>
    %c0_32 = arith.constant 0 : index
    %c0_33 = arith.constant 0 : index
    %c1_34 = arith.constant 1 : index
    %c1_35 = arith.constant 1 : index
    %c0_36 = arith.constant 0 : index
    %29 = vector.load %arg2[%c0_32, %c0_33, %c1_34, %c1_35, %c0_36] : memref<1x1x10x10x8xf32, #tpu.memory_space<vmem>>, vector<1x1x8x8x8xf32>
    %30 = vector.shape_cast %29 : vector<1x1x8x8x8xf32> to vector<8x8x8xf32>
    %31 = vector.shape_cast %30 : vector<8x8x8xf32> to vector<64x8xf32>
    %c4 = arith.constant 4 : index
    %c0_37 = arith.constant 0 : index
    %c0_38 = arith.constant 0 : index
    %32 = vector.load %arg5[%c4, %c0_37, %c0_38] : memref<27x8x8xf32, #tpu.memory_space<vmem>>, vector<1x8x8xf32>
    %33 = vector.shape_cast %32 : vector<1x8x8xf32> to vector<8x8xf32>
    %cst_39 = arith.constant dense<0.000000e+00> : vector<64x8xf32>
    %34 = tpu.matmul %31, %33, %cst_39 {dimension_numbers = #tpu.dot_dimension_numbers<[1], [0], [0], [1], [0, 0, 1, 1], [], []>} : vector<64x8xf32>, vector<8x8xf32>, vector<64x8xf32> -> vector<64x8xf32>
    %35 = arith.addf %28, %34 : vector<64x8xf32>
    %c0_40 = arith.constant 0 : index
    %c0_41 = arith.constant 0 : index
    %c1_42 = arith.constant 1 : index
    %c2_43 = arith.constant 2 : index
    %c0_44 = arith.constant 0 : index
    %36 = vector.load %arg2[%c0_40, %c0_41, %c1_42, %c2_43, %c0_44] : memref<1x1x10x10x8xf32, #tpu.memory_space<vmem>>, vector<1x1x8x8x8xf32>
    %37 = vector.shape_cast %36 : vector<1x1x8x8x8xf32> to vector<8x8x8xf32>
    %38 = vector.shape_cast %37 : vector<8x8x8xf32> to vector<64x8xf32>
    %c5 = arith.constant 5 : index
    %c0_45 = arith.constant 0 : index
    %c0_46 = arith.constant 0 : index
    %39 = vector.load %arg5[%c5, %c0_45, %c0_46] : memref<27x8x8xf32, #tpu.memory_space<vmem>>, vector<1x8x8xf32>
    %40 = vector.shape_cast %39 : vector<1x8x8xf32> to vector<8x8xf32>
    %cst_47 = arith.constant dense<0.000000e+00> : vector<64x8xf32>
    %41 = tpu.matmul %38, %40, %cst_47 {dimension_numbers = #tpu.dot_dimension_numbers<[1], [0], [0], [1], [0, 0, 1, 1], [], []>} : vector<64x8xf32>, vector<8x8xf32>, vector<64x8xf32> -> vector<64x8xf32>
    %42 = arith.addf %35, %41 : vector<64x8xf32>
    %c0_48 = arith.constant 0 : index
    %c0_49 = arith.constant 0 : index
    %c2_50 = arith.constant 2 : index
    %c0_51 = arith.constant 0 : index
    %c0_52 = arith.constant 0 : index
    %43 = vector.load %arg2[%c0_48, %c0_49, %c2_50, %c0_51, %c0_52] : memref<1x1x10x10x8xf32, #tpu.memory_space<vmem>>, vector<1x1x8x8x8xf32>
    %44 = vector.shape_cast %43 : vector<1x1x8x8x8xf32> to vector<8x8x8xf32>
    %45 = vector.shape_cast %44 : vector<8x8x8xf32> to vector<64x8xf32>
    %c6 = arith.constant 6 : index
    %c0_53 = arith.constant 0 : index
    %c0_54 = arith.constant 0 : index
    %46 = vector.load %arg5[%c6, %c0_53, %c0_54] : memref<27x8x8xf32, #tpu.memory_space<vmem>>, vector<1x8x8xf32>
    %47 = vector.shape_cast %46 : vector<1x8x8xf32> to vector<8x8xf32>
    %cst_55 = arith.constant dense<0.000000e+00> : vector<64x8xf32>
    %48 = tpu.matmul %45, %47, %cst_55 {dimension_numbers = #tpu.dot_dimension_numbers<[1], [0], [0], [1], [0, 0, 1, 1], [], []>} : vector<64x8xf32>, vector<8x8xf32>, vector<64x8xf32> -> vector<64x8xf32>
    %49 = arith.addf %42, %48 : vector<64x8xf32>
    %c0_56 = arith.constant 0 : index
    %c0_57 = arith.constant 0 : index
    %c2_58 = arith.constant 2 : index
    %c1_59 = arith.constant 1 : index
    %c0_60 = arith.constant 0 : index
    %50 = vector.load %arg2[%c0_56, %c0_57, %c2_58, %c1_59, %c0_60] : memref<1x1x10x10x8xf32, #tpu.memory_space<vmem>>, vector<1x1x8x8x8xf32>
    %51 = vector.shape_cast %50 : vector<1x1x8x8x8xf32> to vector<8x8x8xf32>
    %52 = vector.shape_cast %51 : vector<8x8x8xf32> to vector<64x8xf32>
    %c7 = arith.constant 7 : index
    %c0_61 = arith.constant 0 : index
    %c0_62 = arith.constant 0 : index
    %53 = vector.load %arg5[%c7, %c0_61, %c0_62] : memref<27x8x8xf32, #tpu.memory_space<vmem>>, vector<1x8x8xf32>
    %54 = vector.shape_cast %53 : vector<1x8x8xf32> to vector<8x8xf32>
    %cst_63 = arith.constant dense<0.000000e+00> : vector<64x8xf32>
    %55 = tpu.matmul %52, %54, %cst_63 {dimension_numbers = #tpu.dot_dimension_numbers<[1], [0], [0], [1], [0, 0, 1, 1], [], []>} : vector<64x8xf32>, vector<8x8xf32>, vector<64x8xf32> -> vector<64x8xf32>
    %56 = arith.addf %49, %55 : vector<64x8xf32>
    %c0_64 = arith.constant 0 : index
    %c0_65 = arith.constant 0 : index
    %c2_66 = arith.constant 2 : index
    %c2_67 = arith.constant 2 : index
    %c0_68 = arith.constant 0 : index
    %57 = vector.load %arg2[%c0_64, %c0_65, %c2_66, %c2_67, %c0_68] : memref<1x1x10x10x8xf32, #tpu.memory_space<vmem>>, vector<1x1x8x8x8xf32>
    %58 = vector.shape_cast %57 : vector<1x1x8x8x8xf32> to vector<8x8x8xf32>
    %59 = vector.shape_cast %58 : vector<8x8x8xf32> to vector<64x8xf32>
    %c8 = arith.constant 8 : index
    %c0_69 = arith.constant 0 : index
    %c0_70 = arith.constant 0 : index
    %60 = vector.load %arg5[%c8, %c0_69, %c0_70] : memref<27x8x8xf32, #tpu.memory_space<vmem>>, vector<1x8x8xf32>
    %61 = vector.shape_cast %60 : vector<1x8x8xf32> to vector<8x8xf32>
    %cst_71 = arith.constant dense<0.000000e+00> : vector<64x8xf32>
    %62 = tpu.matmul %59, %61, %cst_71 {dimension_numbers = #tpu.dot_dimension_numbers<[1], [0], [0], [1], [0, 0, 1, 1], [], []>} : vector<64x8xf32>, vector<8x8xf32>, vector<64x8xf32> -> vector<64x8xf32>
    %63 = arith.addf %56, %62 : vector<64x8xf32>
    %c0_72 = arith.constant 0 : index
    %c0_73 = arith.constant 0 : index
    %c0_74 = arith.constant 0 : index
    %c0_75 = arith.constant 0 : index
    %c0_76 = arith.constant 0 : index
    %64 = vector.load %arg3[%c0_72, %c0_73, %c0_74, %c0_75, %c0_76] : memref<1x1x10x10x8xf32, #tpu.memory_space<vmem>>, vector<1x1x8x8x8xf32>
    %65 = vector.shape_cast %64 : vector<1x1x8x8x8xf32> to vector<8x8x8xf32>
    %66 = vector.shape_cast %65 : vector<8x8x8xf32> to vector<64x8xf32>
    %c9 = arith.constant 9 : index
    %c0_77 = arith.constant 0 : index
    %c0_78 = arith.constant 0 : index
    %67 = vector.load %arg5[%c9, %c0_77, %c0_78] : memref<27x8x8xf32, #tpu.memory_space<vmem>>, vector<1x8x8xf32>
    %68 = vector.shape_cast %67 : vector<1x8x8xf32> to vector<8x8xf32>
    %cst_79 = arith.constant dense<0.000000e+00> : vector<64x8xf32>
    %69 = tpu.matmul %66, %68, %cst_79 {dimension_numbers = #tpu.dot_dimension_numbers<[1], [0], [0], [1], [0, 0, 1, 1], [], []>} : vector<64x8xf32>, vector<8x8xf32>, vector<64x8xf32> -> vector<64x8xf32>
    %70 = arith.addf %63, %69 : vector<64x8xf32>
    %c0_80 = arith.constant 0 : index
    %c0_81 = arith.constant 0 : index
    %c0_82 = arith.constant 0 : index
    %c1_83 = arith.constant 1 : index
    %c0_84 = arith.constant 0 : index
    %71 = vector.load %arg3[%c0_80, %c0_81, %c0_82, %c1_83, %c0_84] : memref<1x1x10x10x8xf32, #tpu.memory_space<vmem>>, vector<1x1x8x8x8xf32>
    %72 = vector.shape_cast %71 : vector<1x1x8x8x8xf32> to vector<8x8x8xf32>
    %73 = vector.shape_cast %72 : vector<8x8x8xf32> to vector<64x8xf32>
    %c10 = arith.constant 10 : index
    %c0_85 = arith.constant 0 : index
    %c0_86 = arith.constant 0 : index
    %74 = vector.load %arg5[%c10, %c0_85, %c0_86] : memref<27x8x8xf32, #tpu.memory_space<vmem>>, vector<1x8x8xf32>
    %75 = vector.shape_cast %74 : vector<1x8x8xf32> to vector<8x8xf32>
    %cst_87 = arith.constant dense<0.000000e+00> : vector<64x8xf32>
    %76 = tpu.matmul %73, %75, %cst_87 {dimension_numbers = #tpu.dot_dimension_numbers<[1], [0], [0], [1], [0, 0, 1, 1], [], []>} : vector<64x8xf32>, vector<8x8xf32>, vector<64x8xf32> -> vector<64x8xf32>
    %77 = arith.addf %70, %76 : vector<64x8xf32>
    %c0_88 = arith.constant 0 : index
    %c0_89 = arith.constant 0 : index
    %c0_90 = arith.constant 0 : index
    %c2_91 = arith.constant 2 : index
    %c0_92 = arith.constant 0 : index
    %78 = vector.load %arg3[%c0_88, %c0_89, %c0_90, %c2_91, %c0_92] : memref<1x1x10x10x8xf32, #tpu.memory_space<vmem>>, vector<1x1x8x8x8xf32>
    %79 = vector.shape_cast %78 : vector<1x1x8x8x8xf32> to vector<8x8x8xf32>
    %80 = vector.shape_cast %79 : vector<8x8x8xf32> to vector<64x8xf32>
    %c11 = arith.constant 11 : index
    %c0_93 = arith.constant 0 : index
    %c0_94 = arith.constant 0 : index
    %81 = vector.load %arg5[%c11, %c0_93, %c0_94] : memref<27x8x8xf32, #tpu.memory_space<vmem>>, vector<1x8x8xf32>
    %82 = vector.shape_cast %81 : vector<1x8x8xf32> to vector<8x8xf32>
    %cst_95 = arith.constant dense<0.000000e+00> : vector<64x8xf32>
    %83 = tpu.matmul %80, %82, %cst_95 {dimension_numbers = #tpu.dot_dimension_numbers<[1], [0], [0], [1], [0, 0, 1, 1], [], []>} : vector<64x8xf32>, vector<8x8xf32>, vector<64x8xf32> -> vector<64x8xf32>
    %84 = arith.addf %77, %83 : vector<64x8xf32>
    %c0_96 = arith.constant 0 : index
    %c0_97 = arith.constant 0 : index
    %c1_98 = arith.constant 1 : index
    %c0_99 = arith.constant 0 : index
    %c0_100 = arith.constant 0 : index
    %85 = vector.load %arg3[%c0_96, %c0_97, %c1_98, %c0_99, %c0_100] : memref<1x1x10x10x8xf32, #tpu.memory_space<vmem>>, vector<1x1x8x8x8xf32>
    %86 = vector.shape_cast %85 : vector<1x1x8x8x8xf32> to vector<8x8x8xf32>
    %87 = vector.shape_cast %86 : vector<8x8x8xf32> to vector<64x8xf32>
    %c12 = arith.constant 12 : index
    %c0_101 = arith.constant 0 : index
    %c0_102 = arith.constant 0 : index
    %88 = vector.load %arg5[%c12, %c0_101, %c0_102] : memref<27x8x8xf32, #tpu.memory_space<vmem>>, vector<1x8x8xf32>
    %89 = vector.shape_cast %88 : vector<1x8x8xf32> to vector<8x8xf32>
    %cst_103 = arith.constant dense<0.000000e+00> : vector<64x8xf32>
    %90 = tpu.matmul %87, %89, %cst_103 {dimension_numbers = #tpu.dot_dimension_numbers<[1], [0], [0], [1], [0, 0, 1, 1], [], []>} : vector<64x8xf32>, vector<8x8xf32>, vector<64x8xf32> -> vector<64x8xf32>
    %91 = arith.addf %84, %90 : vector<64x8xf32>
    %c0_104 = arith.constant 0 : index
    %c0_105 = arith.constant 0 : index
    %c1_106 = arith.constant 1 : index
    %c1_107 = arith.constant 1 : index
    %c0_108 = arith.constant 0 : index
    %92 = vector.load %arg3[%c0_104, %c0_105, %c1_106, %c1_107, %c0_108] : memref<1x1x10x10x8xf32, #tpu.memory_space<vmem>>, vector<1x1x8x8x8xf32>
    %93 = vector.shape_cast %92 : vector<1x1x8x8x8xf32> to vector<8x8x8xf32>
    %94 = vector.shape_cast %93 : vector<8x8x8xf32> to vector<64x8xf32>
    %c13 = arith.constant 13 : index
    %c0_109 = arith.constant 0 : index
    %c0_110 = arith.constant 0 : index
    %95 = vector.load %arg5[%c13, %c0_109, %c0_110] : memref<27x8x8xf32, #tpu.memory_space<vmem>>, vector<1x8x8xf32>
    %96 = vector.shape_cast %95 : vector<1x8x8xf32> to vector<8x8xf32>
    %cst_111 = arith.constant dense<0.000000e+00> : vector<64x8xf32>
    %97 = tpu.matmul %94, %96, %cst_111 {dimension_numbers = #tpu.dot_dimension_numbers<[1], [0], [0], [1], [0, 0, 1, 1], [], []>} : vector<64x8xf32>, vector<8x8xf32>, vector<64x8xf32> -> vector<64x8xf32>
    %98 = arith.addf %91, %97 : vector<64x8xf32>
    %c0_112 = arith.constant 0 : index
    %c0_113 = arith.constant 0 : index
    %c1_114 = arith.constant 1 : index
    %c2_115 = arith.constant 2 : index
    %c0_116 = arith.constant 0 : index
    %99 = vector.load %arg3[%c0_112, %c0_113, %c1_114, %c2_115, %c0_116] : memref<1x1x10x10x8xf32, #tpu.memory_space<vmem>>, vector<1x1x8x8x8xf32>
    %100 = vector.shape_cast %99 : vector<1x1x8x8x8xf32> to vector<8x8x8xf32>
    %101 = vector.shape_cast %100 : vector<8x8x8xf32> to vector<64x8xf32>
    %c14 = arith.constant 14 : index
    %c0_117 = arith.constant 0 : index
    %c0_118 = arith.constant 0 : index
    %102 = vector.load %arg5[%c14, %c0_117, %c0_118] : memref<27x8x8xf32, #tpu.memory_space<vmem>>, vector<1x8x8xf32>
    %103 = vector.shape_cast %102 : vector<1x8x8xf32> to vector<8x8xf32>
    %cst_119 = arith.constant dense<0.000000e+00> : vector<64x8xf32>
    %104 = tpu.matmul %101, %103, %cst_119 {dimension_numbers = #tpu.dot_dimension_numbers<[1], [0], [0], [1], [0, 0, 1, 1], [], []>} : vector<64x8xf32>, vector<8x8xf32>, vector<64x8xf32> -> vector<64x8xf32>
    %105 = arith.addf %98, %104 : vector<64x8xf32>
    %c0_120 = arith.constant 0 : index
    %c0_121 = arith.constant 0 : index
    %c2_122 = arith.constant 2 : index
    %c0_123 = arith.constant 0 : index
    %c0_124 = arith.constant 0 : index
    %106 = vector.load %arg3[%c0_120, %c0_121, %c2_122, %c0_123, %c0_124] : memref<1x1x10x10x8xf32, #tpu.memory_space<vmem>>, vector<1x1x8x8x8xf32>
    %107 = vector.shape_cast %106 : vector<1x1x8x8x8xf32> to vector<8x8x8xf32>
    %108 = vector.shape_cast %107 : vector<8x8x8xf32> to vector<64x8xf32>
    %c15 = arith.constant 15 : index
    %c0_125 = arith.constant 0 : index
    %c0_126 = arith.constant 0 : index
    %109 = vector.load %arg5[%c15, %c0_125, %c0_126] : memref<27x8x8xf32, #tpu.memory_space<vmem>>, vector<1x8x8xf32>
    %110 = vector.shape_cast %109 : vector<1x8x8xf32> to vector<8x8xf32>
    %cst_127 = arith.constant dense<0.000000e+00> : vector<64x8xf32>
    %111 = tpu.matmul %108, %110, %cst_127 {dimension_numbers = #tpu.dot_dimension_numbers<[1], [0], [0], [1], [0, 0, 1, 1], [], []>} : vector<64x8xf32>, vector<8x8xf32>, vector<64x8xf32> -> vector<64x8xf32>
    %112 = arith.addf %105, %111 : vector<64x8xf32>
    %c0_128 = arith.constant 0 : index
    %c0_129 = arith.constant 0 : index
    %c2_130 = arith.constant 2 : index
    %c1_131 = arith.constant 1 : index
    %c0_132 = arith.constant 0 : index
    %113 = vector.load %arg3[%c0_128, %c0_129, %c2_130, %c1_131, %c0_132] : memref<1x1x10x10x8xf32, #tpu.memory_space<vmem>>, vector<1x1x8x8x8xf32>
    %114 = vector.shape_cast %113 : vector<1x1x8x8x8xf32> to vector<8x8x8xf32>
    %115 = vector.shape_cast %114 : vector<8x8x8xf32> to vector<64x8xf32>
    %c16 = arith.constant 16 : index
    %c0_133 = arith.constant 0 : index
    %c0_134 = arith.constant 0 : index
    %116 = vector.load %arg5[%c16, %c0_133, %c0_134] : memref<27x8x8xf32, #tpu.memory_space<vmem>>, vector<1x8x8xf32>
    %117 = vector.shape_cast %116 : vector<1x8x8xf32> to vector<8x8xf32>
    %cst_135 = arith.constant dense<0.000000e+00> : vector<64x8xf32>
    %118 = tpu.matmul %115, %117, %cst_135 {dimension_numbers = #tpu.dot_dimension_numbers<[1], [0], [0], [1], [0, 0, 1, 1], [], []>} : vector<64x8xf32>, vector<8x8xf32>, vector<64x8xf32> -> vector<64x8xf32>
    %119 = arith.addf %112, %118 : vector<64x8xf32>
    %c0_136 = arith.constant 0 : index
    %c0_137 = arith.constant 0 : index
    %c2_138 = arith.constant 2 : index
    %c2_139 = arith.constant 2 : index
    %c0_140 = arith.constant 0 : index
    %120 = vector.load %arg3[%c0_136, %c0_137, %c2_138, %c2_139, %c0_140] : memref<1x1x10x10x8xf32, #tpu.memory_space<vmem>>, vector<1x1x8x8x8xf32>
    %121 = vector.shape_cast %120 : vector<1x1x8x8x8xf32> to vector<8x8x8xf32>
    %122 = vector.shape_cast %121 : vector<8x8x8xf32> to vector<64x8xf32>
    %c17 = arith.constant 17 : index
    %c0_141 = arith.constant 0 : index
    %c0_142 = arith.constant 0 : index
    %123 = vector.load %arg5[%c17, %c0_141, %c0_142] : memref<27x8x8xf32, #tpu.memory_space<vmem>>, vector<1x8x8xf32>
    %124 = vector.shape_cast %123 : vector<1x8x8xf32> to vector<8x8xf32>
    %cst_143 = arith.constant dense<0.000000e+00> : vector<64x8xf32>
    %125 = tpu.matmul %122, %124, %cst_143 {dimension_numbers = #tpu.dot_dimension_numbers<[1], [0], [0], [1], [0, 0, 1, 1], [], []>} : vector<64x8xf32>, vector<8x8xf32>, vector<64x8xf32> -> vector<64x8xf32>
    %126 = arith.addf %119, %125 : vector<64x8xf32>
    %c0_144 = arith.constant 0 : index
    %c0_145 = arith.constant 0 : index
    %c0_146 = arith.constant 0 : index
    %c0_147 = arith.constant 0 : index
    %c0_148 = arith.constant 0 : index
    %127 = vector.load %arg4[%c0_144, %c0_145, %c0_146, %c0_147, %c0_148] : memref<1x1x10x10x8xf32, #tpu.memory_space<vmem>>, vector<1x1x8x8x8xf32>
    %128 = vector.shape_cast %127 : vector<1x1x8x8x8xf32> to vector<8x8x8xf32>
    %129 = vector.shape_cast %128 : vector<8x8x8xf32> to vector<64x8xf32>
    %c18 = arith.constant 18 : index
    %c0_149 = arith.constant 0 : index
    %c0_150 = arith.constant 0 : index
    %130 = vector.load %arg5[%c18, %c0_149, %c0_150] : memref<27x8x8xf32, #tpu.memory_space<vmem>>, vector<1x8x8xf32>
    %131 = vector.shape_cast %130 : vector<1x8x8xf32> to vector<8x8xf32>
    %cst_151 = arith.constant dense<0.000000e+00> : vector<64x8xf32>
    %132 = tpu.matmul %129, %131, %cst_151 {dimension_numbers = #tpu.dot_dimension_numbers<[1], [0], [0], [1], [0, 0, 1, 1], [], []>} : vector<64x8xf32>, vector<8x8xf32>, vector<64x8xf32> -> vector<64x8xf32>
    %133 = arith.addf %126, %132 : vector<64x8xf32>
    %c0_152 = arith.constant 0 : index
    %c0_153 = arith.constant 0 : index
    %c0_154 = arith.constant 0 : index
    %c1_155 = arith.constant 1 : index
    %c0_156 = arith.constant 0 : index
    %134 = vector.load %arg4[%c0_152, %c0_153, %c0_154, %c1_155, %c0_156] : memref<1x1x10x10x8xf32, #tpu.memory_space<vmem>>, vector<1x1x8x8x8xf32>
    %135 = vector.shape_cast %134 : vector<1x1x8x8x8xf32> to vector<8x8x8xf32>
    %136 = vector.shape_cast %135 : vector<8x8x8xf32> to vector<64x8xf32>
    %c19 = arith.constant 19 : index
    %c0_157 = arith.constant 0 : index
    %c0_158 = arith.constant 0 : index
    %137 = vector.load %arg5[%c19, %c0_157, %c0_158] : memref<27x8x8xf32, #tpu.memory_space<vmem>>, vector<1x8x8xf32>
    %138 = vector.shape_cast %137 : vector<1x8x8xf32> to vector<8x8xf32>
    %cst_159 = arith.constant dense<0.000000e+00> : vector<64x8xf32>
    %139 = tpu.matmul %136, %138, %cst_159 {dimension_numbers = #tpu.dot_dimension_numbers<[1], [0], [0], [1], [0, 0, 1, 1], [], []>} : vector<64x8xf32>, vector<8x8xf32>, vector<64x8xf32> -> vector<64x8xf32>
    %140 = arith.addf %133, %139 : vector<64x8xf32>
    %c0_160 = arith.constant 0 : index
    %c0_161 = arith.constant 0 : index
    %c0_162 = arith.constant 0 : index
    %c2_163 = arith.constant 2 : index
    %c0_164 = arith.constant 0 : index
    %141 = vector.load %arg4[%c0_160, %c0_161, %c0_162, %c2_163, %c0_164] : memref<1x1x10x10x8xf32, #tpu.memory_space<vmem>>, vector<1x1x8x8x8xf32>
    %142 = vector.shape_cast %141 : vector<1x1x8x8x8xf32> to vector<8x8x8xf32>
    %143 = vector.shape_cast %142 : vector<8x8x8xf32> to vector<64x8xf32>
    %c20 = arith.constant 20 : index
    %c0_165 = arith.constant 0 : index
    %c0_166 = arith.constant 0 : index
    %144 = vector.load %arg5[%c20, %c0_165, %c0_166] : memref<27x8x8xf32, #tpu.memory_space<vmem>>, vector<1x8x8xf32>
    %145 = vector.shape_cast %144 : vector<1x8x8xf32> to vector<8x8xf32>
    %cst_167 = arith.constant dense<0.000000e+00> : vector<64x8xf32>
    %146 = tpu.matmul %143, %145, %cst_167 {dimension_numbers = #tpu.dot_dimension_numbers<[1], [0], [0], [1], [0, 0, 1, 1], [], []>} : vector<64x8xf32>, vector<8x8xf32>, vector<64x8xf32> -> vector<64x8xf32>
    %147 = arith.addf %140, %146 : vector<64x8xf32>
    %c0_168 = arith.constant 0 : index
    %c0_169 = arith.constant 0 : index
    %c1_170 = arith.constant 1 : index
    %c0_171 = arith.constant 0 : index
    %c0_172 = arith.constant 0 : index
    %148 = vector.load %arg4[%c0_168, %c0_169, %c1_170, %c0_171, %c0_172] : memref<1x1x10x10x8xf32, #tpu.memory_space<vmem>>, vector<1x1x8x8x8xf32>
    %149 = vector.shape_cast %148 : vector<1x1x8x8x8xf32> to vector<8x8x8xf32>
    %150 = vector.shape_cast %149 : vector<8x8x8xf32> to vector<64x8xf32>
    %c21 = arith.constant 21 : index
    %c0_173 = arith.constant 0 : index
    %c0_174 = arith.constant 0 : index
    %151 = vector.load %arg5[%c21, %c0_173, %c0_174] : memref<27x8x8xf32, #tpu.memory_space<vmem>>, vector<1x8x8xf32>
    %152 = vector.shape_cast %151 : vector<1x8x8xf32> to vector<8x8xf32>
    %cst_175 = arith.constant dense<0.000000e+00> : vector<64x8xf32>
    %153 = tpu.matmul %150, %152, %cst_175 {dimension_numbers = #tpu.dot_dimension_numbers<[1], [0], [0], [1], [0, 0, 1, 1], [], []>} : vector<64x8xf32>, vector<8x8xf32>, vector<64x8xf32> -> vector<64x8xf32>
    %154 = arith.addf %147, %153 : vector<64x8xf32>
    %c0_176 = arith.constant 0 : index
    %c0_177 = arith.constant 0 : index
    %c1_178 = arith.constant 1 : index
    %c1_179 = arith.constant 1 : index
    %c0_180 = arith.constant 0 : index
    %155 = vector.load %arg4[%c0_176, %c0_177, %c1_178, %c1_179, %c0_180] : memref<1x1x10x10x8xf32, #tpu.memory_space<vmem>>, vector<1x1x8x8x8xf32>
    %156 = vector.shape_cast %155 : vector<1x1x8x8x8xf32> to vector<8x8x8xf32>
    %157 = vector.shape_cast %156 : vector<8x8x8xf32> to vector<64x8xf32>
    %c22 = arith.constant 22 : index
    %c0_181 = arith.constant 0 : index
    %c0_182 = arith.constant 0 : index
    %158 = vector.load %arg5[%c22, %c0_181, %c0_182] : memref<27x8x8xf32, #tpu.memory_space<vmem>>, vector<1x8x8xf32>
    %159 = vector.shape_cast %158 : vector<1x8x8xf32> to vector<8x8xf32>
    %cst_183 = arith.constant dense<0.000000e+00> : vector<64x8xf32>
    %160 = tpu.matmul %157, %159, %cst_183 {dimension_numbers = #tpu.dot_dimension_numbers<[1], [0], [0], [1], [0, 0, 1, 1], [], []>} : vector<64x8xf32>, vector<8x8xf32>, vector<64x8xf32> -> vector<64x8xf32>
    %161 = arith.addf %154, %160 : vector<64x8xf32>
    %c0_184 = arith.constant 0 : index
    %c0_185 = arith.constant 0 : index
    %c1_186 = arith.constant 1 : index
    %c2_187 = arith.constant 2 : index
    %c0_188 = arith.constant 0 : index
    %162 = vector.load %arg4[%c0_184, %c0_185, %c1_186, %c2_187, %c0_188] : memref<1x1x10x10x8xf32, #tpu.memory_space<vmem>>, vector<1x1x8x8x8xf32>
    %163 = vector.shape_cast %162 : vector<1x1x8x8x8xf32> to vector<8x8x8xf32>
    %164 = vector.shape_cast %163 : vector<8x8x8xf32> to vector<64x8xf32>
    %c23 = arith.constant 23 : index
    %c0_189 = arith.constant 0 : index
    %c0_190 = arith.constant 0 : index
    %165 = vector.load %arg5[%c23, %c0_189, %c0_190] : memref<27x8x8xf32, #tpu.memory_space<vmem>>, vector<1x8x8xf32>
    %166 = vector.shape_cast %165 : vector<1x8x8xf32> to vector<8x8xf32>
    %cst_191 = arith.constant dense<0.000000e+00> : vector<64x8xf32>
    %167 = tpu.matmul %164, %166, %cst_191 {dimension_numbers = #tpu.dot_dimension_numbers<[1], [0], [0], [1], [0, 0, 1, 1], [], []>} : vector<64x8xf32>, vector<8x8xf32>, vector<64x8xf32> -> vector<64x8xf32>
    %168 = arith.addf %161, %167 : vector<64x8xf32>
    %c0_192 = arith.constant 0 : index
    %c0_193 = arith.constant 0 : index
    %c2_194 = arith.constant 2 : index
    %c0_195 = arith.constant 0 : index
    %c0_196 = arith.constant 0 : index
    %169 = vector.load %arg4[%c0_192, %c0_193, %c2_194, %c0_195, %c0_196] : memref<1x1x10x10x8xf32, #tpu.memory_space<vmem>>, vector<1x1x8x8x8xf32>
    %170 = vector.shape_cast %169 : vector<1x1x8x8x8xf32> to vector<8x8x8xf32>
    %171 = vector.shape_cast %170 : vector<8x8x8xf32> to vector<64x8xf32>
    %c24 = arith.constant 24 : index
    %c0_197 = arith.constant 0 : index
    %c0_198 = arith.constant 0 : index
    %172 = vector.load %arg5[%c24, %c0_197, %c0_198] : memref<27x8x8xf32, #tpu.memory_space<vmem>>, vector<1x8x8xf32>
    %173 = vector.shape_cast %172 : vector<1x8x8xf32> to vector<8x8xf32>
    %cst_199 = arith.constant dense<0.000000e+00> : vector<64x8xf32>
    %174 = tpu.matmul %171, %173, %cst_199 {dimension_numbers = #tpu.dot_dimension_numbers<[1], [0], [0], [1], [0, 0, 1, 1], [], []>} : vector<64x8xf32>, vector<8x8xf32>, vector<64x8xf32> -> vector<64x8xf32>
    %175 = arith.addf %168, %174 : vector<64x8xf32>
    %c0_200 = arith.constant 0 : index
    %c0_201 = arith.constant 0 : index
    %c2_202 = arith.constant 2 : index
    %c1_203 = arith.constant 1 : index
    %c0_204 = arith.constant 0 : index
    %176 = vector.load %arg4[%c0_200, %c0_201, %c2_202, %c1_203, %c0_204] : memref<1x1x10x10x8xf32, #tpu.memory_space<vmem>>, vector<1x1x8x8x8xf32>
    %177 = vector.shape_cast %176 : vector<1x1x8x8x8xf32> to vector<8x8x8xf32>
    %178 = vector.shape_cast %177 : vector<8x8x8xf32> to vector<64x8xf32>
    %c25 = arith.constant 25 : index
    %c0_205 = arith.constant 0 : index
    %c0_206 = arith.constant 0 : index
    %179 = vector.load %arg5[%c25, %c0_205, %c0_206] : memref<27x8x8xf32, #tpu.memory_space<vmem>>, vector<1x8x8xf32>
    %180 = vector.shape_cast %179 : vector<1x8x8xf32> to vector<8x8xf32>
    %cst_207 = arith.constant dense<0.000000e+00> : vector<64x8xf32>
    %181 = tpu.matmul %178, %180, %cst_207 {dimension_numbers = #tpu.dot_dimension_numbers<[1], [0], [0], [1], [0, 0, 1, 1], [], []>} : vector<64x8xf32>, vector<8x8xf32>, vector<64x8xf32> -> vector<64x8xf32>
    %182 = arith.addf %175, %181 : vector<64x8xf32>
    %c0_208 = arith.constant 0 : index
    %c0_209 = arith.constant 0 : index
    %c2_210 = arith.constant 2 : index
    %c2_211 = arith.constant 2 : index
    %c0_212 = arith.constant 0 : index
    %183 = vector.load %arg4[%c0_208, %c0_209, %c2_210, %c2_211, %c0_212] : memref<1x1x10x10x8xf32, #tpu.memory_space<vmem>>, vector<1x1x8x8x8xf32>
    %184 = vector.shape_cast %183 : vector<1x1x8x8x8xf32> to vector<8x8x8xf32>
    %185 = vector.shape_cast %184 : vector<8x8x8xf32> to vector<64x8xf32>
    %c26 = arith.constant 26 : index
    %c0_213 = arith.constant 0 : index
    %c0_214 = arith.constant 0 : index
    %186 = vector.load %arg5[%c26, %c0_213, %c0_214] : memref<27x8x8xf32, #tpu.memory_space<vmem>>, vector<1x8x8xf32>
    %187 = vector.shape_cast %186 : vector<1x8x8xf32> to vector<8x8xf32>
    %cst_215 = arith.constant dense<0.000000e+00> : vector<64x8xf32>
    %188 = tpu.matmul %185, %187, %cst_215 {dimension_numbers = #tpu.dot_dimension_numbers<[1], [0], [0], [1], [0, 0, 1, 1], [], []>} : vector<64x8xf32>, vector<8x8xf32>, vector<64x8xf32> -> vector<64x8xf32>
    %189 = arith.addf %182, %188 : vector<64x8xf32>
    %c0_216 = arith.constant 0 : index
    %c0_217 = arith.constant 0 : index
    %c0_218 = arith.constant 0 : index
    %c0_219 = arith.constant 0 : index
    %190 = vector.load %arg6[%c0_216, %c0_217, %c0_218, %c0_219] : memref<1x1x64x8xf32, #tpu.memory_space<vmem>>, vector<1x1x64x8xf32>
    %191 = vector.shape_cast %190 : vector<1x1x64x8xf32> to vector<64x8xf32>
    %192 = vector.shape_cast %189 : vector<64x8xf32> to vector<1x1x64x8xf32>
    tpu.vector_store %arg6[%c0_216, %c0_217, %c0_218, %c0_219], %192 {strides = array<i32>} : memref<1x1x64x8xf32, #tpu.memory_space<vmem>>, vector<1x1x64x8xf32>,
    %cst_220 = arith.constant dense<0.000000e+00> : vector<8xf32>
    %193 = vector.multi_reduction <add>, %189, %cst_220 [0] : vector<64x8xf32> to vector<8xf32>
    %194 = vector.shape_cast %193 : vector<8xf32> to vector<1x8xf32>
    %195 = arith.mulf %189, %189 : vector<64x8xf32>
    %cst_221 = arith.constant dense<0.000000e+00> : vector<8xf32>
    %196 = vector.multi_reduction <add>, %195, %cst_221 [0] : vector<64x8xf32> to vector<8xf32>
    %197 = vector.shape_cast %196 : vector<8xf32> to vector<1x8xf32>
    %198 = tpu.concatenate %194, %197 in 0 : vector<1x8xf32>, vector<1x8xf32> -> vector<2x8xf32>
    %c0_222 = arith.constant 0 : index
    %c0_223 = arith.constant 0 : index
    %c0_224 = arith.constant 0 : index
    %c0_225 = arith.constant 0 : index
    %199 = vector.load %arg7[%c0_222, %c0_223, %c0_224, %c0_225] : memref<1x1x2x8xf32, #tpu.memory_space<vmem>>, vector<1x1x2x8xf32>
    %200 = vector.shape_cast %199 : vector<1x1x2x8xf32> to vector<2x8xf32>
    %201 = vector.shape_cast %198 : vector<2x8xf32> to vector<1x1x2x8xf32>
    tpu.vector_store %arg7[%c0_222, %c0_223, %c0_224, %c0_225], %201 {strides = array<i32>} : memref<1x1x2x8xf32, #tpu.memory_space<vmem>>, vector<1x1x2x8xf32>,
    return
  }
  func.func @transform_0(%arg0: i32, %arg1: i32) -> (i32, i32, i32, i32, i32) {
    %c0_i32 = arith.constant 0 : i32
    %c0_i32_0 = arith.constant 0 : i32
    %c0_i32_1 = arith.constant 0 : i32
    %c0_i32_2 = arith.constant 0 : i32
    return %arg0, %arg1, %c0_i32, %c0_i32_0, %c0_i32_1 : i32, i32, i32, i32, i32
  }
  func.func @transform_1(%arg0: i32, %arg1: i32) -> (i32, i32, i32, i32, i32) {
    %c1_i32 = arith.constant 1 : i32
    %0 = arith.addi %arg1, %c1_i32 : i32
    %c0_i32 = arith.constant 0 : i32
    %c0_i32_0 = arith.constant 0 : i32
    %c0_i32_1 = arith.constant 0 : i32
    %c0_i32_2 = arith.constant 0 : i32
    return %arg0, %0, %c0_i32, %c0_i32_0, %c0_i32_1 : i32, i32, i32, i32, i32
  }
  func.func @transform_2(%arg0: i32, %arg1: i32) -> (i32, i32, i32, i32, i32) {
    %c2_i32 = arith.constant 2 : i32
    %0 = arith.addi %arg1, %c2_i32 : i32
    %c0_i32 = arith.constant 0 : i32
    %c0_i32_0 = arith.constant 0 : i32
    %c0_i32_1 = arith.constant 0 : i32
    %c0_i32_2 = arith.constant 0 : i32
    return %arg0, %0, %c0_i32, %c0_i32_0, %c0_i32_1 : i32, i32, i32, i32, i32
  }
  func.func @transform_3(%arg0: i32, %arg1: i32) -> (i32, i32, i32) {
    %c0_i32 = arith.constant 0 : i32
    %c0_i32_0 = arith.constant 0 : i32
    %c0_i32_1 = arith.constant 0 : i32
    %c0_i32_2 = arith.constant 0 : i32
    return %c0_i32, %c0_i32_0, %c0_i32_1 : i32, i32, i32
  }
  func.func @transform_4(%arg0: i32, %arg1: i32) -> (i32, i32, i32, i32) {
    %c0_i32 = arith.constant 0 : i32
    %c0_i32_0 = arith.constant 0 : i32
    %c0_i32_1 = arith.constant 0 : i32
    return %arg0, %arg1, %c0_i32, %c0_i32_0 : i32, i32, i32, i32
  }
  func.func @transform_5(%arg0: i32, %arg1: i32) -> (i32, i32, i32, i32) {
    %c0_i32 = arith.constant 0 : i32
    %c0_i32_0 = arith.constant 0 : i32
    %c0_i32_1 = arith.constant 0 : i32
    return %arg0, %arg1, %c0_i32, %c0_i32_0 : i32, i32, i32, i32
  }
}

module attributes {stable_mosaic.version = 11 : i64} {
  func.func @_scale_shift_relu_kernel(%arg0: i32, %arg1: memref<512x8xf32, #tpu.memory_space<vmem>>, %arg2: memref<1x8xf32, #tpu.memory_space<vmem>>, %arg3: memref<1x8xf32, #tpu.memory_space<vmem>>, %arg4: memref<512x8xf32, #tpu.memory_space<vmem>>) attributes {dimension_semantics = [#tpu.dimension_semantics<parallel>], iteration_bounds = array<i64: 2>, scalar_prefetch = 0 : i64, scratch_operands = 0 : i64, tpu.core_type = #tpu.core_type<tc>, window_params = [{transform_indices = @transform_0, window_bounds = array<i64: 512, 8>}, {pipeline_mode = #tpu.pipeline_mode<synchronous>, transform_indices = @transform_1, window_bounds = array<i64: 1, 8>}, {pipeline_mode = #tpu.pipeline_mode<synchronous>, transform_indices = @transform_2, window_bounds = array<i64: 1, 8>}, {transform_indices = @transform_3, window_bounds = array<i64: 512, 8>}]} {
    %c0 = arith.constant 0 : index
    %c0_0 = arith.constant 0 : index
    %0 = vector.load %arg1[%c0, %c0_0] : memref<512x8xf32, #tpu.memory_space<vmem>>, vector<512x8xf32>
    %c0_1 = arith.constant 0 : index
    %c0_2 = arith.constant 0 : index
    %1 = vector.load %arg2[%c0_1, %c0_2] : memref<1x8xf32, #tpu.memory_space<vmem>>, vector<1x8xf32>
    %2 = vector.broadcast %1 : vector<1x8xf32> to vector<512x8xf32>
    %3 = arith.mulf %0, %2 : vector<512x8xf32>
    %c0_3 = arith.constant 0 : index
    %c0_4 = arith.constant 0 : index
    %4 = vector.load %arg3[%c0_3, %c0_4] : memref<1x8xf32, #tpu.memory_space<vmem>>, vector<1x8xf32>
    %5 = vector.broadcast %4 : vector<1x8xf32> to vector<512x8xf32>
    %6 = arith.addf %3, %5 : vector<512x8xf32>
    %cst = arith.constant 0.000000e+00 : f32
    %7 = vector.broadcast %cst : f32 to vector<512x8xf32>
    %8 = arith.maximumf %6, %7 : vector<512x8xf32>
    %c0_5 = arith.constant 0 : index
    %c0_6 = arith.constant 0 : index
    %9 = vector.load %arg4[%c0_5, %c0_6] : memref<512x8xf32, #tpu.memory_space<vmem>>, vector<512x8xf32>
    tpu.vector_store %arg4[%c0_5, %c0_6], %8 {strides = array<i32>} : memref<512x8xf32, #tpu.memory_space<vmem>>, vector<512x8xf32>,
    return
  }
  func.func @transform_0(%arg0: i32) -> (i32, i32) {
    %c0_i32 = arith.constant 0 : i32
    %c0_i32_0 = arith.constant 0 : i32
    return %arg0, %c0_i32 : i32, i32
  }
  func.func @transform_1(%arg0: i32) -> (i32, i32) {
    %c0_i32 = arith.constant 0 : i32
    %c0_i32_0 = arith.constant 0 : i32
    %c0_i32_1 = arith.constant 0 : i32
    return %c0_i32, %c0_i32_0 : i32, i32
  }
  func.func @transform_2(%arg0: i32) -> (i32, i32) {
    %c0_i32 = arith.constant 0 : i32
    %c0_i32_0 = arith.constant 0 : i32
    %c0_i32_1 = arith.constant 0 : i32
    return %c0_i32, %c0_i32_0 : i32, i32
  }
  func.func @transform_3(%arg0: i32) -> (i32, i32) {
    %c0_i32 = arith.constant 0 : i32
    %c0_i32_0 = arith.constant 0 : i32
    return %arg0, %c0_i32 : i32, i32
  }
}

module attributes {stable_mosaic.version = 11 : i64} {
  func.func @_scale_shift_add_relu_kernel(%arg0: i32, %arg1: memref<512x8xf32, #tpu.memory_space<vmem>>, %arg2: memref<512x8xf32, #tpu.memory_space<vmem>>, %arg3: memref<1x8xf32, #tpu.memory_space<vmem>>, %arg4: memref<1x8xf32, #tpu.memory_space<vmem>>, %arg5: memref<512x8xf32, #tpu.memory_space<vmem>>) attributes {dimension_semantics = [#tpu.dimension_semantics<parallel>], iteration_bounds = array<i64: 2>, scalar_prefetch = 0 : i64, scratch_operands = 0 : i64, tpu.core_type = #tpu.core_type<tc>, window_params = [{transform_indices = @transform_0, window_bounds = array<i64: 512, 8>}, {transform_indices = @transform_1, window_bounds = array<i64: 512, 8>}, {pipeline_mode = #tpu.pipeline_mode<synchronous>, transform_indices = @transform_2, window_bounds = array<i64: 1, 8>}, {pipeline_mode = #tpu.pipeline_mode<synchronous>, transform_indices = @transform_3, window_bounds = array<i64: 1, 8>}, {transform_indices = @transform_4, window_bounds = array<i64: 512, 8>}]} {
    %c0 = arith.constant 0 : index
    %c0_0 = arith.constant 0 : index
    %0 = vector.load %arg1[%c0, %c0_0] : memref<512x8xf32, #tpu.memory_space<vmem>>, vector<512x8xf32>
    %c0_1 = arith.constant 0 : index
    %c0_2 = arith.constant 0 : index
    %1 = vector.load %arg3[%c0_1, %c0_2] : memref<1x8xf32, #tpu.memory_space<vmem>>, vector<1x8xf32>
    %2 = vector.broadcast %1 : vector<1x8xf32> to vector<512x8xf32>
    %3 = arith.mulf %0, %2 : vector<512x8xf32>
    %c0_3 = arith.constant 0 : index
    %c0_4 = arith.constant 0 : index
    %4 = vector.load %arg4[%c0_3, %c0_4] : memref<1x8xf32, #tpu.memory_space<vmem>>, vector<1x8xf32>
    %5 = vector.broadcast %4 : vector<1x8xf32> to vector<512x8xf32>
    %6 = arith.addf %3, %5 : vector<512x8xf32>
    %c0_5 = arith.constant 0 : index
    %c0_6 = arith.constant 0 : index
    %7 = vector.load %arg2[%c0_5, %c0_6] : memref<512x8xf32, #tpu.memory_space<vmem>>, vector<512x8xf32>
    %8 = arith.addf %6, %7 : vector<512x8xf32>
    %cst = arith.constant 0.000000e+00 : f32
    %9 = vector.broadcast %cst : f32 to vector<512x8xf32>
    %10 = arith.maximumf %8, %9 : vector<512x8xf32>
    %c0_7 = arith.constant 0 : index
    %c0_8 = arith.constant 0 : index
    %11 = vector.load %arg5[%c0_7, %c0_8] : memref<512x8xf32, #tpu.memory_space<vmem>>, vector<512x8xf32>
    tpu.vector_store %arg5[%c0_7, %c0_8], %10 {strides = array<i32>} : memref<512x8xf32, #tpu.memory_space<vmem>>, vector<512x8xf32>,
    return
  }
  func.func @transform_0(%arg0: i32) -> (i32, i32) {
    %c0_i32 = arith.constant 0 : i32
    %c0_i32_0 = arith.constant 0 : i32
    return %arg0, %c0_i32 : i32, i32
  }
  func.func @transform_1(%arg0: i32) -> (i32, i32) {
    %c0_i32 = arith.constant 0 : i32
    %c0_i32_0 = arith.constant 0 : i32
    return %arg0, %c0_i32 : i32, i32
  }
  func.func @transform_2(%arg0: i32) -> (i32, i32) {
    %c0_i32 = arith.constant 0 : i32
    %c0_i32_0 = arith.constant 0 : i32
    %c0_i32_1 = arith.constant 0 : i32
    return %c0_i32, %c0_i32_0 : i32, i32
  }
  func.func @transform_3(%arg0: i32) -> (i32, i32) {
    %c0_i32 = arith.constant 0 : i32
    %c0_i32_0 = arith.constant 0 : i32
    %c0_i32_1 = arith.constant 0 : i32
    return %c0_i32, %c0_i32_0 : i32, i32
  }
  func.func @transform_4(%arg0: i32) -> (i32, i32) {
    %c0_i32 = arith.constant 0 : i32
    %c0_i32_0 = arith.constant 0 : i32
    return %arg0, %c0_i32 : i32, i32
  }
}

</mosaic_0001>

<bundles_post_ra>
// kernel: basic_block_forward.5
= control target key start
LH: loop header
LB: loop body
LE: loop exit
PB: predicated region body
PF: predicated region fallthrough
CT: control target
= control target key end

     0   :  { %s608_s12 = smov 0   ;;  %s962_s0 = inlined_call_operand.vmem [shape: f32[1024,8], index: 0, kind: input, shape index: {}]   ;;  %s963_s1 = inlined_call_operand.vmem [shape: f32[1,8], index: 1, kind: input, shape index: {}]   ;;  %s964_s2 = inlined_call_operand.vmem [shape: f32[1,8], index: 2, kind: input, shape index: {}]   ;;  %s965_s3 = inlined_call_operand.vmem [shape: f32[1024,8], index: 3, kind: output, shape index: {}]  }
   0x1 LB: > { %s559_s13 = sadd.s32 4294967295, %s586_s12   ;;  %p563_p0 = scmp.ge.s32.totalorder %s586_s12, 1  ;;  %s586_s12 = sphi %s608_s12, %s13_s12  }
   0x2   : > { %p138_p1 = scmp.lt.s32.totalorder %s586_s12, 3 }
   0x4   : > { %p139_p2 = pnand %p563_p0, %p138_p1 }
   0x5   : > { %s564_s14 = sshll.u32 (!%p139_p2), %s559_s13, 6 }
   0x6   : > { %142 = sbr.rel (%p139_p2) target bundleno = 85 (0x55), region = 32  ;;  %p163_p3 = scmp.lt.s32.totalorder (!%p139_p2), %s564_s14, 127 }
   0xb   : > { %s967_s14 = smov (!%p163_p3, %s564_s14), 127  ;;  %v619_v0 = vld [vmem:[%s963_s1] ss:$0 sm:$0xff]  ;;  %vm438_vm0 = vcmask 64512  }
   0xc   : > { %s565_s17 = sshll.u32 %s967_s14, 3  ;;  %v629_v1 = vld [vmem:[%s964_s2] ss:$0 sm:$0xff] }
   0xd   : > { %s624_s20 = scalar_lea.vmem %s962_s0, %s565_s17  ;;  %s652_s25 = scalar_lea.vmem %s965_s3, %s565_s17 }
   0xe   : > { %v174_v2 = vld [vmem:[%s624_s20] sm:$0xff]  ;;  %v175_v3 = vld [vmem:[%s624_s20 + $0x8] sm:$0xff]  ;;  %v176_v4 = vld [vmem:[%s624_s20 + $0x10] sm:$0xff] }
   0xf   : > { %v242_v5 = vmul.f32 %v619_v0, %v174_v2  ;;  %v243_v6 = vmul.f32 %v619_v0, %v175_v3  ;;  %v244_v7 = vmul.f32 %v619_v0, %v176_v4  ;;  %v177_v8 = vld [vmem:[%s624_s20 + $0x18] sm:$0xff]  ;;  %v178_v9 = vld [vmem:[%s624_s20 + $0x20] sm:$0xff]  ;;  %v179_v10 = vld [vmem:[%s624_s20 + $0x28] sm:$0xff] }
  0x10   : > { %v245_v11 = vmul.f32 %v619_v0, %v177_v8  ;;  %v246_v12 = vmul.f32 %v619_v0, %v178_v9  ;;  %v247_v13 = vmul.f32 %v619_v0, %v179_v10  ;;  %v180_v14 = vld [vmem:[%s624_s20 + $0x30] sm:$0xff]  ;;  %v181_v15 = vld [vmem:[%s624_s20 + $0x38] sm:$0xff]  ;;  %v182_v24 = vld [vmem:[%s624_s20 + $0x40] sm:$0xff] }
  0x11   : > { %v310_v16 = vadd.f32 %v629_v1, %v242_v5  ;;  %v311_v17 = vadd.f32 %v629_v1, %v243_v6  ;;  %v312_v18 = vadd.f32 %v629_v1, %v244_v7  ;;  %v248_v19 = vmul.f32 %v619_v0, %v180_v14  ;;  %v183_v25 = vld [vmem:[%s624_s20 + $0x48] sm:$0xff]  ;;  %v184_v26 = vld [vmem:[%s624_s20 + $0x50] sm:$0xff]  ;;  %v185_v31 = vld [vmem:[%s624_s20 + $0x58] sm:$0xff] }
  0x12   : > { %v313_v20 = vadd.f32 %v629_v1, %v245_v11  ;;  %v314_v21 = vadd.f32 %v629_v1, %v246_v12  ;;  %v315_v22 = vadd.f32 %v629_v1, %v247_v13  ;;  %v249_v23 = vmul.f32 %v619_v0, %v181_v15  ;;  %v186_v32 = vld [vmem:[%s624_s20 + $0x60] sm:$0xff]  ;;  %v187_v33 = vld [vmem:[%s624_s20 + $0x68] sm:$0xff]  ;;  %v188_v37 = vld [vmem:[%s624_s20 + $0x70] sm:$0xff] }
  0x13   : > { %v374_v27 = vmax.f32 %v310_v16, 0.0  ;;  %v375_v28 = vmax.f32 %v311_v17, 0.0  ;;  %v376_v29 = vmax.f32 %v312_v18, 0.0  ;;  %v316_v30 = vadd.f32 %v629_v1, %v248_v19  ;;  %v189_v42 = vld [vmem:[%s624_s20 + $0x78] sm:$0xff]  ;;  %v190_v54 = vld [vmem:[%s624_s20 + $0x80] sm:$0xff]  ;;  %v191_v55 = vld [vmem:[%s624_s20 + $0x88] sm:$0xff] }
  0x14   : > { %v377_v34 = vmax.f32 %v313_v20, 0.0  ;;  %v378_v35 = vmax.f32 %v314_v21, 0.0  ;;  %v317_v36 = vadd.f32 %v629_v1, %v249_v23  ;;  %v379_v38 = vmax.f32 %v315_v22, 0.0  ;;  %v192_v56 = vld [vmem:[%s624_s20 + $0x90] sm:$0xff]  ;;  %v193_v59 = vld [vmem:[%s624_s20 + $0x98] sm:$0xff]  ;;  %v194_v63 = vld [vmem:[%s624_s20 + $0xa0] sm:$0xff] }
  0x15   : > { %439 = vst.msk [vmem:[%s652_s25] sm:$0xff] %vm438_vm0, %v374_v27  ;;  %v250_v39 = vmul.f32 %v619_v0, %v182_v24  ;;  %v251_v40 = vmul.f32 %v619_v0, %v183_v25  ;;  %v252_v41 = vmul.f32 %v619_v0, %v184_v26  ;;  %v380_v43 = vmax.f32 %v316_v30, 0.0  ;;  %v195_v6 = vld [vmem:[%s624_s20 + $0xa8] sm:$0xff]  ;;  %v196_v10 = vld [vmem:[%s624_s20 + $0xb0] sm:$0xff]  ;;  %v197_v14 = vld [vmem:[%s624_s20 + $0xb8] sm:$0xff] }
  0x16   : > { %440 = vst.msk [vmem:[%s652_s25 + $0x8] sm:$0xff] %vm438_vm0, %v375_v28  ;;  %v253_v44 = vmul.f32 %v619_v0, %v185_v31  ;;  %v254_v45 = vmul.f32 %v619_v0, %v186_v32  ;;  %v255_v46 = vmul.f32 %v619_v0, %v187_v33  ;;  %v256_v50 = vmul.f32 %v619_v0, %v188_v37  ;;  %v198_v18 = vld [vmem:[%s624_s20 + $0xc0] sm:$0xff]  ;;  %v199_v22 = vld [vmem:[%s624_s20 + $0xc8] sm:$0xff]  ;;  %v200_v26 = vld [vmem:[%s624_s20 + $0xd0] sm:$0xff] }
  0x17   : > { %441 = vst.msk [vmem:[%s652_s25 + $0x10] sm:$0xff] %vm438_vm0, %v376_v29  ;;  %v318_v47 = vadd.f32 %v629_v1, %v250_v39  ;;  %v319_v48 = vadd.f32 %v629_v1, %v251_v40  ;;  %v320_v49 = vadd.f32 %v629_v1, %v252_v41  ;;  %v381_v51 = vmax.f32 %v317_v36, 0.0  ;;  %v201_v30 = vld [vmem:[%s624_s20 + $0xd8] sm:$0xff] }
  0x18   : > { %442 = vst.msk [vmem:[%s652_s25 + $0x18] sm:$0xff] %vm438_vm0, %v377_v34  ;;  %v321_v52 = vadd.f32 %v629_v1, %v253_v44  ;;  %v257_v53 = vmul.f32 %v619_v0, %v189_v42  ;;  %v322_v58 = vadd.f32 %v629_v1, %v254_v45  ;;  %v323_v62 = vadd.f32 %v629_v1, %v255_v46  ;;  %v202_v34 = vld [vmem:[%s624_s20 + $0xe0] sm:$0xff]  ;;  %v204_v42 = vld [vmem:[%s624_s20 + $0xf0] sm:$0xff]  ;;  %v205_v46 = vld [vmem:[%s624_s20 + $0xf8] sm:$0xff] }
  0x19   : > { %443 = vst.msk [vmem:[%s652_s25 + $0x20] sm:$0xff] %vm438_vm0, %v378_v35  ;;  %v382_v57 = vmax.f32 %v318_v47, 0.0  ;;  %v383_v60 = vmax.f32 %v319_v48, 0.0  ;;  %v384_v61 = vmax.f32 %v320_v49, 0.0  ;;  %v324_v2 = vadd.f32 %v629_v1, %v256_v50  ;;  %v206_v50 = vld [vmem:[%s624_s20 + $0x100] sm:$0xff] }
  0x1a   : > { %444 = vst.msk [vmem:[%s652_s25 + $0x28] sm:$0xff] %vm438_vm0, %v379_v38  ;;  %v258_v3 = vmul.f32 %v619_v0, %v190_v54  ;;  %v259_v4 = vmul.f32 %v619_v0, %v191_v55  ;;  %v260_v5 = vmul.f32 %v619_v0, %v192_v56  ;;  %v385_v7 = vmax.f32 %v321_v52, 0.0  ;;  %v203_v38 = vld [vmem:[%s624_s20 + $0xe8] sm:$0xff] }
  0x1b   : > { %445 = vst.msk [vmem:[%s652_s25 + $0x30] sm:$0xff] %vm438_vm0, %v380_v43  ;;  %v325_v8 = vadd.f32 %v629_v1, %v257_v53  ;;  %v261_v9 = vmul.f32 %v619_v0, %v193_v59  ;;  %v386_v11 = vmax.f32 %v322_v58, 0.0  ;;  %v262_v13 = vmul.f32 %v619_v0, %v194_v63  ;;  %v207_v54 = vld [vmem:[%s624_s20 + $0x108] sm:$0xff]  ;;  %v208_v58 = vld [vmem:[%s624_s20 + $0x110] sm:$0xff] }
  0x1c   : > { %446 = vst.msk [vmem:[%s652_s25 + $0x38] sm:$0xff] %vm438_vm0, %v381_v51  ;;  %v326_v12 = vadd.f32 %v629_v1, %v258_v3  ;;  %v387_v15 = vmax.f32 %v323_v62, 0.0  ;;  %v327_v16 = vadd.f32 %v629_v1, %v259_v4  ;;  %v263_v17 = vmul.f32 %v619_v0, %v195_v6  ;;  %v209_v62 = vld [vmem:[%s624_s20 + $0x118] sm:$0xff]  ;;  %v210_v4 = vld [vmem:[%s624_s20 + $0x120] sm:$0xff] }
  0x1d   : > { %447 = vst.msk [vmem:[%s652_s25 + $0x40] sm:$0xff] %vm438_vm0, %v382_v57  ;;  %v388_v19 = vmax.f32 %v324_v2, 0.0  ;;  %v328_v20 = vadd.f32 %v629_v1, %v260_v5  ;;  %v264_v21 = vmul.f32 %v619_v0, %v196_v10  ;;  %v389_v23 = vmax.f32 %v325_v8, 0.0  ;;  %v211_v8 = vld [vmem:[%s624_s20 + $0x128] sm:$0xff] }
  0x1e   : > { %448 = vst.msk [vmem:[%s652_s25 + $0x48] sm:$0xff] %vm438_vm0, %v383_v60  ;;  %v329_v24 = vadd.f32 %v629_v1, %v261_v9  ;;  %v265_v25 = vmul.f32 %v619_v0, %v197_v14  ;;  %v390_v27 = vmax.f32 %v326_v12, 0.0  ;;  %v330_v28 = vadd.f32 %v629_v1, %v262_v13  ;;  %v212_v12 = vld [vmem:[%s624_s20 + $0x130] sm:$0xff] }
  0x1f   : > { %449 = vst.msk [vmem:[%s652_s25 + $0x50] sm:$0xff] %vm438_vm0, %v384_v61  ;;  %v266_v29 = vmul.f32 %v619_v0, %v198_v18  ;;  %v391_v31 = vmax.f32 %v327_v16, 0.0  ;;  %v331_v32 = vadd.f32 %v629_v1, %v263_v17  ;;  %v267_v33 = vmul.f32 %v619_v0, %v199_v22  ;;  %v213_v16 = vld [vmem:[%s624_s20 + $0x138] sm:$0xff] }
  0x20   : > { %450 = vst.msk [vmem:[%s652_s25 + $0x58] sm:$0xff] %vm438_vm0, %v385_v7  ;;  %v392_v35 = vmax.f32 %v328_v20, 0.0  ;;  %v332_v36 = vadd.f32 %v629_v1, %v264_v21  ;;  %v268_v37 = vmul.f32 %v619_v0, %v200_v26  ;;  %v393_v39 = vmax.f32 %v329_v24, 0.0  ;;  %v214_v20 = vld [vmem:[%s624_s20 + $0x140] sm:$0xff]  ;;  %v215_v24 = vld [vmem:[%s624_s20 + $0x148] sm:$0xff] }
  0x21   : > { %451 = vst.msk [vmem:[%s652_s25 + $0x60] sm:$0xff] %vm438_vm0, %v386_v11  ;;  %v333_v40 = vadd.f32 %v629_v1, %v265_v25  ;;  %v269_v41 = vmul.f32 %v619_v0, %v201_v30  ;;  %v394_v43 = vmax.f32 %v330_v28, 0.0  ;;  %v334_v44 = vadd.f32 %v629_v1, %v266_v29  ;;  %v216_v28 = vld [vmem:[%s624_s20 + $0x150] sm:$0xff] }
  0x22   : > { %452 = vst.msk [vmem:[%s652_s25 + $0x68] sm:$0xff] %vm438_vm0, %v387_v15  ;;  %v270_v45 = vmul.f32 %v619_v0, %v202_v34  ;;  %v395_v47 = vmax.f32 %v331_v32, 0.0  ;;  %v335_v48 = vadd.f32 %v629_v1, %v267_v33  ;;  %v271_v49 = vmul.f32 %v619_v0, %v203_v38  ;;  %v217_v32 = vld [vmem:[%s624_s20 + $0x158] sm:$0xff] }
  0x23   : > { %453 = vst.msk [vmem:[%s652_s25 + $0x70] sm:$0xff] %vm438_vm0, %v388_v19  ;;  %v396_v51 = vmax.f32 %v332_v36, 0.0  ;;  %v336_v52 = vadd.f32 %v629_v1, %v268_v37  ;;  %v272_v53 = vmul.f32 %v619_v0, %v204_v42  ;;  %v397_v55 = vmax.f32 %v333_v40, 0.0  ;;  %v218_v36 = vld [vmem:[%s624_s20 + $0x160] sm:$0xff]  ;;  %v219_v40 = vld [vmem:[%s624_s20 + $0x168] sm:$0xff] }
  0x24   : > { %454 = vst.msk [vmem:[%s652_s25 + $0x78] sm:$0xff] %vm438_vm0, %v389_v23  ;;  %v337_v56 = vadd.f32 %v629_v1, %v269_v41  ;;  %v273_v57 = vmul.f32 %v619_v0, %v205_v46  ;;  %v398_v59 = vmax.f32 %v334_v44, 0.0  ;;  %v338_v60 = vadd.f32 %v629_v1, %v270_v45  ;;  %v220_v44 = vld [vmem:[%s624_s20 + $0x170] sm:$0xff] }
  0x25   : > { %455 = vst.msk [vmem:[%s652_s25 + $0x80] sm:$0xff] %vm438_vm0, %v390_v27  ;;  %v274_v61 = vmul.f32 %v619_v0, %v206_v50  ;;  %v399_v63 = vmax.f32 %v335_v48, 0.0  ;;  %v339_v2 = vadd.f32 %v629_v1, %v271_v49  ;;  %v275_v3 = vmul.f32 %v619_v0, %v207_v54  ;;  %v221_v48 = vld [vmem:[%s624_s20 + $0x178] sm:$0xff] }
  0x26   : > { %456 = vst.msk [vmem:[%s652_s25 + $0x88] sm:$0xff] %vm438_vm0, %v391_v31  ;;  %v400_v5 = vmax.f32 %v336_v52, 0.0  ;;  %v340_v6 = vadd.f32 %v629_v1, %v272_v53  ;;  %v276_v7 = vmul.f32 %v619_v0, %v208_v58  ;;  %v401_v9 = vmax.f32 %v337_v56, 0.0  ;;  %v222_v52 = vld [vmem:[%s624_s20 + $0x180] sm:$0xff]  ;;  %v223_v56 = vld [vmem:[%s624_s20 + $0x188] sm:$0xff] }
  0x27   : > { %457 = vst.msk [vmem:[%s652_s25 + $0x90] sm:$0xff] %vm438_vm0, %v392_v35  ;;  %v341_v10 = vadd.f32 %v629_v1, %v273_v57  ;;  %v277_v11 = vmul.f32 %v619_v0, %v209_v62  ;;  %v402_v13 = vmax.f32 %v338_v60, 0.0  ;;  %v342_v14 = vadd.f32 %v629_v1, %v274_v61  ;;  %v224_v60 = vld [vmem:[%s624_s20 + $0x190] sm:$0xff] }
  0x28   : > { %458 = vst.msk [vmem:[%s652_s25 + $0x98] sm:$0xff] %vm438_vm0, %v393_v39  ;;  %v278_v15 = vmul.f32 %v619_v0, %v210_v4  ;;  %v403_v17 = vmax.f32 %v339_v2, 0.0  ;;  %v343_v18 = vadd.f32 %v629_v1, %v275_v3  ;;  %v279_v19 = vmul.f32 %v619_v0, %v211_v8  ;;  %v225_v2 = vld [vmem:[%s624_s20 + $0x198] sm:$0xff] }
  0x29   : > { %459 = vst.msk [vmem:[%s652_s25 + $0xa0] sm:$0xff] %vm438_vm0, %v394_v43  ;;  %v404_v21 = vmax.f32 %v340_v6, 0.0  ;;  %v344_v22 = vadd.f32 %v629_v1, %v276_v7  ;;  %v280_v23 = vmul.f32 %v619_v0, %v212_v12  ;;  %v405_v25 = vmax.f32 %v341_v10, 0.0  ;;  %v237_v3 = vld [vmem:[%s624_s20 + $0x1f8] sm:$0xff]  ;;  %v226_v7 = vld [vmem:[%s624_s20 + $0x1a0] sm:$0xff] }
  0x2a   : > { %460 = vst.msk [vmem:[%s652_s25 + $0xa8] sm:$0xff] %vm438_vm0, %v395_v47  ;;  %v345_v26 = vadd.f32 %v629_v1, %v277_v11  ;;  %v281_v27 = vmul.f32 %v619_v0, %v213_v16  ;;  %v406_v29 = vmax.f32 %v342_v14, 0.0  ;;  %v346_v30 = vadd.f32 %v629_v1, %v278_v15  ;;  %v227_v11 = vld [vmem:[%s624_s20 + $0x1a8] sm:$0xff]  ;;  %v228_v15 = vld [vmem:[%s624_s20 + $0x1b0] sm:$0xff] }
  0x2b   : > { %461 = vst.msk [vmem:[%s652_s25 + $0xb0] sm:$0xff] %vm438_vm0, %v396_v51  ;;  %v282_v31 = vmul.f32 %v619_v0, %v214_v20  ;;  %v407_v33 = vmax.f32 %v343_v18, 0.0  ;;  %v347_v34 = vadd.f32 %v629_v1, %v279_v19  ;;  %v283_v35 = vmul.f32 %v619_v0, %v215_v24  ;;  %v229_v20 = vld [vmem:[%s624_s20 + $0x1b8] sm:$0xff]  ;;  %v230_v24 = vld [vmem:[%s624_s20 + $0x1c0] sm:$0xff] }
  0x2c   : > { %462 = vst.msk [vmem:[%s652_s25 + $0xb8] sm:$0xff] %vm438_vm0, %v397_v55  ;;  %v408_v37 = vmax.f32 %v344_v22, 0.0  ;;  %v348_v38 = vadd.f32 %v629_v1, %v280_v23  ;;  %v284_v39 = vmul.f32 %v619_v0, %v216_v28  ;;  %v409_v41 = vmax.f32 %v345_v26, 0.0 }
  0x2d   : > { %463 = vst.msk [vmem:[%s652_s25 + $0xc0] sm:$0xff] %vm438_vm0, %v398_v59  ;;  %v349_v42 = vadd.f32 %v629_v1, %v281_v27  ;;  %v285_v43 = vmul.f32 %v619_v0, %v217_v32  ;;  %v410_v45 = vmax.f32 %v346_v30, 0.0  ;;  %v350_v46 = vadd.f32 %v629_v1, %v282_v31 }
  0x2e   : > { %464 = vst.msk [vmem:[%s652_s25 + $0xc8] sm:$0xff] %vm438_vm0, %v399_v63  ;;  %v286_v47 = vmul.f32 %v619_v0, %v218_v36  ;;  %v411_v49 = vmax.f32 %v347_v34, 0.0  ;;  %v351_v50 = vadd.f32 %v629_v1, %v283_v35  ;;  %v287_v51 = vmul.f32 %v619_v0, %v219_v40 }
  0x2f   : > { %465 = vst.msk [vmem:[%s652_s25 + $0xd0] sm:$0xff] %vm438_vm0, %v400_v5  ;;  %v412_v53 = vmax.f32 %v348_v38, 0.0  ;;  %v352_v54 = vadd.f32 %v629_v1, %v284_v39  ;;  %v288_v55 = vmul.f32 %v619_v0, %v220_v44  ;;  %v413_v57 = vmax.f32 %v349_v42, 0.0 }
  0x30   : > { %466 = vst.msk [vmem:[%s652_s25 + $0xd8] sm:$0xff] %vm438_vm0, %v401_v9  ;;  %v353_v58 = vadd.f32 %v629_v1, %v285_v43  ;;  %v289_v59 = vmul.f32 %v619_v0, %v221_v48  ;;  %v414_v61 = vmax.f32 %v350_v46, 0.0  ;;  %v354_v62 = vadd.f32 %v629_v1, %v286_v47 }
  0x31   : > { %467 = vst.msk [vmem:[%s652_s25 + $0xe0] sm:$0xff] %vm438_vm0, %v402_v13  ;;  %v290_v63 = vmul.f32 %v619_v0, %v222_v52  ;;  %v415_v4 = vmax.f32 %v351_v50, 0.0  ;;  %v355_v5 = vadd.f32 %v629_v1, %v287_v51  ;;  %v291_v6 = vmul.f32 %v619_v0, %v223_v56 }
  0x32   : > { %468 = vst.msk [vmem:[%s652_s25 + $0xe8] sm:$0xff] %vm438_vm0, %v403_v17  ;;  %v416_v8 = vmax.f32 %v352_v54, 0.0  ;;  %v356_v9 = vadd.f32 %v629_v1, %v288_v55  ;;  %v292_v10 = vmul.f32 %v619_v0, %v224_v60  ;;  %v417_v12 = vmax.f32 %v353_v58, 0.0 }
  0x33   : > { %469 = vst.msk [vmem:[%s652_s25 + $0xf0] sm:$0xff] %vm438_vm0, %v404_v21  ;;  %v357_v13 = vadd.f32 %v629_v1, %v289_v59  ;;  %v293_v14 = vmul.f32 %v619_v0, %v225_v2  ;;  %v305_v16 = vmul.f32 %v619_v0, %v237_v3  ;;  %v418_v17 = vmax.f32 %v354_v62, 0.0 }
  0x34   : > { %470 = vst.msk [vmem:[%s652_s25 + $0xf8] sm:$0xff] %vm438_vm0, %v405_v25  ;;  %v358_v18 = vadd.f32 %v629_v1, %v290_v63  ;;  %v294_v19 = vmul.f32 %v619_v0, %v226_v7  ;;  %v419_v21 = vmax.f32 %v355_v5, 0.0  ;;  %v359_v22 = vadd.f32 %v629_v1, %v291_v6 }
  0x35   : > { %471 = vst.msk [vmem:[%s652_s25 + $0x100] sm:$0xff] %vm438_vm0, %v406_v29  ;;  %v295_v23 = vmul.f32 %v619_v0, %v227_v11  ;;  %v884_v25 = vadd.f32 %v629_v1, %v305_v16  ;;  %v420_v26 = vmax.f32 %v356_v9, 0.0  ;;  %v360_v27 = vadd.f32 %v629_v1, %v292_v10  ;;  %v231_v29 = vld [vmem:[%s624_s20 + $0x1c8] sm:$0xff] }
  0x36   : > { %472 = vst.msk [vmem:[%s652_s25 + $0x108] sm:$0xff] %vm438_vm0, %v407_v33  ;;  %v296_v28 = vmul.f32 %v619_v0, %v228_v15  ;;  %v421_v30 = vmax.f32 %v357_v13, 0.0  ;;  %v361_v31 = vadd.f32 %v629_v1, %v293_v14  ;;  %v297_v32 = vmul.f32 %v619_v0, %v229_v20  ;;  %v232_v33 = vld [vmem:[%s624_s20 + $0x1d0] sm:$0xff] }
  0x37   : > { %473 = vst.msk [vmem:[%s652_s25 + $0x110] sm:$0xff] %vm438_vm0, %v408_v37  ;;  %v422_v34 = vmax.f32 %v358_v18, 0.0  ;;  %v362_v35 = vadd.f32 %v629_v1, %v294_v19  ;;  %v298_v36 = vmul.f32 %v619_v0, %v230_v24  ;;  %v233_v37 = vld [vmem:[%s624_s20 + $0x1d8] sm:$0xff]  ;;  %v423_v38 = vmax.f32 %v359_v22, 0.0 }
  0x38   : > { %474 = vst.msk [vmem:[%s652_s25 + $0x118] sm:$0xff] %vm438_vm0, %v409_v41  ;;  %v363_v39 = vadd.f32 %v629_v1, %v295_v23  ;;  %v299_v40 = vmul.f32 %v619_v0, %v231_v29  ;;  %v234_v41 = vld [vmem:[%s624_s20 + $0x1e0] sm:$0xff]  ;;  %v424_v42 = vmax.f32 %v360_v27, 0.0  ;;  %v364_v43 = vadd.f32 %v629_v1, %v296_v28 }
  0x39   : > { %475 = vst.msk [vmem:[%s652_s25 + $0x120] sm:$0xff] %vm438_vm0, %v410_v45  ;;  %v300_v44 = vmul.f32 %v619_v0, %v232_v33  ;;  %v235_v45 = vld [vmem:[%s624_s20 + $0x1e8] sm:$0xff]  ;;  %v425_v46 = vmax.f32 %v361_v31, 0.0  ;;  %v365_v47 = vadd.f32 %v629_v1, %v297_v32  ;;  %v301_v48 = vmul.f32 %v619_v0, %v233_v37 }
  0x3a   : > { %476 = vst.msk [vmem:[%s652_s25 + $0x128] sm:$0xff] %vm438_vm0, %v411_v49  ;;  %v236_v49 = vld [vmem:[%s624_s20 + $0x1f0] sm:$0xff]  ;;  %v426_v50 = vmax.f32 %v362_v35, 0.0  ;;  %v366_v51 = vadd.f32 %v629_v1, %v298_v36  ;;  %v302_v52 = vmul.f32 %v619_v0, %v234_v41  ;;  %v367_v54 = vadd.f32 %v629_v1, %v299_v40 }
  0x3b   : > { %477 = vst.msk [vmem:[%s652_s25 + $0x130] sm:$0xff] %vm438_vm0, %v412_v53  ;;  %v427_v53 = vmax.f32 %v363_v39, 0.0  ;;  %v303_v55 = vmul.f32 %v619_v0, %v235_v45  ;;  %v428_v56 = vmax.f32 %v364_v43, 0.0  ;;  %v304_v58 = vmul.f32 %v619_v0, %v236_v49 }
  0x3c   : > { %478 = vst.msk [vmem:[%s652_s25 + $0x138] sm:$0xff] %vm438_vm0, %v413_v57  ;;  %v368_v57 = vadd.f32 %v629_v1, %v300_v44  ;;  %v429_v59 = vmax.f32 %v365_v47, 0.0  ;;  %v369_v60 = vadd.f32 %v629_v1, %v301_v48  ;;  %v370_v62 = vadd.f32 %v629_v1, %v302_v52 }
  0x3d   : > { %479 = vst.msk [vmem:[%s652_s25 + $0x140] sm:$0xff] %vm438_vm0, %v414_v61  ;;  %v430_v61 = vmax.f32 %v366_v51, 0.0  ;;  %v431_v63 = vmax.f32 %v367_v54, 0.0  ;;  %v371_v0 = vadd.f32 %v629_v1, %v303_v55  ;;  %v372_v3 = vadd.f32 %v629_v1, %v304_v58 }
  0x3e   : > { %480 = vst.msk [vmem:[%s652_s25 + $0x148] sm:$0xff] %vm438_vm0, %v415_v4  ;;  %v432_v2 = vmax.f32 %v368_v57, 0.0  ;;  %v433_v4 = vmax.f32 %v369_v60, 0.0  ;;  %v434_v5 = vmax.f32 %v370_v62, 0.0 }
  0x3f   : > { %481 = vst.msk [vmem:[%s652_s25 + $0x150] sm:$0xff] %vm438_vm0, %v416_v8  ;;  %v435_v6 = vmax.f32 %v371_v0, 0.0  ;;  %v436_v7 = vmax.f32 %v372_v3, 0.0  ;;  %v437_v8 = vmax.f32 %v884_v25, 0.0 }
  0x40   : > { %482 = vst.msk [vmem:[%s652_s25 + $0x158] sm:$0xff] %vm438_vm0, %v417_v12 }
  0x41   : > { %483 = vst.msk [vmem:[%s652_s25 + $0x160] sm:$0xff] %vm438_vm0, %v418_v17 }
  0x42   : > { %484 = vst.msk [vmem:[%s652_s25 + $0x168] sm:$0xff] %vm438_vm0, %v419_v21 }
  0x43   : > { %485 = vst.msk [vmem:[%s652_s25 + $0x170] sm:$0xff] %vm438_vm0, %v420_v26 }
  0x44   : > { %486 = vst.msk [vmem:[%s652_s25 + $0x178] sm:$0xff] %vm438_vm0, %v421_v30 }
  0x45   : > { %487 = vst.msk [vmem:[%s652_s25 + $0x180] sm:$0xff] %vm438_vm0, %v422_v34 }
  0x46   : > { %488 = vst.msk [vmem:[%s652_s25 + $0x188] sm:$0xff] %vm438_vm0, %v423_v38 }
  0x47   : > { %489 = vst.msk [vmem:[%s652_s25 + $0x190] sm:$0xff] %vm438_vm0, %v424_v42 }
  0x48   : > { %490 = vst.msk [vmem:[%s652_s25 + $0x198] sm:$0xff] %vm438_vm0, %v425_v46 }
  0x49   : > { %491 = vst.msk [vmem:[%s652_s25 + $0x1a0] sm:$0xff] %vm438_vm0, %v426_v50 }
  0x4a   : > { %492 = vst.msk [vmem:[%s652_s25 + $0x1a8] sm:$0xff] %vm438_vm0, %v427_v53 }
  0x4b   : > { %493 = vst.msk [vmem:[%s652_s25 + $0x1b0] sm:$0xff] %vm438_vm0, %v428_v56 }
  0x4c   : > { %494 = vst.msk [vmem:[%s652_s25 + $0x1b8] sm:$0xff] %vm438_vm0, %v429_v59 }
  0x4d   : > { %495 = vst.msk [vmem:[%s652_s25 + $0x1c0] sm:$0xff] %vm438_vm0, %v430_v61 }
  0x4e   : > { %496 = vst.msk [vmem:[%s652_s25 + $0x1c8] sm:$0xff] %vm438_vm0, %v431_v63 }
  0x4f   : > { %497 = vst.msk [vmem:[%s652_s25 + $0x1d0] sm:$0xff] %vm438_vm0, %v432_v2 }
  0x50   : > { %498 = vst.msk [vmem:[%s652_s25 + $0x1d8] sm:$0xff] %vm438_vm0, %v433_v4 }
  0x51   : > { %499 = vst.msk [vmem:[%s652_s25 + $0x1e0] sm:$0xff] %vm438_vm0, %v434_v5 }
  0x52   : > { %500 = vst.msk [vmem:[%s652_s25 + $0x1e8] sm:$0xff] %vm438_vm0, %v435_v6 }
  0x53   : > { %501 = vst.msk [vmem:[%s652_s25 + $0x1f0] sm:$0xff] %vm438_vm0, %v436_v7 }
  0x54   : > { %502 = vst.msk [vmem:[%s652_s25 + $0x1f8] sm:$0xff] %vm438_vm0, %v437_v8 }
  0x55 PF: > { %s13_s12 = sadd.s32 1, %s586_s12  }
  0x56   : > { %p10_p4 = scmp.ge.s32.totalorder %s13_s12, 4  }
  0x58   :  { %12 = sbr.rel (!%p10_p4) target bundleno = 1 (0x1), region = 62 }

// kernel: basic_block_forward.7
= control target key start
LH: loop header
LB: loop body
LE: loop exit
PB: predicated region body
PF: predicated region fallthrough
CT: control target
= control target key end

     0   :  { %s804_s15 = smov 0   ;;  %s1229_s0 = inlined_call_operand.vmem [shape: f32[1024,8], index: 0, kind: input, shape index: {}]   ;;  %s1230_s1 = inlined_call_operand.vmem [shape: f32[1024,8], index: 1, kind: input, shape index: {}]   ;;  %s1231_s2 = inlined_call_operand.vmem [shape: f32[1,8], index: 2, kind: input, shape index: {}]   ;;  %s1232_s3 = inlined_call_operand.vmem [shape: f32[1,8], index: 3, kind: input, shape index: {}]   ;;  %s1233_s4 = inlined_call_operand.vmem [shape: f32[1024,8], index: 4, kind: output, shape index: {}]  }
   0x1 LB: > { %s748_s16 = sadd.s32 4294967295, %s777_s15   ;;  %p752_p0 = scmp.ge.s32.totalorder %s777_s15, 1  ;;  %s777_s15 = sphi %s804_s15, %s14_s15  }
   0x2   : > { %p174_p1 = scmp.lt.s32.totalorder %s777_s15, 3 }
   0x4   : > { %p175_p2 = pnand %p752_p0, %p174_p1 }
   0x5   : > { %s753_s17 = sshll.u32 (!%p175_p2), %s748_s16, 6 }
   0x6   : > { %178 = sbr.rel (%p175_p2) target bundleno = 87 (0x57), region = 36  ;;  %p206_p3 = scmp.lt.s32.totalorder (!%p175_p2), %s753_s17, 127 }
   0xb   : > { %s1235_s17 = smov (!%p206_p3, %s753_s17), 127  ;;  %v815_v0 = vld [vmem:[%s1231_s2] ss:$0 sm:$0xff]  ;;  %vm615_vm0 = vcmask 64512  }
   0xc   : > { %s817_s20 = sshll.u32 %s1235_s17, 3  ;;  %v834_v1 = vld [vmem:[%s1232_s3] ss:$0 sm:$0xff] }
   0xd   : > { %s823_s23 = scalar_lea.vmem %s1229_s0, %s817_s20  ;;  %s829_s26 = scalar_lea.vmem %s1230_s1, %s817_s20 }
   0xe   : > { %v223_v2 = vld [vmem:[%s823_s23] sm:$0xff]  ;;  %v224_v3 = vld [vmem:[%s823_s23 + $0x8] sm:$0xff]  ;;  %v225_v7 = vld [vmem:[%s823_s23 + $0x10] sm:$0xff]  ;;  %s865_s5 = scalar_lea.vmem %s1233_s4, %s817_s20 }
   0xf   : > { %v291_v4 = vmul.f32 %v815_v0, %v223_v2  ;;  %v423_v5 = vld [vmem:[%s829_s26] sm:$0xff]  ;;  %v292_v6 = vmul.f32 %v815_v0, %v224_v3  ;;  %v424_v8 = vld [vmem:[%s829_s26 + $0x8] sm:$0xff]  ;;  %v293_v9 = vmul.f32 %v815_v0, %v225_v7  ;;  %v226_v10 = vld [vmem:[%s823_s23 + $0x18] sm:$0xff] }
  0x10   : > { %v227_v11 = vld [vmem:[%s823_s23 + $0x20] sm:$0xff]  ;;  %v425_v14 = vld [vmem:[%s829_s26 + $0x10] sm:$0xff]  ;;  %v294_v15 = vmul.f32 %v815_v0, %v226_v10  ;;  %v426_v16 = vld [vmem:[%s829_s26 + $0x18] sm:$0xff] }
  0x11   : > { %v359_v12 = vadd.f32 %v834_v1, %v291_v4  ;;  %v360_v13 = vadd.f32 %v834_v1, %v292_v6  ;;  %v295_v17 = vmul.f32 %v815_v0, %v227_v11  ;;  %v228_v18 = vld [vmem:[%s823_s23 + $0x28] sm:$0xff]  ;;  %v361_v19 = vadd.f32 %v834_v1, %v293_v9  ;;  %v427_v20 = vld [vmem:[%s829_s26 + $0x20] sm:$0xff]  ;;  %v229_v22 = vld [vmem:[%s823_s23 + $0x30] sm:$0xff] }
  0x12   : > { %v296_v21 = vmul.f32 %v815_v0, %v228_v18  ;;  %v230_v23 = vld [vmem:[%s823_s23 + $0x38] sm:$0xff]  ;;  %v362_v26 = vadd.f32 %v834_v1, %v294_v15  ;;  %v428_v28 = vld [vmem:[%s829_s26 + $0x28] sm:$0xff]  ;;  %v297_v31 = vmul.f32 %v815_v0, %v229_v22  ;;  %v231_v33 = vld [vmem:[%s823_s23 + $0x40] sm:$0xff] }
  0x13   : > { %v487_v24 = vadd.f32 %v423_v5, %v359_v12  ;;  %v488_v25 = vadd.f32 %v424_v8, %v360_v13  ;;  %v363_v27 = vadd.f32 %v834_v1, %v295_v17  ;;  %v489_v29 = vadd.f32 %v425_v14, %v361_v19  ;;  %v232_v34 = vld [vmem:[%s823_s23 + $0x48] sm:$0xff]  ;;  %v429_v39 = vld [vmem:[%s829_s26 + $0x30] sm:$0xff]  ;;  %v430_v40 = vld [vmem:[%s829_s26 + $0x38] sm:$0xff] }
  0x14   : > { %v364_v30 = vadd.f32 %v834_v1, %v296_v21  ;;  %v298_v32 = vmul.f32 %v815_v0, %v230_v23  ;;  %v490_v37 = vadd.f32 %v426_v16, %v362_v26  ;;  %v233_v41 = vld [vmem:[%s823_s23 + $0x50] sm:$0xff]  ;;  %v365_v44 = vadd.f32 %v834_v1, %v297_v31  ;;  %v234_v46 = vld [vmem:[%s823_s23 + $0x58] sm:$0xff]  ;;  %v235_v47 = vld [vmem:[%s823_s23 + $0x60] sm:$0xff] }
  0x15   : > { %v551_v35 = vmax.f32 %v487_v24, 0.0  ;;  %v552_v36 = vmax.f32 %v488_v25, 0.0  ;;  %v491_v38 = vadd.f32 %v427_v20, %v363_v27  ;;  %v553_v42 = vmax.f32 %v489_v29, 0.0  ;;  %v236_v52 = vld [vmem:[%s823_s23 + $0x68] sm:$0xff]  ;;  %v431_v56 = vld [vmem:[%s829_s26 + $0x40] sm:$0xff]  ;;  %v433_v61 = vld [vmem:[%s829_s26 + $0x50] sm:$0xff] }
  0x16   : > { %v492_v43 = vadd.f32 %v428_v28, %v364_v30  ;;  %v366_v45 = vadd.f32 %v834_v1, %v298_v32  ;;  %v554_v48 = vmax.f32 %v490_v37, 0.0  ;;  %v299_v50 = vmul.f32 %v815_v0, %v231_v33  ;;  %v432_v57 = vld [vmem:[%s829_s26 + $0x48] sm:$0xff]  ;;  %v237_v2 = vld [vmem:[%s823_s23 + $0x70] sm:$0xff]  ;;  %v238_v3 = vld [vmem:[%s823_s23 + $0x78] sm:$0xff] }
  0x17   : > { %616 = vst.msk [vmem:[%s865_s5] sm:$0xff] %vm615_vm0, %v551_v35  ;;  %v555_v49 = vmax.f32 %v491_v38, 0.0  ;;  %v300_v51 = vmul.f32 %v815_v0, %v232_v34  ;;  %v493_v54 = vadd.f32 %v429_v39, %v365_v44  ;;  %v301_v58 = vmul.f32 %v815_v0, %v233_v41  ;;  %v434_v7 = vld [vmem:[%s829_s26 + $0x58] sm:$0xff]  ;;  %v435_v8 = vld [vmem:[%s829_s26 + $0x60] sm:$0xff]  ;;  %v436_v14 = vld [vmem:[%s829_s26 + $0x68] sm:$0xff] }
  0x18   : > { %617 = vst.msk [vmem:[%s865_s5 + $0x8] sm:$0xff] %vm615_vm0, %v552_v36  ;;  %v556_v53 = vmax.f32 %v492_v43, 0.0  ;;  %v494_v55 = vadd.f32 %v430_v40, %v366_v45  ;;  %v367_v59 = vadd.f32 %v834_v1, %v299_v50  ;;  %v302_v62 = vmul.f32 %v815_v0, %v234_v46  ;;  %v239_v19 = vld [vmem:[%s823_s23 + $0x80] sm:$0xff]  ;;  %v240_v20 = vld [vmem:[%s823_s23 + $0x88] sm:$0xff]  ;;  %v437_v25 = vld [vmem:[%s829_s26 + $0x70] sm:$0xff] }
  0x19   : > { %618 = vst.msk [vmem:[%s865_s5 + $0x10] sm:$0xff] %vm615_vm0, %v553_v42  ;;  %v368_v60 = vadd.f32 %v834_v1, %v300_v51  ;;  %v303_v63 = vmul.f32 %v815_v0, %v235_v47  ;;  %v557_v4 = vmax.f32 %v493_v54, 0.0  ;;  %v369_v6 = vadd.f32 %v834_v1, %v301_v58  ;;  %v438_v26 = vld [vmem:[%s829_s26 + $0x78] sm:$0xff]  ;;  %v241_v27 = vld [vmem:[%s823_s23 + $0x90] sm:$0xff]  ;;  %v243_v33 = vld [vmem:[%s823_s23 + $0xa0] sm:$0xff] }
  0x1a   : > { %619 = vst.msk [vmem:[%s865_s5 + $0x18] sm:$0xff] %vm615_vm0, %v554_v48  ;;  %v558_v5 = vmax.f32 %v494_v55, 0.0  ;;  %v304_v9 = vmul.f32 %v815_v0, %v236_v52  ;;  %v495_v10 = vadd.f32 %v431_v56, %v367_v59  ;;  %v370_v12 = vadd.f32 %v834_v1, %v302_v62  ;;  %v242_v32 = vld [vmem:[%s823_s23 + $0x98] sm:$0xff]  ;;  %v244_v38 = vld [vmem:[%s823_s23 + $0xa8] sm:$0xff]  ;;  %v439_v42 = vld [vmem:[%s829_s26 + $0x80] sm:$0xff] }
  0x1b   : > { %620 = vst.msk [vmem:[%s865_s5 + $0x20] sm:$0xff] %vm615_vm0, %v555_v49  ;;  %v496_v11 = vadd.f32 %v432_v57, %v368_v60  ;;  %v371_v13 = vadd.f32 %v834_v1, %v303_v63  ;;  %v497_v15 = vadd.f32 %v433_v61, %v369_v6  ;;  %v305_v17 = vmul.f32 %v815_v0, %v237_v2  ;;  %v440_v43 = vld [vmem:[%s829_s26 + $0x88] sm:$0xff]  ;;  %v441_v47 = vld [vmem:[%s829_s26 + $0x90] sm:$0xff]  ;;  %v246_v51 = vld [vmem:[%s823_s23 + $0xb8] sm:$0xff] }
  0x1c   : > { %621 = vst.msk [vmem:[%s865_s5 + $0x28] sm:$0xff] %vm615_vm0, %v556_v53  ;;  %v372_v16 = vadd.f32 %v834_v1, %v304_v9  ;;  %v306_v18 = vmul.f32 %v815_v0, %v238_v3  ;;  %v559_v21 = vmax.f32 %v495_v10, 0.0  ;;  %v498_v23 = vadd.f32 %v434_v7, %v370_v12  ;;  %v245_v50 = vld [vmem:[%s823_s23 + $0xb0] sm:$0xff]  ;;  %v442_v55 = vld [vmem:[%s829_s26 + $0x98] sm:$0xff]  ;;  %v443_v56 = vld [vmem:[%s829_s26 + $0xa0] sm:$0xff] }
  0x1d   : > { %622 = vst.msk [vmem:[%s865_s5 + $0x30] sm:$0xff] %vm615_vm0, %v557_v4  ;;  %v560_v22 = vmax.f32 %v496_v11, 0.0  ;;  %v499_v24 = vadd.f32 %v435_v8, %v371_v13  ;;  %v561_v28 = vmax.f32 %v497_v15, 0.0  ;;  %v373_v30 = vadd.f32 %v834_v1, %v305_v17  ;;  %v444_v62 = vld [vmem:[%s829_s26 + $0xa8] sm:$0xff]  ;;  %v445_v11 = vld [vmem:[%s829_s26 + $0xb0] sm:$0xff]  ;;  %v446_v12 = vld [vmem:[%s829_s26 + $0xb8] sm:$0xff] }
  0x1e   : > { %623 = vst.msk [vmem:[%s865_s5 + $0x38] sm:$0xff] %vm615_vm0, %v558_v5  ;;  %v500_v29 = vadd.f32 %v436_v14, %v372_v16  ;;  %v374_v31 = vadd.f32 %v834_v1, %v306_v18  ;;  %v562_v34 = vmax.f32 %v498_v23, 0.0  ;;  %v307_v36 = vmul.f32 %v815_v0, %v239_v19  ;;  %v247_v5 = vld [vmem:[%s823_s23 + $0xc0] sm:$0xff]  ;;  %v248_v6 = vld [vmem:[%s823_s23 + $0xc8] sm:$0xff]  ;;  %v249_v13 = vld [vmem:[%s823_s23 + $0xd0] sm:$0xff] }
  0x1f   : > { %624 = vst.msk [vmem:[%s865_s5 + $0x40] sm:$0xff] %vm615_vm0, %v559_v21  ;;  %v563_v35 = vmax.f32 %v499_v24, 0.0  ;;  %v308_v37 = vmul.f32 %v815_v0, %v240_v20  ;;  %v501_v40 = vadd.f32 %v437_v25, %v373_v30  ;;  %v309_v44 = vmul.f32 %v815_v0, %v241_v27  ;;  %v250_v18 = vld [vmem:[%s823_s23 + $0xd8] sm:$0xff]  ;;  %v251_v19 = vld [vmem:[%s823_s23 + $0xe0] sm:$0xff]  ;;  %v252_v24 = vld [vmem:[%s823_s23 + $0xe8] sm:$0xff] }
  0x20   : > { %625 = vst.msk [vmem:[%s865_s5 + $0x48] sm:$0xff] %vm615_vm0, %v560_v22  ;;  %v564_v39 = vmax.f32 %v500_v29, 0.0  ;;  %v502_v41 = vadd.f32 %v438_v26, %v374_v31  ;;  %v375_v45 = vadd.f32 %v834_v1, %v307_v36  ;;  %v310_v48 = vmul.f32 %v815_v0, %v242_v32  ;;  %v448_v29 = vld [vmem:[%s829_s26 + $0xc8] sm:$0xff]  ;;  %v253_v36 = vld [vmem:[%s823_s23 + $0xf0] sm:$0xff] }
  0x21   : > { %626 = vst.msk [vmem:[%s865_s5 + $0x50] sm:$0xff] %vm615_vm0, %v561_v28  ;;  %v376_v46 = vadd.f32 %v834_v1, %v308_v37  ;;  %v311_v49 = vmul.f32 %v815_v0, %v243_v33  ;;  %v565_v52 = vmax.f32 %v501_v40, 0.0  ;;  %v377_v54 = vadd.f32 %v834_v1, %v309_v44  ;;  %v447_v28 = vld [vmem:[%s829_s26 + $0xc0] sm:$0xff]  ;;  %v449_v33 = vld [vmem:[%s829_s26 + $0xd0] sm:$0xff]  ;;  %v254_v37 = vld [vmem:[%s823_s23 + $0xf8] sm:$0xff] }
  0x22   : > { %627 = vst.msk [vmem:[%s865_s5 + $0x58] sm:$0xff] %vm615_vm0, %v562_v34  ;;  %v566_v53 = vmax.f32 %v502_v41, 0.0  ;;  %v312_v57 = vmul.f32 %v815_v0, %v244_v38  ;;  %v503_v58 = vadd.f32 %v439_v42, %v375_v45  ;;  %v378_v60 = vadd.f32 %v834_v1, %v310_v48  ;;  %v450_v41 = vld [vmem:[%s829_s26 + $0xd8] sm:$0xff]  ;;  %v451_v42 = vld [vmem:[%s829_s26 + $0xe0] sm:$0xff]  ;;  %v452_v48 = vld [vmem:[%s829_s26 + $0xe8] sm:$0xff] }
  0x23   : > { %628 = vst.msk [vmem:[%s865_s5 + $0x60] sm:$0xff] %vm615_vm0, %v563_v35  ;;  %v504_v59 = vadd.f32 %v440_v43, %v376_v46  ;;  %v379_v61 = vadd.f32 %v834_v1, %v311_v49  ;;  %v505_v63 = vadd.f32 %v441_v47, %v377_v54  ;;  %v313_v3 = vmul.f32 %v815_v0, %v245_v50  ;;  %v256_v54 = vld [vmem:[%s823_s23 + $0x108] sm:$0xff] }
  0x24   : > { %629 = vst.msk [vmem:[%s865_s5 + $0x68] sm:$0xff] %vm615_vm0, %v564_v39  ;;  %v380_v2 = vadd.f32 %v834_v1, %v312_v57  ;;  %v314_v4 = vmul.f32 %v815_v0, %v246_v51  ;;  %v567_v7 = vmax.f32 %v503_v58, 0.0  ;;  %v506_v9 = vadd.f32 %v442_v55, %v378_v60  ;;  %v454_v60 = vld [vmem:[%s829_s26 + $0xf8] sm:$0xff] }
  0x25   : > { %630 = vst.msk [vmem:[%s865_s5 + $0x70] sm:$0xff] %vm615_vm0, %v565_v52  ;;  %v568_v8 = vmax.f32 %v504_v59, 0.0  ;;  %v507_v10 = vadd.f32 %v443_v56, %v379_v61  ;;  %v569_v14 = vmax.f32 %v505_v63, 0.0  ;;  %v381_v16 = vadd.f32 %v834_v1, %v313_v3  ;;  %v453_v59 = vld [vmem:[%s829_s26 + $0xf0] sm:$0xff] }
  0x26   : > { %631 = vst.msk [vmem:[%s865_s5 + $0x78] sm:$0xff] %vm615_vm0, %v566_v53  ;;  %v508_v15 = vadd.f32 %v444_v62, %v380_v2  ;;  %v382_v17 = vadd.f32 %v834_v1, %v314_v4  ;;  %v570_v20 = vmax.f32 %v506_v9, 0.0  ;;  %v315_v22 = vmul.f32 %v815_v0, %v247_v5  ;;  %v255_v53 = vld [vmem:[%s823_s23 + $0x100] sm:$0xff]  ;;  %v257_v61 = vld [vmem:[%s823_s23 + $0x110] sm:$0xff]  ;;  %v258_v4 = vld [vmem:[%s823_s23 + $0x118] sm:$0xff] }
  0x27   : > { %632 = vst.msk [vmem:[%s865_s5 + $0x80] sm:$0xff] %vm615_vm0, %v567_v7  ;;  %v571_v21 = vmax.f32 %v507_v10, 0.0  ;;  %v316_v23 = vmul.f32 %v815_v0, %v248_v6  ;;  %v509_v26 = vadd.f32 %v445_v11, %v381_v16  ;;  %v317_v30 = vmul.f32 %v815_v0, %v249_v13  ;;  %v259_v5 = vld [vmem:[%s823_s23 + $0x120] sm:$0xff]  ;;  %v260_v10 = vld [vmem:[%s823_s23 + $0x128] sm:$0xff] }
  0x28   : > { %633 = vst.msk [vmem:[%s865_s5 + $0x88] sm:$0xff] %vm615_vm0, %v568_v8  ;;  %v572_v25 = vmax.f32 %v508_v15, 0.0  ;;  %v510_v27 = vadd.f32 %v446_v12, %v382_v17  ;;  %v383_v31 = vadd.f32 %v834_v1, %v315_v22  ;;  %v318_v34 = vmul.f32 %v815_v0, %v250_v18  ;;  %v456_v15 = vld [vmem:[%s829_s26 + $0x108] sm:$0xff]  ;;  %v261_v22 = vld [vmem:[%s823_s23 + $0x130] sm:$0xff] }
  0x29   : > { %634 = vst.msk [vmem:[%s865_s5 + $0x90] sm:$0xff] %vm615_vm0, %v569_v14  ;;  %v384_v32 = vadd.f32 %v834_v1, %v316_v23  ;;  %v319_v35 = vmul.f32 %v815_v0, %v251_v19  ;;  %v573_v38 = vmax.f32 %v509_v26, 0.0  ;;  %v385_v40 = vadd.f32 %v834_v1, %v317_v30  ;;  %v455_v14 = vld [vmem:[%s829_s26 + $0x100] sm:$0xff]  ;;  %v457_v19 = vld [vmem:[%s829_s26 + $0x110] sm:$0xff]  ;;  %v262_v23 = vld [vmem:[%s823_s23 + $0x138] sm:$0xff] }
  0x2a   : > { %635 = vst.msk [vmem:[%s865_s5 + $0x98] sm:$0xff] %vm615_vm0, %v570_v20  ;;  %v574_v39 = vmax.f32 %v510_v27, 0.0  ;;  %v320_v43 = vmul.f32 %v815_v0, %v252_v24  ;;  %v511_v44 = vadd.f32 %v447_v28, %v383_v31  ;;  %v386_v46 = vadd.f32 %v834_v1, %v318_v34  ;;  %v458_v27 = vld [vmem:[%s829_s26 + $0x118] sm:$0xff]  ;;  %v459_v28 = vld [vmem:[%s829_s26 + $0x120] sm:$0xff]  ;;  %v460_v34 = vld [vmem:[%s829_s26 + $0x128] sm:$0xff] }
  0x2b   : > { %636 = vst.msk [vmem:[%s865_s5 + $0xa0] sm:$0xff] %vm615_vm0, %v571_v21  ;;  %v512_v45 = vadd.f32 %v448_v29, %v384_v32  ;;  %v387_v47 = vadd.f32 %v834_v1, %v319_v35  ;;  %v513_v49 = vadd.f32 %v449_v33, %v385_v40  ;;  %v321_v51 = vmul.f32 %v815_v0, %v253_v36  ;;  %v264_v40 = vld [vmem:[%s823_s23 + $0x148] sm:$0xff] }
  0x2c   : > { %637 = vst.msk [vmem:[%s865_s5 + $0xa8] sm:$0xff] %vm615_vm0, %v572_v25  ;;  %v388_v50 = vadd.f32 %v834_v1, %v320_v43  ;;  %v322_v52 = vmul.f32 %v815_v0, %v254_v37  ;;  %v575_v55 = vmax.f32 %v511_v44, 0.0  ;;  %v514_v57 = vadd.f32 %v450_v41, %v386_v46  ;;  %v462_v46 = vld [vmem:[%s829_s26 + $0x138] sm:$0xff] }
  0x2d   : > { %638 = vst.msk [vmem:[%s865_s5 + $0xb0] sm:$0xff] %vm615_vm0, %v573_v38  ;;  %v576_v56 = vmax.f32 %v512_v45, 0.0  ;;  %v515_v58 = vadd.f32 %v451_v42, %v387_v47  ;;  %v577_v62 = vmax.f32 %v513_v49, 0.0  ;;  %v389_v2 = vadd.f32 %v834_v1, %v321_v51  ;;  %v461_v45 = vld [vmem:[%s829_s26 + $0x130] sm:$0xff] }
  0x2e   : > { %639 = vst.msk [vmem:[%s865_s5 + $0xb8] sm:$0xff] %vm615_vm0, %v574_v39  ;;  %v516_v63 = vadd.f32 %v452_v48, %v388_v50  ;;  %v390_v3 = vadd.f32 %v834_v1, %v322_v52  ;;  %v578_v6 = vmax.f32 %v514_v57, 0.0  ;;  %v323_v8 = vmul.f32 %v815_v0, %v255_v53  ;;  %v263_v39 = vld [vmem:[%s823_s23 + $0x140] sm:$0xff]  ;;  %v265_v47 = vld [vmem:[%s823_s23 + $0x150] sm:$0xff]  ;;  %v266_v52 = vld [vmem:[%s823_s23 + $0x158] sm:$0xff] }
  0x2f   : > { %640 = vst.msk [vmem:[%s865_s5 + $0xc0] sm:$0xff] %vm615_vm0, %v575_v55  ;;  %v579_v7 = vmax.f32 %v515_v58, 0.0  ;;  %v324_v9 = vmul.f32 %v815_v0, %v256_v54  ;;  %v517_v12 = vadd.f32 %v453_v59, %v389_v2  ;;  %v325_v16 = vmul.f32 %v815_v0, %v257_v61  ;;  %v267_v53 = vld [vmem:[%s823_s23 + $0x160] sm:$0xff]  ;;  %v268_v58 = vld [vmem:[%s823_s23 + $0x168] sm:$0xff] }
  0x30   : > { %641 = vst.msk [vmem:[%s865_s5 + $0xc8] sm:$0xff] %vm615_vm0, %v576_v56  ;;  %v580_v11 = vmax.f32 %v516_v63, 0.0  ;;  %v518_v13 = vadd.f32 %v454_v60, %v390_v3  ;;  %v391_v17 = vadd.f32 %v834_v1, %v323_v8  ;;  %v326_v20 = vmul.f32 %v815_v0, %v258_v4  ;;  %v464_v63 = vld [vmem:[%s829_s26 + $0x148] sm:$0xff]  ;;  %v269_v8 = vld [vmem:[%s823_s23 + $0x170] sm:$0xff] }
  0x31   : > { %642 = vst.msk [vmem:[%s865_s5 + $0xd0] sm:$0xff] %vm615_vm0, %v577_v62  ;;  %v392_v18 = vadd.f32 %v834_v1, %v324_v9  ;;  %v327_v21 = vmul.f32 %v815_v0, %v259_v5  ;;  %v581_v24 = vmax.f32 %v517_v12, 0.0  ;;  %v393_v26 = vadd.f32 %v834_v1, %v325_v16  ;;  %v463_v62 = vld [vmem:[%s829_s26 + $0x140] sm:$0xff]  ;;  %v465_v5 = vld [vmem:[%s829_s26 + $0x150] sm:$0xff]  ;;  %v270_v9 = vld [vmem:[%s823_s23 + $0x178] sm:$0xff] }
  0x32   : > { %643 = vst.msk [vmem:[%s865_s5 + $0xd8] sm:$0xff] %vm615_vm0, %v578_v6  ;;  %v582_v25 = vmax.f32 %v518_v13, 0.0  ;;  %v328_v29 = vmul.f32 %v815_v0, %v260_v10  ;;  %v519_v30 = vadd.f32 %v455_v14, %v391_v17  ;;  %v394_v32 = vadd.f32 %v834_v1, %v326_v20  ;;  %v466_v13 = vld [vmem:[%s829_s26 + $0x158] sm:$0xff]  ;;  %v467_v14 = vld [vmem:[%s829_s26 + $0x160] sm:$0xff]  ;;  %v468_v20 = vld [vmem:[%s829_s26 + $0x168] sm:$0xff] }
  0x33   : > { %644 = vst.msk [vmem:[%s865_s5 + $0xe0] sm:$0xff] %vm615_vm0, %v579_v7  ;;  %v520_v31 = vadd.f32 %v456_v15, %v392_v18  ;;  %v395_v33 = vadd.f32 %v834_v1, %v327_v21  ;;  %v521_v35 = vadd.f32 %v457_v19, %v393_v26  ;;  %v329_v37 = vmul.f32 %v815_v0, %v261_v22  ;;  %v272_v26 = vld [vmem:[%s823_s23 + $0x188] sm:$0xff] }
  0x34   : > { %645 = vst.msk [vmem:[%s865_s5 + $0xe8] sm:$0xff] %vm615_vm0, %v580_v11  ;;  %v396_v36 = vadd.f32 %v834_v1, %v328_v29  ;;  %v330_v38 = vmul.f32 %v815_v0, %v262_v23  ;;  %v583_v41 = vmax.f32 %v519_v30, 0.0  ;;  %v522_v43 = vadd.f32 %v458_v27, %v394_v32  ;;  %v470_v32 = vld [vmem:[%s829_s26 + $0x178] sm:$0xff] }
  0x35   : > { %646 = vst.msk [vmem:[%s865_s5 + $0xf0] sm:$0xff] %vm615_vm0, %v581_v24  ;;  %v584_v42 = vmax.f32 %v520_v31, 0.0  ;;  %v523_v44 = vadd.f32 %v459_v28, %v395_v33  ;;  %v585_v48 = vmax.f32 %v521_v35, 0.0  ;;  %v397_v50 = vadd.f32 %v834_v1, %v329_v37  ;;  %v469_v31 = vld [vmem:[%s829_s26 + $0x170] sm:$0xff] }
  0x36   : > { %647 = vst.msk [vmem:[%s865_s5 + $0xf8] sm:$0xff] %vm615_vm0, %v582_v25  ;;  %v524_v49 = vadd.f32 %v460_v34, %v396_v36  ;;  %v398_v51 = vadd.f32 %v834_v1, %v330_v38  ;;  %v586_v54 = vmax.f32 %v522_v43, 0.0  ;;  %v331_v56 = vmul.f32 %v815_v0, %v263_v39  ;;  %v271_v25 = vld [vmem:[%s823_s23 + $0x180] sm:$0xff]  ;;  %v273_v33 = vld [vmem:[%s823_s23 + $0x190] sm:$0xff]  ;;  %v274_v38 = vld [vmem:[%s823_s23 + $0x198] sm:$0xff] }
  0x37   : > { %648 = vst.msk [vmem:[%s865_s5 + $0x100] sm:$0xff] %vm615_vm0, %v583_v41  ;;  %v587_v55 = vmax.f32 %v523_v44, 0.0  ;;  %v332_v57 = vmul.f32 %v815_v0, %v264_v40  ;;  %v525_v60 = vadd.f32 %v461_v45, %v397_v50  ;;  %v333_v2 = vmul.f32 %v815_v0, %v265_v47  ;;  %v275_v39 = vld [vmem:[%s823_s23 + $0x1a0] sm:$0xff]  ;;  %v276_v44 = vld [vmem:[%s823_s23 + $0x1a8] sm:$0xff] }
  0x38   : > { %649 = vst.msk [vmem:[%s865_s5 + $0x108] sm:$0xff] %vm615_vm0, %v584_v42  ;;  %v588_v59 = vmax.f32 %v524_v49, 0.0  ;;  %v526_v61 = vadd.f32 %v462_v46, %v398_v51  ;;  %v399_v3 = vadd.f32 %v834_v1, %v331_v56  ;;  %v334_v6 = vmul.f32 %v815_v0, %v266_v52  ;;  %v472_v49 = vld [vmem:[%s829_s26 + $0x188] sm:$0xff]  ;;  %v277_v56 = vld [vmem:[%s823_s23 + $0x1b0] sm:$0xff] }
  0x39   : > { %650 = vst.msk [vmem:[%s865_s5 + $0x110] sm:$0xff] %vm615_vm0, %v585_v48  ;;  %v400_v4 = vadd.f32 %v834_v1, %v332_v57  ;;  %v335_v7 = vmul.f32 %v815_v0, %v267_v53  ;;  %v589_v10 = vmax.f32 %v525_v60, 0.0  ;;  %v401_v12 = vadd.f32 %v834_v1, %v333_v2  ;;  %v471_v48 = vld [vmem:[%s829_s26 + $0x180] sm:$0xff]  ;;  %v473_v53 = vld [vmem:[%s829_s26 + $0x190] sm:$0xff]  ;;  %v278_v57 = vld [vmem:[%s823_s23 + $0x1b8] sm:$0xff] }
  0x3a   : > { %651 = vst.msk [vmem:[%s865_s5 + $0x118] sm:$0xff] %vm615_vm0, %v586_v54  ;;  %v590_v11 = vmax.f32 %v526_v61, 0.0  ;;  %v336_v15 = vmul.f32 %v815_v0, %v268_v58  ;;  %v527_v16 = vadd.f32 %v463_v62, %v399_v3  ;;  %v402_v18 = vadd.f32 %v834_v1, %v334_v6  ;;  %v474_v61 = vld [vmem:[%s829_s26 + $0x198] sm:$0xff]  ;;  %v475_v62 = vld [vmem:[%s829_s26 + $0x1a0] sm:$0xff]  ;;  %v476_v6 = vld [vmem:[%s829_s26 + $0x1a8] sm:$0xff] }
  0x3b   : > { %652 = vst.msk [vmem:[%s865_s5 + $0x120] sm:$0xff] %vm615_vm0, %v587_v55  ;;  %v528_v17 = vadd.f32 %v464_v63, %v400_v4  ;;  %v403_v19 = vadd.f32 %v834_v1, %v335_v7  ;;  %v529_v21 = vadd.f32 %v465_v5, %v401_v12  ;;  %v337_v23 = vmul.f32 %v815_v0, %v269_v8  ;;  %v280_v12 = vld [vmem:[%s823_s23 + $0x1c8] sm:$0xff] }
  0x3c   : > { %653 = vst.msk [vmem:[%s865_s5 + $0x128] sm:$0xff] %vm615_vm0, %v588_v59  ;;  %v404_v22 = vadd.f32 %v834_v1, %v336_v15  ;;  %v338_v24 = vmul.f32 %v815_v0, %v270_v9  ;;  %v591_v27 = vmax.f32 %v527_v16, 0.0  ;;  %v530_v29 = vadd.f32 %v466_v13, %v402_v18  ;;  %v478_v18 = vld [vmem:[%s829_s26 + $0x1b8] sm:$0xff] }
  0x3d   : > { %654 = vst.msk [vmem:[%s865_s5 + $0x130] sm:$0xff] %vm615_vm0, %v589_v10  ;;  %v592_v28 = vmax.f32 %v528_v17, 0.0  ;;  %v531_v30 = vadd.f32 %v467_v14, %v403_v19  ;;  %v593_v34 = vmax.f32 %v529_v21, 0.0  ;;  %v405_v36 = vadd.f32 %v834_v1, %v337_v23  ;;  %v477_v17 = vld [vmem:[%s829_s26 + $0x1b0] sm:$0xff] }
  0x3e   : > { %655 = vst.msk [vmem:[%s865_s5 + $0x138] sm:$0xff] %vm615_vm0, %v590_v11  ;;  %v532_v35 = vadd.f32 %v468_v20, %v404_v22  ;;  %v406_v37 = vadd.f32 %v834_v1, %v338_v24  ;;  %v594_v40 = vmax.f32 %v530_v29, 0.0  ;;  %v339_v42 = vmul.f32 %v815_v0, %v271_v25  ;;  %v279_v11 = vld [vmem:[%s823_s23 + $0x1c0] sm:$0xff]  ;;  %v281_v19 = vld [vmem:[%s823_s23 + $0x1d0] sm:$0xff]  ;;  %v282_v24 = vld [vmem:[%s823_s23 + $0x1d8] sm:$0xff] }
  0x3f   : > { %656 = vst.msk [vmem:[%s865_s5 + $0x140] sm:$0xff] %vm615_vm0, %v591_v27  ;;  %v595_v41 = vmax.f32 %v531_v30, 0.0  ;;  %v340_v43 = vmul.f32 %v815_v0, %v272_v26  ;;  %v533_v46 = vadd.f32 %v469_v31, %v405_v36  ;;  %v341_v50 = vmul.f32 %v815_v0, %v273_v33  ;;  %v283_v25 = vld [vmem:[%s823_s23 + $0x1e0] sm:$0xff]  ;;  %v284_v30 = vld [vmem:[%s823_s23 + $0x1e8] sm:$0xff] }
  0x40   : > { %657 = vst.msk [vmem:[%s865_s5 + $0x148] sm:$0xff] %vm615_vm0, %v592_v28  ;;  %v596_v45 = vmax.f32 %v532_v35, 0.0  ;;  %v534_v47 = vadd.f32 %v470_v32, %v406_v37  ;;  %v407_v51 = vadd.f32 %v834_v1, %v339_v42  ;;  %v342_v54 = vmul.f32 %v815_v0, %v274_v38  ;;  %v480_v35 = vld [vmem:[%s829_s26 + $0x1c8] sm:$0xff]  ;;  %v285_v42 = vld [vmem:[%s823_s23 + $0x1f0] sm:$0xff] }
  0x41   : > { %658 = vst.msk [vmem:[%s865_s5 + $0x150] sm:$0xff] %vm615_vm0, %v593_v34  ;;  %v408_v52 = vadd.f32 %v834_v1, %v340_v43  ;;  %v343_v55 = vmul.f32 %v815_v0, %v275_v39  ;;  %v597_v58 = vmax.f32 %v533_v46, 0.0  ;;  %v409_v60 = vadd.f32 %v834_v1, %v341_v50  ;;  %v479_v34 = vld [vmem:[%s829_s26 + $0x1c0] sm:$0xff]  ;;  %v481_v39 = vld [vmem:[%s829_s26 + $0x1d0] sm:$0xff]  ;;  %v286_v43 = vld [vmem:[%s823_s23 + $0x1f8] sm:$0xff] }
  0x42   : > { %659 = vst.msk [vmem:[%s865_s5 + $0x158] sm:$0xff] %vm615_vm0, %v594_v40  ;;  %v598_v59 = vmax.f32 %v534_v47, 0.0  ;;  %v344_v63 = vmul.f32 %v815_v0, %v276_v44  ;;  %v535_v2 = vadd.f32 %v471_v48, %v407_v51  ;;  %v410_v4 = vadd.f32 %v834_v1, %v342_v54  ;;  %v482_v47 = vld [vmem:[%s829_s26 + $0x1d8] sm:$0xff]  ;;  %v483_v48 = vld [vmem:[%s829_s26 + $0x1e0] sm:$0xff]  ;;  %v484_v54 = vld [vmem:[%s829_s26 + $0x1e8] sm:$0xff] }
  0x43   : > { %660 = vst.msk [vmem:[%s865_s5 + $0x160] sm:$0xff] %vm615_vm0, %v595_v41  ;;  %v536_v3 = vadd.f32 %v472_v49, %v408_v52  ;;  %v411_v5 = vadd.f32 %v834_v1, %v343_v55  ;;  %v537_v7 = vadd.f32 %v473_v53, %v409_v60  ;;  %v345_v9 = vmul.f32 %v815_v0, %v277_v56 }
  0x44   : > { %661 = vst.msk [vmem:[%s865_s5 + $0x168] sm:$0xff] %vm615_vm0, %v596_v45  ;;  %v412_v8 = vadd.f32 %v834_v1, %v344_v63  ;;  %v346_v10 = vmul.f32 %v815_v0, %v278_v57  ;;  %v599_v13 = vmax.f32 %v535_v2, 0.0  ;;  %v538_v15 = vadd.f32 %v474_v61, %v410_v4  ;;  %v485_v63 = vld [vmem:[%s829_s26 + $0x1f0] sm:$0xff]  ;;  %v486_v2 = vld [vmem:[%s829_s26 + $0x1f8] sm:$0xff] }
  0x45   : > { %662 = vst.msk [vmem:[%s865_s5 + $0x170] sm:$0xff] %vm615_vm0, %v597_v58  ;;  %v600_v14 = vmax.f32 %v536_v3, 0.0  ;;  %v539_v16 = vadd.f32 %v475_v62, %v411_v5  ;;  %v601_v20 = vmax.f32 %v537_v7, 0.0  ;;  %v413_v22 = vadd.f32 %v834_v1, %v345_v9 }
  0x46   : > { %663 = vst.msk [vmem:[%s865_s5 + $0x178] sm:$0xff] %vm615_vm0, %v598_v59  ;;  %v540_v21 = vadd.f32 %v476_v6, %v412_v8  ;;  %v414_v23 = vadd.f32 %v834_v1, %v346_v10  ;;  %v602_v26 = vmax.f32 %v538_v15, 0.0  ;;  %v347_v28 = vmul.f32 %v815_v0, %v279_v11 }
  0x47   : > { %664 = vst.msk [vmem:[%s865_s5 + $0x180] sm:$0xff] %vm615_vm0, %v599_v13  ;;  %v603_v27 = vmax.f32 %v539_v16, 0.0  ;;  %v348_v29 = vmul.f32 %v815_v0, %v280_v12  ;;  %v541_v32 = vadd.f32 %v477_v17, %v413_v22  ;;  %v349_v36 = vmul.f32 %v815_v0, %v281_v19 }
  0x48   : > { %665 = vst.msk [vmem:[%s865_s5 + $0x188] sm:$0xff] %vm615_vm0, %v600_v14  ;;  %v604_v31 = vmax.f32 %v540_v21, 0.0  ;;  %v542_v33 = vadd.f32 %v478_v18, %v414_v23  ;;  %v415_v37 = vadd.f32 %v834_v1, %v347_v28  ;;  %v350_v40 = vmul.f32 %v815_v0, %v282_v24 }
  0x49   : > { %666 = vst.msk [vmem:[%s865_s5 + $0x190] sm:$0xff] %vm615_vm0, %v601_v20  ;;  %v416_v38 = vadd.f32 %v834_v1, %v348_v29  ;;  %v351_v41 = vmul.f32 %v815_v0, %v283_v25  ;;  %v605_v44 = vmax.f32 %v541_v32, 0.0  ;;  %v417_v46 = vadd.f32 %v834_v1, %v349_v36 }
  0x4a   : > { %667 = vst.msk [vmem:[%s865_s5 + $0x198] sm:$0xff] %vm615_vm0, %v602_v26  ;;  %v606_v45 = vmax.f32 %v542_v33, 0.0  ;;  %v352_v49 = vmul.f32 %v815_v0, %v284_v30  ;;  %v543_v50 = vadd.f32 %v479_v34, %v415_v37  ;;  %v418_v52 = vadd.f32 %v834_v1, %v350_v40 }
  0x4b   : > { %668 = vst.msk [vmem:[%s865_s5 + $0x1a0] sm:$0xff] %vm615_vm0, %v603_v27  ;;  %v544_v51 = vadd.f32 %v480_v35, %v416_v38  ;;  %v419_v53 = vadd.f32 %v834_v1, %v351_v41  ;;  %v545_v55 = vadd.f32 %v481_v39, %v417_v46  ;;  %v353_v57 = vmul.f32 %v815_v0, %v285_v42 }
  0x4c   : > { %669 = vst.msk [vmem:[%s865_s5 + $0x1a8] sm:$0xff] %vm615_vm0, %v604_v31  ;;  %v420_v56 = vadd.f32 %v834_v1, %v352_v49  ;;  %v354_v58 = vmul.f32 %v815_v0, %v286_v43  ;;  %v607_v59 = vmax.f32 %v543_v50, 0.0  ;;  %v546_v61 = vadd.f32 %v482_v47, %v418_v52 }
  0x4d   : > { %670 = vst.msk [vmem:[%s865_s5 + $0x1b0] sm:$0xff] %vm615_vm0, %v605_v44  ;;  %v608_v60 = vmax.f32 %v544_v51, 0.0  ;;  %v547_v62 = vadd.f32 %v483_v48, %v419_v53  ;;  %v609_v3 = vmax.f32 %v545_v55, 0.0  ;;  %v421_v0 = vadd.f32 %v834_v1, %v353_v57 }
  0x4e   : > { %671 = vst.msk [vmem:[%s865_s5 + $0x1b8] sm:$0xff] %vm615_vm0, %v606_v45  ;;  %v548_v4 = vadd.f32 %v484_v54, %v420_v56  ;;  %v422_v5 = vadd.f32 %v834_v1, %v354_v58  ;;  %v610_v6 = vmax.f32 %v546_v61, 0.0 }
  0x4f   : > { %672 = vst.msk [vmem:[%s865_s5 + $0x1c0] sm:$0xff] %vm615_vm0, %v607_v59  ;;  %v611_v7 = vmax.f32 %v547_v62, 0.0  ;;  %v549_v9 = vadd.f32 %v485_v63, %v421_v0 }
  0x50   : > { %673 = vst.msk [vmem:[%s865_s5 + $0x1c8] sm:$0xff] %vm615_vm0, %v608_v60  ;;  %v612_v8 = vmax.f32 %v548_v4, 0.0  ;;  %v550_v10 = vadd.f32 %v486_v2, %v422_v5 }
  0x51   : > { %674 = vst.msk [vmem:[%s865_s5 + $0x1d0] sm:$0xff] %vm615_vm0, %v609_v3  ;;  %v613_v11 = vmax.f32 %v549_v9, 0.0 }
  0x52   : > { %675 = vst.msk [vmem:[%s865_s5 + $0x1d8] sm:$0xff] %vm615_vm0, %v610_v6  ;;  %v614_v12 = vmax.f32 %v550_v10, 0.0 }
  0x53   : > { %676 = vst.msk [vmem:[%s865_s5 + $0x1e0] sm:$0xff] %vm615_vm0, %v611_v7 }
  0x54   : > { %677 = vst.msk [vmem:[%s865_s5 + $0x1e8] sm:$0xff] %vm615_vm0, %v612_v8 }
  0x55   : > { %678 = vst.msk [vmem:[%s865_s5 + $0x1f0] sm:$0xff] %vm615_vm0, %v613_v11 }
  0x56   : > { %679 = vst.msk [vmem:[%s865_s5 + $0x1f8] sm:$0xff] %vm615_vm0, %v614_v12 }
  0x57 PF: > { %s14_s15 = sadd.s32 1, %s777_s15  }
  0x58   : > { %p11_p4 = scmp.ge.s32.totalorder %s14_s15, 4  }
  0x5a   :  { %13 = sbr.rel (!%p11_p4) target bundleno = 1 (0x1), region = 69 }

// kernel: basic_block_forward.4
= control target key start
LH: loop header
LB: loop body
LE: loop exit
PB: predicated region body
PF: predicated region fallthrough
CT: control target
= control target key end

     0   :  { %s3359_s18 = smov 0   ;;  %s3361_s19 = smov 0   ;;  %s4372_s0 = inlined_call_operand.vmem [shape: f32[2,10,10,10,8], index: 0, kind: input, shape index: {}, may-alias: {0,1,2}]   ;;  %s4373_s1 = inlined_call_operand.vmem [shape: f32[2,10,10,10,8], index: 1, kind: input, shape index: {}, may-alias: {0,1,2}]   ;;  %s4374_s2 = inlined_call_operand.vmem [shape: f32[2,10,10,10,8], index: 2, kind: input, shape index: {}, may-alias: {0,1,2}]   ;;  %s4375_s3 = inlined_call_operand.vmem [shape: f32[27,8,8], index: 3, kind: input, shape index: {}]   ;;  %s4376_s4 = inlined_call_operand.vmem [shape: f32[2,8,64,8], index: 4, kind: output, shape index: {0}]   ;;  %s4377_s5 = inlined_call_operand.vmem [shape: f32[2,8,2,8], index: 5, kind: output, shape index: {1}]  }
   0x1   :  { %s3363_s20 = smov 0   ;;  %s3365_s21 = smov 0  }
   0x2   :  { %s3367_s22 = smov 0  }
   0x3 LB: > { %s25_s23 = sadd.s32 1, %s3319_s20  ;;  %s28_s24 = sadd.s32 1, %s3323_s21  ;;  %s3327_s22 = sphi %s3367_s22, %s16_s22   ;;  %s3323_s21 = sphi %s3365_s21, %s4381_s21   ;;  %s3319_s20 = sphi %s3363_s20, %s4380_s20   ;;  %s3315_s19 = sphi %s3361_s19, %s4379_s19   ;;  %s3311_s18 = sphi %s3359_s18, %s4378_s18  }
   0x4   : > { %p26_p0 = scmp.ge.s32.totalorder %s25_s23, 8  ;;  %p2845_p1 = scmp.ge.s32.totalorder %s3327_s22, 1 }
   0x5   : > { %p252_p2 = scmp.lt.s32.totalorder %s3327_s22, 17 }
   0x6   : > { %s4383_s23 = smov (%p26_p0, %s25_s23), 0  ;;  %s4385_s24 = smov (!%p26_p0, %s28_s24), %s3323_s21 }
   0x7   : > { %p253_p3 = pnand %p2845_p1, %p252_p2  ;;  %p30_p4 = scmp.ge.s32.totalorder %s4385_s24, 2 }
   0x8   : > { %p316_p5 = scmp.lt.s32.totalorder (!%p253_p3), %s3315_s19, 1  ;;  %p318_p6 = scmp.lt.s32.totalorder (!%p253_p3), %s3311_s18, 9 }
   0x9   : > { %s4387_s24 = smov (%p30_p4, %s4385_s24), 0  ;;  %256 = sbr.rel (%p253_p3) target bundleno = 606 (0x25e), region = 36 }
   0xa   : > { %s325_s17 = sadd.s32 (!%p253_p3), 1, %s3311_s18  ;;  %s336_s29 = sadd.s32 (!%p253_p3), 2, %s3311_s18 }
   0xb   : > { %p328_p7 = scmp.lt.s32.totalorder (!%p253_p3), %s325_s17, 9  ;;  %p339_p8 = scmp.lt.s32.totalorder (!%p253_p3), %s336_s29, 9 }
   0xc   : > { %p349_p9 = scmp.lt.s32.totalorder (!%p253_p3), %s3311_s18, 7 }
   0xe   : > { %v2854_v0 = vld [vmem:[%s4375_s3 + $0x8] sm:$0xff]  ;;  %v372_v1 = vld [vmem:[%s4375_s3] sm:$0xff]  ;;  %v2871_v2 = vld [vmem:[%s4375_s3 + $0x10] sm:$0xff]  ;;  %s4389_s19 = smov (!%p316_p5, %s3315_s19), 1  ;;  %vm383_vm0 = vcmask 64512   ;;  %s4391_s17 = smov (!%p328_p7, %s325_s17), 9 }
   0xf   : > { %3242 = vmatpush.msra.mxu3 %v2854_v0  ;;  %563 = vmatpush.msra.mxu2 %v2871_v2  ;;  %v2939_v3 = vld [vmem:[%s4375_s3 + $0x30] sm:$0xff]  ;;  %v2905_v4 = vld [vmem:[%s4375_s3 + $0x20] sm:$0xff]  ;;  %v2922_v5 = vld [vmem:[%s4375_s3 + $0x28] sm:$0xff]  ;;  %s319_s12 = scalar_select %p318_p6, %s3311_s18, 9  ;;  %vm2653_vm1 = vcmask 1040384   ;;  %vm2655_vm2 = vcmask 58368  }
  0x10   : > { %423 = vmatpush.msra.mxu0 %v2854_v0  ;;  %488 = vmatpush.msra.mxu1 %v372_v1  ;;  %s3414_s13 = smul.u32 200, %s4389_s19  ;;  %v2888_v18 = vld [vmem:[%s4375_s3 + $0x18] sm:$0xff]  ;;  %v2991_v19 = vld [vmem:[%s4375_s3 + $0x50] sm:$0xff]  ;;  %v2973_v24 = vld [vmem:[%s4375_s3 + $0x40] sm:$0xff]  ;;  %s4393_s29 = smov (!%p339_p8, %s336_s29), 9 }
  0x11   : > { %3243 = vmatpush.msrb.mxu3 %v372_v1  ;;  %897 = vmatpush.msrb.mxu2 %v2939_v3  ;;  %s3245_s14 = smul.u32 20, %s319_s12  ;;  %v2982_v25 = vld [vmem:[%s4375_s3 + $0x48] sm:$0xff]  ;;  %v2956_v30 = vld [vmem:[%s4375_s3 + $0x38] sm:$0xff]  ;;  %v3051_v36 = vld [vmem:[%s4375_s3 + $0x70] sm:$0xff]  ;;  %s4395_s18 = smov (!%p349_p9, %s3311_s18), 7 }
  0x12   : > { %730 = vmatpush.msrb.mxu0 %v2905_v4  ;;  %813 = vmatpush.msrb.mxu1 %v2922_v5  ;;  %v3000_v35 = vld [vmem:[%s4375_s3 + $0x58] sm:$0xff]  ;;  %v3017_v37 = vld [vmem:[%s4375_s3 + $0x60] sm:$0xff]  ;;  %v3034_v38 = vld [vmem:[%s4375_s3 + $0x68] sm:$0xff]  ;;  %s3247_s30 = smul.u32 20, %s4391_s17  ;;  %s2850_s8 = sshll.u32 %s4389_s19, 6 }
  0x13   : > { %s322_s15 = sadd.s32 %s3414_s13, %s3245_s14  ;;  %v3068_v63 = vld [vmem:[%s4375_s3 + $0x78] sm:$0xff]  ;;  %s3248_s12 = smul.u32 20, %s4393_s29 }
  0x14   : > { %s2846_s16 = sshll.u32 %s322_s15, 3  ;;  %s332_s6 = sadd.s32 %s3247_s30, %s3414_s13 }
  0x15   : > { %s3420_s26 = scalar_lea.vmem %s4372_s0, %s2846_s16  ;;  %s2847_s7 = sshll.u32 %s332_s6, 3 }
  0x16   : > { %v3423_v6 = vld [vmem:[%s3420_s26 + $0x61] sm:$0xff]  ;;  %v3434_v10 = vld [vmem:[%s3420_s26 + $0x71] sm:$0xff]  ;;  %s3602_s10 = scalar_lea.vmem %s4373_s1, %s2847_s7  ;;  %s343_s14 = sadd.s32 %s3248_s12, %s3414_s13 }
  0x17   : > { %v514_v7 = vld [vmem:[%s3420_s26 + $0x2] sm:$0xff]  ;;  %2861 = vmatmul.msk.f32.vlgmr.msra.gmra.mxu3 %vm383_vm0, %v3423_v6  ;;  %v515_v11 = vld [vmem:[%s3420_s26 + $0x12] sm:$0xff]  ;;  %s2848_s15 = sshll.u32 %s343_s14, 3  ;;  %s2852_s13 = sshll.u32 %s4389_s19, 3 }
  0x18   : > { %v373_v8 = vld [vmem:[%s3420_s26 + $0x1] sm:$0xff]  ;;  %2872 = vmatmul.msk.f32.vlgmr.msra.gmra.mxu2 %vm383_vm0, %v514_v7  ;;  %3244 = vmatpush.msra.mxu3 %v2871_v2  ;;  %v374_v12 = vld [vmem:[%s3420_s26 + $0x11] sm:$0xff]  ;;  %s3902_s17 = scalar_lea.vmem %s4374_s2, %s2848_s15  ;;  %s361_s16 = sadd.s32 %s2852_s13, %s4395_s18 }
  0x19   : > { %v364_v9 = vld [vmem:[%s3420_s26] sm:$0xff]  ;;  %2855 = vmatmul.msk.f32.vlgmr.msra.gmra.mxu0 %vm383_vm0, %v373_v8  ;;  %v365_v13 = vld [vmem:[%s3420_s26 + $0x10] sm:$0xff]  ;;  %1229 = vmatpush.msra.mxu2 %v2991_v19 }
  0x1a   : > { %2863 = vmatmul.msk.f32.vlgmr.msra.gmra.mxu1 %vm383_vm0, %v364_v9  ;;  %v3445_v14 = vld [vmem:[%s3420_s26 + $0x60] sm:$0xff]  ;;  %v3468_v20 = vld [vmem:[%s3420_s26 + $0x70] sm:$0xff]  ;;  %1063 = vmatpush.msra.mxu0 %v2973_v24  ;;  %v3102_v9 = vld [vmem:[%s4375_s3 + $0x88] sm:$0xff] }
  0x1b   : > { %v3448_v15 = vld [vmem:[%s3420_s26 + $0x22] sm:$0xff]  ;;  %v3471_v21 = vld [vmem:[%s3420_s26 + $0x32] sm:$0xff]  ;;  %1146 = vmatpush.msra.mxu1 %v2982_v25 }
  0x1c   : > { %v3451_v16 = vld [vmem:[%s3420_s26 + $0x21] sm:$0xff]  ;;  %v3474_v22 = vld [vmem:[%s3420_s26 + $0x31] sm:$0xff] }
  0x1d   : > { %v366_v17 = vld [vmem:[%s3420_s26 + $0x20] sm:$0xff]  ;;  %v367_v23 = vld [vmem:[%s3420_s26 + $0x30] sm:$0xff] }
  0x1e   : > { %v3491_v26 = vld [vmem:[%s3420_s26 + $0x62] sm:$0xff]  ;;  %v3511_v31 = vld [vmem:[%s3420_s26 + $0x72] sm:$0xff] }
  0x1f   : > { %2862 = vmatmul.msk.f32.gmra.mxu3 %vm383_vm0, %v3434_v10  ;;  %v3494_v27 = vld [vmem:[%s3420_s26 + $0x42] sm:$0xff]  ;;  %v3514_v32 = vld [vmem:[%s3420_s26 + $0x52] sm:$0xff] }
  0x20   : > { %2873 = vmatmul.msk.f32.gmra.mxu2 %vm383_vm0, %v515_v11  ;;  %v3497_v28 = vld [vmem:[%s3420_s26 + $0x41] sm:$0xff]  ;;  %v3517_v33 = vld [vmem:[%s3420_s26 + $0x51] sm:$0xff] }
  0x21   : > { %2856 = vmatmul.msk.f32.gmra.mxu0 %vm383_vm0, %v374_v12  ;;  %v368_v29 = vld [vmem:[%s3420_s26 + $0x40] sm:$0xff]  ;;  %v369_v34 = vld [vmem:[%s3420_s26 + $0x50] sm:$0xff] }
  0x22   : > { %2864 = vmatmul.msk.f32.gmra.mxu1 %vm383_vm0, %v365_v13  ;;  %v2937_v39 = vld [vmem:[%s3420_s26 + $0x80] sm:$0xff]  ;;  %v2938_v40 = vld [vmem:[%s3420_s26 + $0x90] sm:$0xff] }
  0x23   : > { %v3588_v41 = vld [vmem:[%s3420_s26 + $0x81] sm:$0xff]  ;;  %v3613_v45 = vld [vmem:[%s3602_s10 + $0x11] sm:$0xff] }
  0x24   : > { %v3591_v42 = vld [vmem:[%s3420_s26 + $0x82] sm:$0xff]  ;;  %v3616_v46 = vld [vmem:[%s3602_s10 + $0x10] sm:$0xff] }
  0x25   : > { %v1180_v43 = vld [vmem:[%s3602_s10 + $0x1] sm:$0xff]  ;;  %v3647_v53 = vld [vmem:[%s3602_s10 + $0x31] sm:$0xff] }
  0x26   : > { %v1097_v44 = vld [vmem:[%s3602_s10] sm:$0xff]  ;;  %v3654_v56 = vld [vmem:[%s3602_s10 + $0x30] sm:$0xff] }
  0x27   : > { %2869 = vmatmul.msk.f32.vlgmr.msrb.gmra.mxu3 %vm383_vm0, %v3445_v14  ;;  %v3627_v47 = vld [vmem:[%s3602_s10 + $0x21] sm:$0xff]  ;;  %v3690_v3 = vld [vmem:[%s3602_s10 + $0x51] sm:$0xff] }
  0x28   : > { %2874 = vmatmul.msk.f32.gmra.mxu2 %vm383_vm0, %v3448_v15  ;;  %647 = vmatpush.msrb.mxu3 %v2888_v18  ;;  %v3634_v50 = vld [vmem:[%s3602_s10 + $0x20] sm:$0xff]  ;;  %v3111_v7 = vld [vmem:[%s4375_s3 + $0x90] sm:$0xff] }
  0x29   : > { %2857 = vmatmul.msk.f32.gmra.mxu0 %vm383_vm0, %v3451_v16  ;;  %v3667_v59 = vld [vmem:[%s3602_s10 + $0x41] sm:$0xff]  ;;  %v2972_v24 = vld [vmem:[%s3420_s26 + $0x92] sm:$0xff] }
  0x2a   : > { %2865 = vmatmul.msk.f32.gmra.mxu1 %vm383_vm0, %v366_v17  ;;  %v3674_v62 = vld [vmem:[%s3602_s10 + $0x40] sm:$0xff]  ;;  %v3750_v25 = vld [vmem:[%s3602_s10 + $0x70] sm:$0xff] }
  0x2b   : > { %v3085_v8 = vld [vmem:[%s4375_s3 + $0x80] sm:$0xff] }
  0x2f   : > { %2870 = vmatmul.msk.f32.gmra.mxu3 %vm383_vm0, %v3468_v20 }
  0x30   : > { %2875 = vmatmul.msk.f32.gmra.mxu2 %vm383_vm0, %v3471_v21 }
  0x31   : > { %2858 = vmatmul.msk.f32.gmra.mxu0 %vm383_vm0, %v3474_v22 }
  0x32   : > { %2866 = vmatmul.msk.f32.gmra.mxu1 %vm383_vm0, %v367_v23 }
  0x37   : > { %2878 = vmatmul.msk.f32.vlgmr.msra.gmra.mxu3 %vm383_vm0, %v3491_v26 }
  0x38   : > { %2876 = vmatmul.msk.f32.gmra.mxu2 %vm383_vm0, %v3494_v27  ;;  %980 = vmatpush.msra.mxu3 %v2956_v30  ;;  %v3043_v30 = vld [vmem:[%s3602_s10 + $0x12] sm:$0xff] }
  0x39   : > { %2859 = vmatmul.msk.f32.gmra.mxu0 %vm383_vm0, %v3497_v28 }
  0x3a   : > { %2867 = vmatmul.msk.f32.gmra.mxu1 %vm383_vm0, %v368_v29 }
  0x3f   : > { %2879 = vmatmul.msk.f32.gmra.mxu3 %vm383_vm0, %v3511_v31 }
  0x40   : > { %2877 = vmatmul.msk.f32.gmra.mxu2 %vm383_vm0, %v3514_v32 }
  0x41   : > { %2860 = vmatmul.msk.f32.gmra.mxu0 %vm383_vm0, %v3517_v33 }
  0x42   : > { %2868 = vmatmul.msk.f32.gmra.mxu1 %vm383_vm0, %v369_v34 }
  0x47   : > { %2889 = vmatmul.msk.f32.vlgmr.msrb.gmra.mxu3 %vm383_vm0, %v365_v13  ;;  %v3719_v13 = vld [vmem:[%s3602_s10 + $0x61] sm:$0xff] }
  0x48   : > { %2940 = vmatmul.msk.f32.vlgmr.msrb.gmra.mxu2 %vm383_vm0, %v366_v17  ;;  %1312 = vmatpush.msrb.mxu3 %v3000_v35 }
  0x49   : > { %2906 = vmatmul.msk.f32.vlgmr.msrb.gmra.mxu0 %vm383_vm0, %v374_v12  ;;  %1562 = vmatpush.msrb.mxu2 %v3051_v36 }
  0x4a   : > { %2923 = vmatmul.msk.f32.vlgmr.msrb.gmra.mxu1 %vm383_vm0, %v515_v11  ;;  %1396 = vmatpush.msrb.mxu0 %v3017_v37 }
  0x4b   : > { %1479 = vmatpush.msrb.mxu1 %v3034_v38  ;;  %v3774_v38 = vld [vmem:[%s3602_s10 + $0x22] sm:$0xff] }
  0x4f   : > { %2890 = vmatmul.msk.f32.gmra.mxu3 %vm383_vm0, %v366_v17 }
  0x50   : > { %2941 = vmatmul.msk.f32.gmra.mxu2 %vm383_vm0, %v367_v23 }
  0x51   : > { %2907 = vmatmul.msk.f32.gmra.mxu0 %vm383_vm0, %v3451_v16 }
  0x52   : > { %2924 = vmatmul.msk.f32.gmra.mxu1 %vm383_vm0, %v3448_v15 }
  0x57   : > { %2891 = vmatmul.msk.f32.gmra.mxu3 %vm383_vm0, %v367_v23 }
  0x58   : > { %2942 = vmatmul.msk.f32.gmra.mxu2 %vm383_vm0, %v368_v29 }
  0x59   : > { %2908 = vmatmul.msk.f32.gmra.mxu0 %vm383_vm0, %v3474_v22 }
  0x5a   : > { %2925 = vmatmul.msk.f32.gmra.mxu1 %vm383_vm0, %v3471_v21 }
  0x5f   : > { %2892 = vmatmul.msk.f32.gmra.mxu3 %vm383_vm0, %v368_v29  ;;  %v1263_v29 = vld [vmem:[%s3602_s10 + $0x2] sm:$0xff] }
  0x60   : > { %2943 = vmatmul.msk.f32.gmra.mxu2 %vm383_vm0, %v369_v34 }
  0x61   : > { %2909 = vmatmul.msk.f32.gmra.mxu0 %vm383_vm0, %v3497_v28 }
  0x62   : > { %2926 = vmatmul.msk.f32.gmra.mxu1 %vm383_vm0, %v3494_v27 }
  0x67   : > { %2893 = vmatmul.msk.f32.gmra.mxu3 %vm383_vm0, %v369_v34 }
  0x68   : > { %2944 = vmatmul.msk.f32.gmra.mxu2 %vm383_vm0, %v3445_v14 }
  0x69   : > { %2910 = vmatmul.msk.f32.gmra.mxu0 %vm383_vm0, %v3517_v33 }
  0x6a   : > { %2927 = vmatmul.msk.f32.gmra.mxu1 %vm383_vm0, %v3514_v32 }
  0x6f   : > { %2894 = vmatmul.msk.f32.gmra.mxu3 %vm383_vm0, %v3445_v14 }
  0x70   : > { %2945 = vmatmul.msk.f32.gmra.mxu2 %vm383_vm0, %v3468_v20 }
  0x71   : > { %2911 = vmatmul.msk.f32.gmra.mxu0 %vm383_vm0, %v3423_v6 }
  0x72   : > { %2928 = vmatmul.msk.f32.gmra.mxu1 %vm383_vm0, %v3491_v26 }
  0x77   : > { %2895 = vmatmul.msk.f32.gmra.mxu3 %vm383_vm0, %v3468_v20  ;;  %v2955_v20 = vld [vmem:[%s3420_s26 + $0x91] sm:$0xff] }
  0x78   : > { %2946 = vmatmul.msk.f32.gmra.mxu2 %vm383_vm0, %v2937_v39 }
  0x79   : > { %2912 = vmatmul.msk.f32.gmra.mxu0 %vm383_vm0, %v3434_v10 }
  0x7a   : > { %2929 = vmatmul.msk.f32.gmra.mxu1 %vm383_vm0, %v3511_v31 }
  0x7f   : > { %2896 = vmatmul.msk.f32.gmra.mxu3 %vm383_vm0, %v2937_v39 }
  0x80   : > { %2947 = vmatmul.msk.f32.gmra.mxu2 %vm383_vm0, %v2938_v40 }
  0x81   : > { %2913 = vmatmul.msk.f32.gmra.mxu0 %vm383_vm0, %v3588_v41 }
  0x82   : > { %2930 = vmatmul.msk.f32.gmra.mxu1 %vm383_vm0, %v3591_v42 }
  0x87   : > { %2957 = vmatmul.msk.f32.vlgmr.msra.gmra.mxu3 %vm383_vm0, %v3451_v16  ;;  %v3726_v16 = vld [vmem:[%s3602_s10 + $0x60] sm:$0xff] }
  0x88   : > { %2992 = vmatmul.msk.f32.vlgmr.msra.gmra.mxu2 %vm383_vm0, %v1180_v43  ;;  %1646 = vmatpush.msra.mxu3 %v3068_v63 }
  0x89   : > { %2974 = vmatmul.msk.f32.vlgmr.msra.gmra.mxu0 %vm383_vm0, %v3448_v15  ;;  %1895 = vmatpush.msra.mxu2 %v3111_v7  ;;  %v3805_v7 = vld [vmem:[%s3602_s10 + $0x42] sm:$0xff] }
  0x8a   : > { %2983 = vmatmul.msk.f32.vlgmr.msra.gmra.mxu1 %vm383_vm0, %v1097_v44  ;;  %1729 = vmatpush.msra.mxu0 %v3085_v8 }
  0x8b   : > { %1812 = vmatpush.msra.mxu1 %v3102_v9 }
  0x8f   : > { %2958 = vmatmul.msk.f32.gmra.mxu3 %vm383_vm0, %v3474_v22 }
  0x90   : > { %2993 = vmatmul.msk.f32.gmra.mxu2 %vm383_vm0, %v3613_v45 }
  0x91   : > { %2975 = vmatmul.msk.f32.gmra.mxu0 %vm383_vm0, %v3471_v21  ;;  %v3742_v21 = vld [vmem:[%s3602_s10 + $0x71] sm:$0xff] }
  0x92   : > { %2984 = vmatmul.msk.f32.gmra.mxu1 %vm383_vm0, %v3616_v46 }
  0x96   : > { %v3629_v48 = vpop.f32.mrf.mxu0 }
  0x97   : > { %v3631_v49 = vpop.f32.mrf.mxu1  ;;  %2959 = vmatmul.msk.f32.gmra.mxu3 %vm383_vm0, %v3497_v28 }
  0x98   : > { %2994 = vmatmul.msk.f32.gmra.mxu2 %vm383_vm0, %v3627_v47 }
  0x99   : > { %2976 = vmatmul.msk.f32.gmra.mxu0 %vm383_vm0, %v3494_v27 }
  0x9a   : > { %2985 = vmatmul.msk.f32.gmra.mxu1 %vm383_vm0, %v3634_v50  ;;  %v443_v51 = vpop.f32.mrf.mxu3 }
  0x9b   : > { %v3644_v52 = vpop.f32.mrf.mxu2 }
  0x9e   : > { %v3649_v54 = vpop.f32.mrf.mxu0 }
  0x9f   : > { %v3651_v55 = vpop.f32.mrf.mxu1  ;;  %2960 = vmatmul.msk.f32.gmra.mxu3 %vm383_vm0, %v3517_v33 }
  0xa0   : > { %2995 = vmatmul.msk.f32.gmra.mxu2 %vm383_vm0, %v3647_v53  ;;  %v494_v39 = vadd.f32 %v3651_v55, %v3649_v54 }
  0xa1   : > { %2977 = vmatmul.msk.f32.gmra.mxu0 %vm383_vm0, %v3514_v32 }
  0xa2   : > { %2986 = vmatmul.msk.f32.gmra.mxu1 %vm383_vm0, %v3654_v56  ;;  %v446_v57 = vpop.f32.mrf.mxu3 }
  0xa3   : > { %v3664_v58 = vpop.f32.mrf.mxu2 }
  0xa4   : > { %v590_v44 = vadd.f32 %v3664_v58, %v494_v39 }
  0xa6   : > { %v3669_v60 = vpop.f32.mrf.mxu0 }
  0xa7   : > { %v3671_v61 = vpop.f32.mrf.mxu1  ;;  %2961 = vmatmul.msk.f32.gmra.mxu3 %vm383_vm0, %v3423_v6  ;;  %v3697_v6 = vld [vmem:[%s3602_s10 + $0x50] sm:$0xff] }
  0xa8   : > { %2996 = vmatmul.msk.f32.gmra.mxu2 %vm383_vm0, %v3667_v59 }
  0xa9   : > { %2978 = vmatmul.msk.f32.gmra.mxu0 %vm383_vm0, %v3491_v26 }
  0xaa   : > { %2987 = vmatmul.msk.f32.gmra.mxu1 %vm383_vm0, %v3674_v62  ;;  %v508_v0 = vpop.f32.mrf.mxu3 }
  0xab   : > { %v3687_v1 = vpop.f32.mrf.mxu2  ;;  %v509_v2 = vadd.f32 %v508_v0, %v443_v51  ;;  %v3789_v51 = vld [vmem:[%s3602_s10 + $0x32] sm:$0xff] }
  0xae   : > { %v3692_v4 = vpop.f32.mrf.mxu0 }
  0xaf   : > { %v3694_v5 = vpop.f32.mrf.mxu1  ;;  %2962 = vmatmul.msk.f32.gmra.mxu3 %vm383_vm0, %v3434_v10 }
  0xb0   : > { %2997 = vmatmul.msk.f32.gmra.mxu2 %vm383_vm0, %v3690_v3  ;;  %v500_v8 = vadd.f32 %v3694_v5, %v3692_v4 }
  0xb1   : > { %2979 = vmatmul.msk.f32.gmra.mxu0 %vm383_vm0, %v3511_v31  ;;  %v491_v31 = vadd.f32 %v3631_v49, %v3629_v48 }
  0xb2   : > { %2988 = vmatmul.msk.f32.gmra.mxu1 %vm383_vm0, %v3697_v6  ;;  %v511_v10 = vpop.f32.mrf.mxu3 }
  0xb3   : > { %v3716_v11 = vpop.f32.mrf.mxu2  ;;  %v512_v12 = vadd.f32 %v511_v10, %v446_v57  ;;  %v589_v34 = vadd.f32 %v3644_v52, %v491_v31  ;;  %v497_v52 = vadd.f32 %v3671_v61, %v3669_v60 }
  0xb5   : > { %v591_v58 = vadd.f32 %v3687_v1, %v497_v52  ;;  %v592_v1 = vadd.f32 %v3716_v11, %v500_v8  ;;  %v3120_v11 = vld [vmem:[%s4375_s3 + $0x98] sm:$0xff]  ;;  %v3881_v8 = vld [vmem:[%s3602_s10 + $0x82] sm:$0xff] }
  0xb6   : > { %v3721_v14 = vpop.f32.mrf.mxu0 }
  0xb7   : > { %v3723_v15 = vpop.f32.mrf.mxu1  ;;  %2963 = vmatmul.msk.f32.gmra.mxu3 %vm383_vm0, %v3588_v41 }
  0xb8   : > { %2998 = vmatmul.msk.f32.gmra.mxu2 %vm383_vm0, %v3719_v13 }
  0xb9   : > { %2980 = vmatmul.msk.f32.gmra.mxu0 %vm383_vm0, %v3591_v42 }
  0xba   : > { %2989 = vmatmul.msk.f32.gmra.mxu1 %vm383_vm0, %v3726_v16  ;;  %v583_v17 = vpop.f32.mrf.mxu3 }
  0xbb   : > { %v3736_v18 = vpop.f32.mrf.mxu2  ;;  %v3738_v19 = vadd.f32 %v583_v17, %v509_v2 }
  0xbe   : > { %v3744_v22 = vpop.f32.mrf.mxu0 }
  0xbf   : > { %v3746_v23 = vpop.f32.mrf.mxu1  ;;  %2964 = vmatmul.msk.f32.gmra.mxu3 %vm383_vm0, %v2955_v20 }
  0xc0   : > { %2999 = vmatmul.msk.f32.gmra.mxu2 %vm383_vm0, %v3742_v21  ;;  %v506_v39 = vadd.f32 %v3746_v23, %v3744_v22  ;;  %v3129_v22 = vld [vmem:[%s4375_s3 + $0xa0] sm:$0xff] }
  0xc1   : > { %2981 = vmatmul.msk.f32.gmra.mxu0 %vm383_vm0, %v2972_v24 }
  0xc2   : > { %2990 = vmatmul.msk.f32.gmra.mxu1 %vm383_vm0, %v3750_v25  ;;  %v586_v26 = vpop.f32.mrf.mxu3 }
  0xc3   : > { %v3758_v27 = vpop.f32.mrf.mxu2  ;;  %v3760_v28 = vadd.f32 %v586_v26, %v512_v12  ;;  %v3821_v26 = vld [vmem:[%s3602_s10 + $0x52] sm:$0xff] }
  0xc4   : > { %v594_v23 = vadd.f32 %v3758_v27, %v506_v39 }
  0xc6   : > { %v732_v32 = vpop.f32.mrf.mxu0 }
  0xc7   : > { %v815_v33 = vpop.f32.mrf.mxu1  ;;  %3001 = vmatmul.msk.f32.vlgmr.msrb.gmra.mxu3 %vm383_vm0, %v1263_v29  ;;  %v503_v29 = vadd.f32 %v3723_v15, %v3721_v14 }
  0xc8   : > { %3052 = vmatmul.msk.f32.vlgmr.msrb.gmra.mxu2 %vm383_vm0, %v3043_v30  ;;  %1978 = vmatpush.msrb.mxu3 %v3120_v11 }
  0xc9   : > { %3018 = vmatmul.msk.f32.vlgmr.msrb.gmra.mxu0 %vm383_vm0, %v3616_v46  ;;  %v593_v14 = vadd.f32 %v3736_v18, %v503_v29 }
  0xca   : > { %3035 = vmatmul.msk.f32.vlgmr.msrb.gmra.mxu1 %vm383_vm0, %v3613_v45  ;;  %v649_v35 = vpop.f32.mrf.mxu3  ;;  %2061 = vmatpush.msrb.mxu0 %v3129_v22 }
  0xcb   : > { %v899_v36 = vpop.f32.mrf.mxu2  ;;  %v673_v37 = vadd.f32 %v649_v35, %v589_v34 }
  0xcd   : > { %v756_v40 = vadd.f32 %v732_v32, %v673_v37  ;;  %v3840_v37 = vld [vmem:[%s3602_s10 + $0x62] sm:$0xff] }
  0xce   : > { %v735_v41 = vpop.f32.mrf.mxu0 }
  0xcf   : > { %v818_v42 = vpop.f32.mrf.mxu1  ;;  %v839_v43 = vadd.f32 %v815_v33, %v756_v40  ;;  %3002 = vmatmul.msk.f32.gmra.mxu3 %vm383_vm0, %v3043_v30 }
  0xd0   : > { %3053 = vmatmul.msk.f32.gmra.mxu2 %vm383_vm0, %v3774_v38 }
  0xd1   : > { %3019 = vmatmul.msk.f32.gmra.mxu0 %vm383_vm0, %v3634_v50  ;;  %v3786_v45 = vadd.f32 %v899_v36, %v839_v43  ;;  %v3163_v43 = vld [vmem:[%s4375_s3 + $0xb0] sm:$0xff] }
  0xd2   : > { %3036 = vmatmul.msk.f32.gmra.mxu1 %vm383_vm0, %v3627_v47  ;;  %v652_v46 = vpop.f32.mrf.mxu3  ;;  %2228 = vmatpush.msrb.mxu2 %v3163_v43  ;;  %v3931_v43 = vld [vmem:[%s3902_s17 + $0x20] sm:$0xff] }
  0xd3   : > { %v902_v48 = vpop.f32.mrf.mxu2  ;;  %v674_v49 = vadd.f32 %v652_v46, %v590_v44  ;;  %v3146_v46 = vld [vmem:[%s4375_s3 + $0xa8] sm:$0xff] }
  0xd4   : > { %2145 = vmatpush.msrb.mxu1 %v3146_v46 }
  0xd5   : > { %v757_v54 = vadd.f32 %v735_v41, %v674_v49 }
  0xd6   : > { %v738_v55 = vpop.f32.mrf.mxu0 }
  0xd7   : > { %v821_v57 = vpop.f32.mrf.mxu1  ;;  %v840_v63 = vadd.f32 %v818_v42, %v757_v54  ;;  %3003 = vmatmul.msk.f32.gmra.mxu3 %vm383_vm0, %v3774_v38  ;;  %v3866_v54 = vld [vmem:[%s3602_s10 + $0x72] sm:$0xff] }
  0xd8   : > { %3054 = vmatmul.msk.f32.gmra.mxu2 %vm383_vm0, %v3789_v51 }
  0xd9   : > { %3020 = vmatmul.msk.f32.gmra.mxu0 %vm383_vm0, %v3654_v56  ;;  %v3802_v0 = vadd.f32 %v902_v48, %v840_v63 }
  0xda   : > { %3037 = vmatmul.msk.f32.gmra.mxu1 %vm383_vm0, %v3647_v53  ;;  %v655_v60 = vpop.f32.mrf.mxu3 }
  0xdb   : > { %v905_v61 = vpop.f32.mrf.mxu2  ;;  %v675_v2 = vadd.f32 %v655_v60, %v591_v58 }
  0xdd   : > { %v758_v9 = vadd.f32 %v738_v55, %v675_v2 }
  0xde   : > { %v741_v10 = vpop.f32.mrf.mxu0 }
  0xdf   : > { %v824_v12 = vpop.f32.mrf.mxu1  ;;  %v841_v17 = vadd.f32 %v821_v57, %v758_v9  ;;  %3004 = vmatmul.msk.f32.gmra.mxu3 %vm383_vm0, %v3789_v51 }
  0xe0   : > { %3055 = vmatmul.msk.f32.gmra.mxu2 %vm383_vm0, %v3805_v7 }
  0xe1   : > { %3021 = vmatmul.msk.f32.gmra.mxu0 %vm383_vm0, %v3674_v62  ;;  %v3818_v20 = vadd.f32 %v905_v61, %v841_v17  ;;  %v3884_v17 = vld [vmem:[%s3602_s10 + $0x80] sm:$0xff] }
  0xe2   : > { %3038 = vmatmul.msk.f32.gmra.mxu1 %vm383_vm0, %v3667_v59  ;;  %v658_v4 = vpop.f32.mrf.mxu3 }
  0xe3   : > { %v908_v5 = vpop.f32.mrf.mxu2  ;;  %v676_v24 = vadd.f32 %v658_v4, %v592_v1  ;;  %v3887_v1 = vld [vmem:[%s3602_s10 + $0x81] sm:$0xff] }
  0xe5   : > { %v759_v30 = vadd.f32 %v741_v10, %v676_v24 }
  0xe6   : > { %v744_v31 = vpop.f32.mrf.mxu0 }
  0xe7   : > { %v827_v32 = vpop.f32.mrf.mxu1  ;;  %v842_v33 = vadd.f32 %v824_v12, %v759_v30  ;;  %3005 = vmatmul.msk.f32.gmra.mxu3 %vm383_vm0, %v3805_v7  ;;  %v1846_v30 = vld [vmem:[%s3902_s17] sm:$0xff] }
  0xe8   : > { %3056 = vmatmul.msk.f32.gmra.mxu2 %vm383_vm0, %v3821_v26 }
  0xe9   : > { %3022 = vmatmul.msk.f32.gmra.mxu0 %vm383_vm0, %v3697_v6  ;;  %v3837_v15 = vadd.f32 %v908_v5, %v842_v33 }
  0xea   : > { %3039 = vmatmul.msk.f32.gmra.mxu1 %vm383_vm0, %v3690_v3  ;;  %v661_v34 = vpop.f32.mrf.mxu3 }
  0xeb   : > { %v911_v35 = vpop.f32.mrf.mxu2  ;;  %v677_v36 = vadd.f32 %v661_v34, %v593_v14 }
  0xed   : > { %v760_v40 = vadd.f32 %v744_v31, %v677_v36  ;;  %v3917_v36 = vld [vmem:[%s3902_s17 + $0x10] sm:$0xff] }
  0xee   : > { %v747_v41 = vpop.f32.mrf.mxu0 }
  0xef   : > { %v830_v42 = vpop.f32.mrf.mxu1  ;;  %v843_v18 = vadd.f32 %v827_v32, %v760_v40  ;;  %3006 = vmatmul.msk.f32.gmra.mxu3 %vm383_vm0, %v3821_v26 }
  0xf0   : > { %3057 = vmatmul.msk.f32.gmra.mxu2 %vm383_vm0, %v3840_v37 }
  0xf1   : > { %3023 = vmatmul.msk.f32.gmra.mxu0 %vm383_vm0, %v3726_v16  ;;  %v3860_v44 = vadd.f32 %v911_v35, %v843_v18 }
  0xf2   : > { %3040 = vmatmul.msk.f32.gmra.mxu1 %vm383_vm0, %v3719_v13  ;;  %v664_v48 = vpop.f32.mrf.mxu3 }
  0xf3   : > { %v914_v49 = vpop.f32.mrf.mxu2  ;;  %v678_v52 = vadd.f32 %v664_v48, %v594_v23  ;;  %v3945_v48 = vld [vmem:[%s3902_s17 + $0x30] sm:$0xff] }
  0xf5   : > { %v761_v55 = vadd.f32 %v747_v41, %v678_v52 }
  0xf6   : > { %v750_v57 = vpop.f32.mrf.mxu0 }
  0xf7   : > { %v833_v63 = vpop.f32.mrf.mxu1  ;;  %v844_v27 = vadd.f32 %v830_v42, %v761_v55  ;;  %3007 = vmatmul.msk.f32.gmra.mxu3 %vm383_vm0, %v3840_v37 }
  0xf8   : > { %3058 = vmatmul.msk.f32.gmra.mxu2 %vm383_vm0, %v3866_v54 }
  0xf9   : > { %3024 = vmatmul.msk.f32.gmra.mxu0 %vm383_vm0, %v3750_v25  ;;  %v3876_v58 = vadd.f32 %v914_v49, %v844_v27 }
  0xfa   : > { %3041 = vmatmul.msk.f32.gmra.mxu1 %vm383_vm0, %v3742_v21  ;;  %v667_v60 = vpop.f32.mrf.mxu3 }
  0xfb   : > { %v917_v61 = vpop.f32.mrf.mxu2  ;;  %v679_v2 = vadd.f32 %v667_v60, %v3738_v19 }
  0xfd   : > { %v762_v9 = vadd.f32 %v750_v57, %v679_v2 }
  0xfe   : > { %v753_v10 = vpop.f32.mrf.mxu0 }
  0xff   : > { %v836_v12 = vpop.f32.mrf.mxu1  ;;  %v845_v4 = vadd.f32 %v833_v63, %v762_v9  ;;  %3008 = vmatmul.msk.f32.gmra.mxu3 %vm383_vm0, %v3866_v54  ;;  %v3959_v63 = vld [vmem:[%s3902_s17 + $0x40] sm:$0xff]  ;;  %v3976_v9 = vld [vmem:[%s3902_s17 + $0x50] sm:$0xff] }
 0x100   : > { %3059 = vmatmul.msk.f32.gmra.mxu2 %vm383_vm0, %v3881_v8 }
 0x101   : > { %3025 = vmatmul.msk.f32.gmra.mxu0 %vm383_vm0, %v3884_v17  ;;  %v3897_v19 = vadd.f32 %v917_v61, %v845_v4 }
 0x102   : > { %3042 = vmatmul.msk.f32.gmra.mxu1 %vm383_vm0, %v3887_v1  ;;  %v670_v5 = vpop.f32.mrf.mxu3 }
 0x103   : > { %v920_v24 = vpop.f32.mrf.mxu2  ;;  %v680_v29 = vadd.f32 %v670_v5, %v3760_v28 }
 0x105   : > { %v763_v31 = vadd.f32 %v753_v10, %v680_v29 }
 0x106   : > { %v1065_v32 = vpop.f32.mrf.mxu0 }
 0x107   : > { %v1148_v33 = vpop.f32.mrf.mxu1  ;;  %v846_v11 = vadd.f32 %v836_v12, %v763_v31  ;;  %3069 = vmatmul.msk.f32.vlgmr.msra.gmra.mxu3 %vm383_vm0, %v3634_v50  ;;  %v3999_v31 = vld [vmem:[%s3902_s17 + $0x60] sm:$0xff] }
 0x108   : > { %3112 = vmatmul.msk.f32.vlgmr.msra.gmra.mxu2 %vm383_vm0, %v1846_v30 }
 0x109   : > { %3086 = vmatmul.msk.f32.vlgmr.msra.gmra.mxu0 %vm383_vm0, %v3627_v47  ;;  %v3913_v14 = vadd.f32 %v920_v24, %v846_v11 }
 0x10a   : > { %3103 = vmatmul.msk.f32.vlgmr.msra.gmra.mxu1 %vm383_vm0, %v3774_v38  ;;  %v982_v34 = vpop.f32.mrf.mxu3 }
 0x10b   : > { %v1231_v28 = vpop.f32.mrf.mxu2  ;;  %v1006_v35 = vadd.f32 %v982_v34, %v3786_v45 }
 0x10d   : > { %v1089_v39 = vadd.f32 %v1065_v32, %v1006_v35  ;;  %v3067_v35 = vld [vmem:[%s3602_s10 + $0x90] sm:$0xff] }
 0x10e   : > { %v1068_v40 = vpop.f32.mrf.mxu0 }
 0x10f   : > { %v1151_v50 = vpop.f32.mrf.mxu1  ;;  %v1172_v41 = vadd.f32 %v1148_v33, %v1089_v39  ;;  %3070 = vmatmul.msk.f32.gmra.mxu3 %vm383_vm0, %v3654_v56  ;;  %v4014_v39 = vld [vmem:[%s3902_s17 + $0x70] sm:$0xff] }
 0x110   : > { %3113 = vmatmul.msk.f32.gmra.mxu2 %vm383_vm0, %v3917_v36 }
 0x111   : > { %3087 = vmatmul.msk.f32.gmra.mxu0 %vm383_vm0, %v3647_v53  ;;  %v3927_v47 = vadd.f32 %v1231_v28, %v1172_v41  ;;  %v3084_v41 = vld [vmem:[%s3602_s10 + $0x91] sm:$0xff] }
 0x112   : > { %3104 = vmatmul.msk.f32.gmra.mxu1 %vm383_vm0, %v3789_v51  ;;  %v985_v38 = vpop.f32.mrf.mxu3 }
 0x113   : > { %v1234_v45 = vpop.f32.mrf.mxu2  ;;  %v1007_v42 = vadd.f32 %v985_v38, %v3802_v0 }
 0x115   : > { %v1090_v18 = vadd.f32 %v1068_v40, %v1007_v42 }
 0x116   : > { %v1071_v56 = vpop.f32.mrf.mxu0 }
 0x117   : > { %v1154_v22 = vpop.f32.mrf.mxu1  ;;  %v1173_v23 = vadd.f32 %v1151_v50, %v1090_v18  ;;  %3071 = vmatmul.msk.f32.gmra.mxu3 %vm383_vm0, %v3674_v62  ;;  %v1929_v18 = vld [vmem:[%s3902_s17 + $0x1] sm:$0xff] }
 0x118   : > { %3114 = vmatmul.msk.f32.gmra.mxu2 %vm383_vm0, %v3931_v43 }
 0x119   : > { %3088 = vmatmul.msk.f32.gmra.mxu0 %vm383_vm0, %v3667_v59  ;;  %v3941_v53 = vadd.f32 %v1234_v45, %v1173_v23 }
 0x11a   : > { %3105 = vmatmul.msk.f32.gmra.mxu1 %vm383_vm0, %v3805_v7  ;;  %v988_v51 = vpop.f32.mrf.mxu3 }
 0x11b   : > { %v1237_v0 = vpop.f32.mrf.mxu2  ;;  %v1008_v46 = vadd.f32 %v988_v51, %v3818_v20 }
 0x11d   : > { %v1091_v49 = vadd.f32 %v1071_v56, %v1008_v46  ;;  %v3155_v56 = vld [vmem:[%s3902_s17 + $0x11] sm:$0xff] }
 0x11e   : > { %v1074_v62 = vpop.f32.mrf.mxu0 }
 0x11f   : > { %v1157_v52 = vpop.f32.mrf.mxu1  ;;  %v1174_v55 = vadd.f32 %v1154_v22, %v1091_v49  ;;  %3072 = vmatmul.msk.f32.gmra.mxu3 %vm383_vm0, %v3697_v6 }
 0x120   : > { %3115 = vmatmul.msk.f32.gmra.mxu2 %vm383_vm0, %v3945_v48 }
 0x121   : > { %3089 = vmatmul.msk.f32.gmra.mxu0 %vm383_vm0, %v3690_v3  ;;  %v3955_v59 = vadd.f32 %v1237_v0, %v1174_v55  ;;  %v3180_v3 = vld [vmem:[%s4375_s3 + $0xb8] sm:$0xff]  ;;  %v2012_v0 = vld [vmem:[%s3902_s17 + $0x2] sm:$0xff] }
 0x122   : > { %3106 = vmatmul.msk.f32.gmra.mxu1 %vm383_vm0, %v3821_v26  ;;  %v991_v7 = vpop.f32.mrf.mxu3  ;;  %2311 = vmatpush.msra.mxu3 %v3180_v3  ;;  %v4038_v55 = vld [vmem:[%s3902_s17 + $0x21] sm:$0xff]  ;;  %v4054_v3 = vld [vmem:[%s3902_s17 + $0x31] sm:$0xff] }
 0x123   : > { %v1240_v20 = vpop.f32.mrf.mxu2  ;;  %v1009_v57 = vadd.f32 %v991_v7, %v3837_v15 }
 0x125   : > { %v1092_v27 = vadd.f32 %v1074_v62, %v1009_v57 }
 0x126   : > { %v1077_v6 = vpop.f32.mrf.mxu0 }
 0x127   : > { %v1160_v60 = vpop.f32.mrf.mxu1  ;;  %v1175_v61 = vadd.f32 %v1157_v52, %v1092_v27  ;;  %3073 = vmatmul.msk.f32.gmra.mxu3 %vm383_vm0, %v3726_v16  ;;  %v4041_v27 = vld [vmem:[%s3902_s17 + $0x12] sm:$0xff] }
 0x128   : > { %3116 = vmatmul.msk.f32.gmra.mxu2 %vm383_vm0, %v3959_v63 }
 0x129   : > { %3090 = vmatmul.msk.f32.gmra.mxu0 %vm383_vm0, %v3719_v13  ;;  %v3972_v26 = vadd.f32 %v1240_v20, %v1175_v61  ;;  %v3231_v13 = vld [vmem:[%s4375_s3 + $0xd0] sm:$0xff] }
 0x12a   : > { %3107 = vmatmul.msk.f32.gmra.mxu1 %vm383_vm0, %v3840_v37  ;;  %v994_v15 = vpop.f32.mrf.mxu3  ;;  %2561 = vmatpush.msra.mxu2 %v3231_v13  ;;  %v3197_v37 = vld [vmem:[%s4375_s3 + $0xc0] sm:$0xff] }
 0x12b   : > { %v1243_v2 = vpop.f32.mrf.mxu2  ;;  %v1010_v16 = vadd.f32 %v994_v15, %v3860_v44  ;;  %2395 = vmatpush.msra.mxu0 %v3197_v37  ;;  %v4071_v37 = vld [vmem:[%s3902_s17 + $0x41] sm:$0xff] }
 0x12d   : > { %v1093_v10 = vadd.f32 %v1077_v6, %v1010_v16 }
 0x12e   : > { %v1080_v12 = vpop.f32.mrf.mxu0 }
 0x12f   : > { %v1163_v4 = vpop.f32.mrf.mxu1  ;;  %v1176_v5 = vadd.f32 %v1160_v60, %v1093_v10  ;;  %3074 = vmatmul.msk.f32.gmra.mxu3 %vm383_vm0, %v3750_v25  ;;  %v3214_v25 = vld [vmem:[%s4375_s3 + $0xc8] sm:$0xff] }
 0x130   : > { %3117 = vmatmul.msk.f32.gmra.mxu2 %vm383_vm0, %v3976_v9  ;;  %2478 = vmatpush.msra.mxu1 %v3214_v25  ;;  %v4057_v10 = vld [vmem:[%s3902_s17 + $0x22] sm:$0xff] }
 0x131   : > { %3091 = vmatmul.msk.f32.gmra.mxu0 %vm383_vm0, %v3742_v21  ;;  %v3992_v44 = vadd.f32 %v1243_v2, %v1176_v5 }
 0x132   : > { %3108 = vmatmul.msk.f32.gmra.mxu1 %vm383_vm0, %v3866_v54  ;;  %v997_v24 = vpop.f32.mrf.mxu3 }
 0x133   : > { %v1246_v29 = vpop.f32.mrf.mxu2  ;;  %v1011_v30 = vadd.f32 %v997_v24, %v3876_v58 }
 0x135   : > { %v1094_v21 = vadd.f32 %v1080_v12, %v1011_v30  ;;  %v4074_v30 = vld [vmem:[%s3902_s17 + $0x32] sm:$0xff] }
 0x136   : > { %v1083_v32 = vpop.f32.mrf.mxu0 }
 0x137   : > { %v1166_v54 = vpop.f32.mrf.mxu1  ;;  %v1177_v33 = vadd.f32 %v1163_v4, %v1094_v21  ;;  %3075 = vmatmul.msk.f32.gmra.mxu3 %vm383_vm0, %v3884_v17 }
 0x138   : > { %3118 = vmatmul.msk.f32.gmra.mxu2 %vm383_vm0, %v3999_v31 }
 0x139   : > { %3092 = vmatmul.msk.f32.gmra.mxu0 %vm383_vm0, %v3887_v1  ;;  %v4009_v58 = vadd.f32 %v1246_v29, %v1177_v33  ;;  %v3101_v1 = vld [vmem:[%s3602_s10 + $0x92] sm:$0xff]  ;;  %s2849_s10 = sshll.u32 %s4395_s18, 3 }
 0x13a   : > { %3109 = vmatmul.msk.f32.gmra.mxu1 %vm383_vm0, %v3881_v8  ;;  %v1000_v11 = vpop.f32.mrf.mxu3  ;;  %s353_s9 = sadd.s32 %s2850_s8, %s2849_s10 }
 0x13b   : > { %v1249_v34 = vpop.f32.mrf.mxu2  ;;  %v1012_v28 = vadd.f32 %v1000_v11, %v3897_v19  ;;  %v4088_v11 = vld [vmem:[%s3902_s17 + $0x51] sm:$0xff]  ;;  %s2851_s11 = sshll.u32 %s353_s9, 3 }
 0x13c   : > { %s4295_s15 = scalar_lea.vmem %s4376_s4, %s2851_s11 }
 0x13d   : > { %v1095_v17 = vadd.f32 %v1083_v32, %v1012_v28 }
 0x13e   : > { %v1086_v40 = vpop.f32.mrf.mxu0 }
 0x13f   : > { %v1169_v50 = vpop.f32.mrf.mxu1  ;;  %v1178_v38 = vadd.f32 %v1166_v54, %v1095_v17  ;;  %3076 = vmatmul.msk.f32.gmra.mxu3 %vm383_vm0, %v3067_v35  ;;  %v4091_v17 = vld [vmem:[%s3902_s17 + $0x42] sm:$0xff] }
 0x140   : > { %3119 = vmatmul.msk.f32.gmra.mxu2 %vm383_vm0, %v4014_v39 }
 0x141   : > { %3093 = vmatmul.msk.f32.gmra.mxu0 %vm383_vm0, %v3084_v41  ;;  %v4023_v8 = vadd.f32 %v1249_v34, %v1178_v38  ;;  %v4105_v38 = vld [vmem:[%s3902_s17 + $0x61] sm:$0xff] }
 0x142   : > { %3110 = vmatmul.msk.f32.gmra.mxu1 %vm383_vm0, %v3101_v1  ;;  %v1003_v19 = vpop.f32.mrf.mxu3 }
 0x143   : > { %v1252_v45 = vpop.f32.mrf.mxu2  ;;  %v1013_v42 = vadd.f32 %v1003_v19, %v3913_v14 }
 0x145   : > { %v1096_v22 = vadd.f32 %v1086_v40, %v1013_v42 }
 0x146   : > { %v1398_v23 = vpop.f32.mrf.mxu0 }
 0x147   : > { %v1481_v51 = vpop.f32.mrf.mxu1  ;;  %v1179_v46 = vadd.f32 %v1169_v50, %v1096_v22  ;;  %3121 = vmatmul.msk.f32.vlgmr.msrb.gmra.mxu3 %vm383_vm0, %v1929_v18  ;;  %v4108_v18 = vld [vmem:[%s3902_s17 + $0x52] sm:$0xff] }
 0x148   : > { %3164 = vmatmul.msk.f32.vlgmr.msrb.gmra.mxu2 %vm383_vm0, %v3155_v56 }
 0x149   : > { %3130 = vmatmul.msk.f32.vlgmr.msrb.gmra.mxu0 %vm383_vm0, %v2012_v0  ;;  %v4034_v49 = vadd.f32 %v1252_v45, %v1179_v46  ;;  %v4122_v0 = vld [vmem:[%s3902_s17 + $0x71] sm:$0xff] }
 0x14a   : > { %3147 = vmatmul.msk.f32.vlgmr.msrb.gmra.mxu1 %vm383_vm0, %v3917_v36  ;;  %v1314_v14 = vpop.f32.mrf.mxu3 }
 0x14b   : > { %v1564_v62 = vpop.f32.mrf.mxu2  ;;  %v1338_v52 = vadd.f32 %v1314_v14, %v3927_v47 }
 0x14d   : > { %v1422_v7 = vadd.f32 %v1398_v23, %v1338_v52  ;;  %v4125_v52 = vld [vmem:[%s3902_s17 + $0x62] sm:$0xff] }
 0x14e   : > { %v1401_v20 = vpop.f32.mrf.mxu0 }
 0x14f   : > { %v1484_v57 = vpop.f32.mrf.mxu1  ;;  %v1505_v6 = vadd.f32 %v1481_v51, %v1422_v7  ;;  %3122 = vmatmul.msk.f32.gmra.mxu3 %vm383_vm0, %v3155_v56 }
 0x150   : > { %3165 = vmatmul.msk.f32.gmra.mxu2 %vm383_vm0, %v4038_v55 }
 0x151   : > { %3131 = vmatmul.msk.f32.gmra.mxu0 %vm383_vm0, %v4041_v27  ;;  %v4050_v36 = vadd.f32 %v1564_v62, %v1505_v6 }
 0x152   : > { %3148 = vmatmul.msk.f32.gmra.mxu1 %vm383_vm0, %v3931_v43  ;;  %v1317_v47 = vpop.f32.mrf.mxu3 }
 0x153   : > { %v1567_v60 = vpop.f32.mrf.mxu2  ;;  %v1339_v61 = vadd.f32 %v1317_v47, %v3941_v53  ;;  %v4139_v47 = vld [vmem:[%s3902_s17 + $0x81] sm:$0xff] }
 0x155   : > { %v1423_v15 = vadd.f32 %v1401_v20, %v1339_v61 }
 0x156   : > { %v1404_v2 = vpop.f32.mrf.mxu0 }
 0x157   : > { %v1487_v16 = vpop.f32.mrf.mxu1  ;;  %v1506_v12 = vadd.f32 %v1484_v57, %v1423_v15  ;;  %3123 = vmatmul.msk.f32.gmra.mxu3 %vm383_vm0, %v4038_v55 }
 0x158   : > { %3166 = vmatmul.msk.f32.gmra.mxu2 %vm383_vm0, %v4054_v3 }
 0x159   : > { %3132 = vmatmul.msk.f32.gmra.mxu0 %vm383_vm0, %v4057_v10  ;;  %v4067_v53 = vadd.f32 %v1567_v60, %v1506_v12 }
 0x15a   : > { %3149 = vmatmul.msk.f32.gmra.mxu1 %vm383_vm0, %v3945_v48  ;;  %v1320_v4 = vpop.f32.mrf.mxu3 }
 0x15b   : > { %v1570_v13 = vpop.f32.mrf.mxu2  ;;  %v1340_v5 = vadd.f32 %v1320_v4, %v3955_v59 }
 0x15d   : > { %v1424_v25 = vadd.f32 %v1404_v2, %v1340_v5  ;;  %v4142_v2 = vld [vmem:[%s3902_s17 + $0x72] sm:$0xff] }
 0x15e   : > { %v1407_v24 = vpop.f32.mrf.mxu0 }
 0x15f   : > { %v1490_v29 = vpop.f32.mrf.mxu1  ;;  %v1507_v21 = vadd.f32 %v1487_v16, %v1424_v25  ;;  %3124 = vmatmul.msk.f32.gmra.mxu3 %vm383_vm0, %v4054_v3  ;;  %v4145_v16 = vld [vmem:[%s3902_s17 + $0x80] sm:$0xff] }
 0x160   : > { %3167 = vmatmul.msk.f32.gmra.mxu2 %vm383_vm0, %v4071_v37 }
 0x161   : > { %3133 = vmatmul.msk.f32.gmra.mxu0 %vm383_vm0, %v4074_v30  ;;  %v4084_v59 = vadd.f32 %v1570_v13, %v1507_v21 }
 0x162   : > { %3150 = vmatmul.msk.f32.gmra.mxu1 %vm383_vm0, %v3959_v63  ;;  %v1323_v32 = vpop.f32.mrf.mxu3 }
 0x163   : > { %v1573_v54 = vpop.f32.mrf.mxu2  ;;  %v1341_v33 = vadd.f32 %v1323_v32, %v3972_v26 }
 0x165   : > { %v1425_v34 = vadd.f32 %v1407_v24, %v1341_v33 }
 0x166   : > { %v1410_v28 = vpop.f32.mrf.mxu0 }
 0x167   : > { %v1493_v35 = vpop.f32.mrf.mxu1  ;;  %v1508_v40 = vadd.f32 %v1490_v29, %v1425_v34  ;;  %3125 = vmatmul.msk.f32.gmra.mxu3 %vm383_vm0, %v4071_v37 }
 0x168   : > { %3168 = vmatmul.msk.f32.gmra.mxu2 %vm383_vm0, %v4088_v11 }
 0x169   : > { %3134 = vmatmul.msk.f32.gmra.mxu0 %vm383_vm0, %v4091_v17  ;;  %v4101_v26 = vadd.f32 %v1573_v54, %v1508_v40 }
 0x16a   : > { %3151 = vmatmul.msk.f32.gmra.mxu1 %vm383_vm0, %v3976_v9  ;;  %v1326_v50 = vpop.f32.mrf.mxu3 }
 0x16b   : > { %v1576_v41 = vpop.f32.mrf.mxu2  ;;  %v1342_v1 = vadd.f32 %v1326_v50, %v3992_v44 }
 0x16d   : > { %v1426_v19 = vadd.f32 %v1410_v28, %v1342_v1 }
 0x16e   : > { %v1413_v45 = vpop.f32.mrf.mxu0 }
 0x16f   : > { %v1496_v42 = vpop.f32.mrf.mxu1  ;;  %v1509_v56 = vadd.f32 %v1493_v35, %v1426_v19  ;;  %3126 = vmatmul.msk.f32.gmra.mxu3 %vm383_vm0, %v4088_v11 }
 0x170   : > { %3169 = vmatmul.msk.f32.gmra.mxu2 %vm383_vm0, %v4105_v38 }
 0x171   : > { %3135 = vmatmul.msk.f32.gmra.mxu0 %vm383_vm0, %v4108_v18  ;;  %v4118_v44 = vadd.f32 %v1576_v41, %v1509_v56 }
 0x172   : > { %3152 = vmatmul.msk.f32.gmra.mxu1 %vm383_vm0, %v3999_v31  ;;  %v1329_v22 = vpop.f32.mrf.mxu3 }
 0x173   : > { %v1579_v23 = vpop.f32.mrf.mxu2  ;;  %v1343_v51 = vadd.f32 %v1329_v22, %v4009_v58 }
 0x175   : > { %v1427_v46 = vadd.f32 %v1413_v45, %v1343_v51 }
 0x176   : > { %v1416_v14 = vpop.f32.mrf.mxu0 }
 0x177   : > { %v1499_v62 = vpop.f32.mrf.mxu1  ;;  %v1510_v7 = vadd.f32 %v1496_v42, %v1427_v46  ;;  %3127 = vmatmul.msk.f32.gmra.mxu3 %vm383_vm0, %v4105_v38 }
 0x178   : > { %3170 = vmatmul.msk.f32.gmra.mxu2 %vm383_vm0, %v4122_v0 }
 0x179   : > { %3136 = vmatmul.msk.f32.gmra.mxu0 %vm383_vm0, %v4125_v52  ;;  %v4135_v58 = vadd.f32 %v1579_v23, %v1510_v7 }
 0x17a   : > { %3153 = vmatmul.msk.f32.gmra.mxu1 %vm383_vm0, %v4014_v39  ;;  %v1332_v20 = vpop.f32.mrf.mxu3 }
 0x17b   : > { %v1582_v57 = vpop.f32.mrf.mxu2  ;;  %v1344_v6 = vadd.f32 %v1332_v20, %v4023_v8 }
 0x17d   : > { %v1428_v60 = vadd.f32 %v1416_v14, %v1344_v6  ;;  %v3229_v6 = vld [vmem:[%s3902_s17 + $0x82] sm:$0xff] }
 0x17e   : > { %v1419_v61 = vpop.f32.mrf.mxu0 }
 0x17f   : > { %v1502_v15 = vpop.f32.mrf.mxu1  ;;  %v1511_v12 = vadd.f32 %v1499_v62, %v1428_v60  ;;  %3128 = vmatmul.msk.f32.gmra.mxu3 %vm383_vm0, %v4122_v0 }
 0x180   : > { %3171 = vmatmul.msk.f32.gmra.mxu2 %vm383_vm0, %v4139_v47 }
 0x181   : > { %3137 = vmatmul.msk.f32.gmra.mxu0 %vm383_vm0, %v4142_v2  ;;  %v4155_v8 = vadd.f32 %v1582_v57, %v1511_v12 }
 0x182   : > { %3154 = vmatmul.msk.f32.gmra.mxu1 %vm383_vm0, %v4145_v16  ;;  %v1335_v4 = vpop.f32.mrf.mxu3 }
 0x183   : > { %v1585_v13 = vpop.f32.mrf.mxu2  ;;  %v1345_v5 = vadd.f32 %v1335_v4, %v4034_v49  ;;  %v3230_v4 = vld [vmem:[%s3902_s17 + $0x92] sm:$0xff] }
 0x185   : > { %v1429_v25 = vadd.f32 %v1419_v61, %v1345_v5 }
 0x186   : > { %v1731_v24 = vpop.f32.mrf.mxu0 }
 0x187   : > { %v1814_v29 = vpop.f32.mrf.mxu1  ;;  %v1512_v21 = vadd.f32 %v1502_v15, %v1429_v25  ;;  %3181 = vmatmul.msk.f32.vlgmr.msra.gmra.mxu3 %vm383_vm0, %v4041_v27 }
 0x188   : > { %3232 = vmatmul.msk.f32.vlgmr.msra.gmra.mxu2 %vm383_vm0, %v4057_v10 }
 0x189   : > { %3198 = vmatmul.msk.f32.vlgmr.msra.gmra.mxu0 %vm383_vm0, %v3931_v43  ;;  %v4166_v32 = vadd.f32 %v1585_v13, %v1512_v21 }
 0x18a   : > { %3215 = vmatmul.msk.f32.vlgmr.msra.gmra.mxu1 %vm383_vm0, %v4038_v55  ;;  %v1648_v54 = vpop.f32.mrf.mxu3 }
 0x18b   : > { %v1897_v49 = vpop.f32.mrf.mxu2  ;;  %v1672_v33 = vadd.f32 %v1648_v54, %v4050_v36 }
 0x18d   : > { %v1755_v34 = vadd.f32 %v1731_v24, %v1672_v33  ;;  %v3196_v24 = vld [vmem:[%s3902_s17 + $0x90] sm:$0xff] }
 0x18e   : > { %v1734_v28 = vpop.f32.mrf.mxu0 }
 0x18f   : > { %v1817_v35 = vpop.f32.mrf.mxu1  ;;  %v1838_v40 = vadd.f32 %v1814_v29, %v1755_v34  ;;  %3182 = vmatmul.msk.f32.gmra.mxu3 %vm383_vm0, %v4057_v10 }
 0x190   : > { %3233 = vmatmul.msk.f32.gmra.mxu2 %vm383_vm0, %v4074_v30 }
 0x191   : > { %3199 = vmatmul.msk.f32.gmra.mxu0 %vm383_vm0, %v3945_v48  ;;  %v4177_v43 = vadd.f32 %v1897_v49, %v1838_v40 }
 0x192   : > { %3216 = vmatmul.msk.f32.gmra.mxu1 %vm383_vm0, %v4054_v3  ;;  %v1651_v55 = vpop.f32.mrf.mxu3 }
 0x193   : > { %v1900_v27 = vpop.f32.mrf.mxu2  ;;  %v1673_v36 = vadd.f32 %v1651_v55, %v4067_v53 }
 0x195   : > { %v1756_v50 = vadd.f32 %v1734_v28, %v1673_v36 }
 0x196   : > { %v1737_v41 = vpop.f32.mrf.mxu0 }
 0x197   : > { %v1820_v1 = vpop.f32.mrf.mxu1  ;;  %v1839_v19 = vadd.f32 %v1817_v35, %v1756_v50  ;;  %3183 = vmatmul.msk.f32.gmra.mxu3 %vm383_vm0, %v4074_v30 }
 0x198   : > { %3234 = vmatmul.msk.f32.gmra.mxu2 %vm383_vm0, %v4091_v17 }
 0x199   : > { %3200 = vmatmul.msk.f32.gmra.mxu0 %vm383_vm0, %v3959_v63  ;;  %v4188_v48 = vadd.f32 %v1900_v27, %v1839_v19 }
 0x19a   : > { %3217 = vmatmul.msk.f32.gmra.mxu1 %vm383_vm0, %v4071_v37  ;;  %v1654_v3 = vpop.f32.mrf.mxu3 }
 0x19b   : > { %v1903_v10 = vpop.f32.mrf.mxu2  ;;  %v1674_v53 = vadd.f32 %v1654_v3, %v4084_v59 }
 0x19d   : > { %v1757_v45 = vadd.f32 %v1737_v41, %v1674_v53 }
 0x19e   : > { %v1740_v42 = vpop.f32.mrf.mxu0 }
 0x19f   : > { %v1823_v56 = vpop.f32.mrf.mxu1  ;;  %v1840_v22 = vadd.f32 %v1820_v1, %v1757_v45  ;;  %3184 = vmatmul.msk.f32.gmra.mxu3 %vm383_vm0, %v4091_v17 }
 0x1a0   : > { %3235 = vmatmul.msk.f32.gmra.mxu2 %vm383_vm0, %v4108_v18 }
 0x1a1   : > { %3201 = vmatmul.msk.f32.gmra.mxu0 %vm383_vm0, %v3976_v9  ;;  %v4199_v63 = vadd.f32 %v1903_v10, %v1840_v22 }
 0x1a2   : > { %3218 = vmatmul.msk.f32.gmra.mxu1 %vm383_vm0, %v4088_v11  ;;  %v1657_v37 = vpop.f32.mrf.mxu3 }
 0x1a3   : > { %v1906_v30 = vpop.f32.mrf.mxu2  ;;  %v1675_v59 = vadd.f32 %v1657_v37, %v4101_v26 }
 0x1a5   : > { %v1758_v23 = vadd.f32 %v1740_v42, %v1675_v59 }
 0x1a6   : > { %v1743_v51 = vpop.f32.mrf.mxu0 }
 0x1a7   : > { %v1826_v46 = vpop.f32.mrf.mxu1  ;;  %v1841_v14 = vadd.f32 %v1823_v56, %v1758_v23  ;;  %3185 = vmatmul.msk.f32.gmra.mxu3 %vm383_vm0, %v4108_v18 }
 0x1a8   : > { %3236 = vmatmul.msk.f32.gmra.mxu2 %vm383_vm0, %v4125_v52 }
 0x1a9   : > { %3202 = vmatmul.msk.f32.gmra.mxu0 %vm383_vm0, %v3999_v31  ;;  %v4210_v9 = vadd.f32 %v1906_v30, %v1841_v14 }
 0x1aa   : > { %3219 = vmatmul.msk.f32.gmra.mxu1 %vm383_vm0, %v4105_v38  ;;  %v1660_v11 = vpop.f32.mrf.mxu3 }
 0x1ab   : > { %v1909_v17 = vpop.f32.mrf.mxu2  ;;  %v1676_v26 = vadd.f32 %v1660_v11, %v4118_v44 }
 0x1ad   : > { %v1759_v62 = vadd.f32 %v1743_v51, %v1676_v26 }
 0x1ae   : > { %v1746_v7 = vpop.f32.mrf.mxu0 }
 0x1af   : > { %v1829_v20 = vpop.f32.mrf.mxu1  ;;  %v1842_v18 = vadd.f32 %v1826_v46, %v1759_v62  ;;  %3186 = vmatmul.msk.f32.gmra.mxu3 %vm383_vm0, %v4125_v52 }
 0x1b0   : > { %3237 = vmatmul.msk.f32.gmra.mxu2 %vm383_vm0, %v4142_v2 }
 0x1b1   : > { %3203 = vmatmul.msk.f32.gmra.mxu0 %vm383_vm0, %v4014_v39  ;;  %v4221_v31 = vadd.f32 %v1909_v17, %v1842_v18 }
 0x1b2   : > { %3220 = vmatmul.msk.f32.gmra.mxu1 %vm383_vm0, %v4122_v0  ;;  %v1663_v38 = vpop.f32.mrf.mxu3 }
 0x1b3   : > { %v1912_v44 = vpop.f32.mrf.mxu2  ;;  %v1677_v57 = vadd.f32 %v1663_v38, %v4135_v58 }
 0x1b5   : > { %v1760_v60 = vadd.f32 %v1746_v7, %v1677_v57 }
 0x1b6   : > { %v1749_v52 = vpop.f32.mrf.mxu0 }
 0x1b7   : > { %v1832_v61 = vpop.f32.mrf.mxu1  ;;  %v1843_v15 = vadd.f32 %v1829_v20, %v1760_v60  ;;  %3187 = vmatmul.msk.f32.gmra.mxu3 %vm383_vm0, %v4142_v2  ;;  %v3213_v2 = vld [vmem:[%s3902_s17 + $0x91] sm:$0xff]  ;;  %s2853_s17 = sshll.u32 %s361_s16, 1 }
 0x1b8   : > { %3238 = vmatmul.msk.f32.gmra.mxu2 %vm383_vm0, %v3229_v6  ;;  %s363_s26 = scalar_lea.vmem %s4377_s5, %s2853_s17 }
 0x1b9   : > { %3204 = vmatmul.msk.f32.gmra.mxu0 %vm383_vm0, %v4145_v16  ;;  %v4232_v39 = vadd.f32 %v1912_v44, %v1843_v15 }
 0x1ba   : > { %3221 = vmatmul.msk.f32.gmra.mxu1 %vm383_vm0, %v4139_v47  ;;  %v1666_v0 = vpop.f32.mrf.mxu3 }
 0x1bb   : > { %v1915_v58 = vpop.f32.mrf.mxu2  ;;  %v1678_v12 = vadd.f32 %v1666_v0, %v4155_v8 }
 0x1bd   : > { %v1761_v13 = vadd.f32 %v1749_v52, %v1678_v12 }
 0x1be   : > { %v1752_v5 = vpop.f32.mrf.mxu0 }
 0x1bf   : > { %v1835_v25 = vpop.f32.mrf.mxu1  ;;  %v1844_v29 = vadd.f32 %v1832_v61, %v1761_v13  ;;  %3188 = vmatmul.msk.f32.gmra.mxu3 %vm383_vm0, %v3229_v6 }
 0x1c0   : > { %3239 = vmatmul.msk.f32.gmra.mxu2 %vm383_vm0, %v3230_v4 }
 0x1c1   : > { %3205 = vmatmul.msk.f32.gmra.mxu0 %vm383_vm0, %v3196_v24  ;;  %v4242_v47 = vadd.f32 %v1915_v58, %v1844_v29 }
 0x1c2   : > { %3222 = vmatmul.msk.f32.gmra.mxu1 %vm383_vm0, %v3213_v2  ;;  %v1669_v16 = vpop.f32.mrf.mxu3 }
 0x1c3   : > { %v1918_v21 = vpop.f32.mrf.mxu2  ;;  %v1679_v8 = vadd.f32 %v1669_v16, %v4166_v32 }
 0x1c5   : > { %v1762_v54 = vadd.f32 %v1752_v5, %v1679_v8 }
 0x1c6   : > { %v2063_v49 = vpop.f32.mrf.mxu0 }
 0x1c7   : > { %v2147_v33 = vpop.f32.mrf.mxu1  ;;  %v1845_v34 = vadd.f32 %v1835_v25, %v1762_v54 }
 0x1c9   : > { %v4245_v28 = vadd.f32 %v1918_v21, %v1845_v34 }
 0x1ca   : > { %v1980_v35 = vpop.f32.mrf.mxu3 }
 0x1cb   : > { %v2230_v40 = vpop.f32.mrf.mxu2  ;;  %v2004_v26 = vadd.f32 %v1980_v35, %v4177_v43 }
 0x1cd   : > { %v2087_v20 = vadd.f32 %v2063_v49, %v2004_v26 }
 0x1ce   : > { %v2066_v55 = vpop.f32.mrf.mxu0 }
 0x1cf   : > { %v2150_v27 = vpop.f32.mrf.mxu1  ;;  %v2171_v44 = vadd.f32 %v2147_v33, %v2087_v20 }
 0x1d1   : > { %v2254_v43 = vadd.f32 %v2230_v40, %v2171_v44 }
 0x1d2   : > { %v1983_v36 = vpop.f32.mrf.mxu3 }
 0x1d3   : > { %v2233_v50 = vpop.f32.mrf.mxu2  ;;  %v2005_v57 = vadd.f32 %v1983_v36, %v4188_v48 }
 0x1d5   : > { %v2088_v52 = vadd.f32 %v2066_v55, %v2005_v57 }
 0x1d6   : > { %v2069_v41 = vpop.f32.mrf.mxu0 }
 0x1d7   : > { %v2153_v1 = vpop.f32.mrf.mxu1  ;;  %v2172_v58 = vadd.f32 %v2150_v27, %v2088_v52 }
 0x1d9   : > { %v2255_v48 = vadd.f32 %v2233_v50, %v2172_v58 }
 0x1da   : > { %v1986_v19 = vpop.f32.mrf.mxu3 }
 0x1db   : > { %v2236_v3 = vpop.f32.mrf.mxu2  ;;  %v2006_v12 = vadd.f32 %v1986_v19, %v4199_v63 }
 0x1dd   : > { %v2089_v24 = vadd.f32 %v2069_v41, %v2006_v12 }
 0x1de   : > { %v2072_v10 = vpop.f32.mrf.mxu0 }
 0x1df   : > { %v4247_v53 = vpop.f32.mrf.mxu1  ;;  %v2173_v8 = vadd.f32 %v2153_v1, %v2089_v24 }
 0x1e1   : > { %v2256_v40 = vadd.f32 %v2236_v3, %v2173_v8 }
 0x1e2   : > { %v1989_v32 = vpop.f32.mrf.mxu3 }
 0x1e3   : > { %v4249_v45 = vpop.f32.mrf.mxu2  ;;  %v2007_v21 = vadd.f32 %v1989_v32, %v4210_v9 }
 0x1e5   : > { %v2090_v35 = vadd.f32 %v2072_v10, %v2007_v21 }
 0x1e6   : > { %v4251_v42 = vpop.f32.mrf.mxu0 }
 0x1e7   : > { %v4253_v56 = vpop.f32.mrf.mxu1  ;;  %v2174_v9 = vadd.f32 %v4247_v53, %v2090_v35 }
 0x1e9   : > { %v2257_v52 = vadd.f32 %v4249_v45, %v2174_v9 }
 0x1ea   : > { %v4255_v22 = vpop.f32.mrf.mxu3 }
 0x1eb   : > { %v4257_v37 = vpop.f32.mrf.mxu2  ;;  %v2008_v10 = vadd.f32 %v4255_v22, %v4221_v31 }
 0x1ee   : > { %v4259_v30 = vpop.f32.mrf.mxu0 }
 0x1ef   : > { %v4261_v59 = vpop.f32.mrf.mxu1 }
 0x1f2   : > { %v4263_v23 = vpop.f32.mrf.mxu3 }
 0x1f3   : > { %v4265_v51 = vpop.f32.mrf.mxu2 }
 0x1f6   : > { %v4267_v46 = vpop.f32.mrf.mxu0 }
 0x1f7   : > { %v4269_v14 = vpop.f32.mrf.mxu1 }
 0x1fa   : > { %v4271_v11 = vpop.f32.mrf.mxu3 }
 0x1fb   : > { %v4273_v17 = vpop.f32.mrf.mxu2 }
 0x1fe   : > { %v4276_v62 = vpop.f32.mrf.mxu0 }
 0x1ff   : > { %v4278_v7 = vpop.f32.mrf.mxu1 }
 0x202   : > { %v4281_v18 = vpop.f32.mrf.mxu3 }
 0x203   : > { %v4283_v38 = vpop.f32.mrf.mxu2 }
 0x206   : > { %v2397_v6 = vpop.f32.mrf.mxu0 }
 0x207   : > { %v2480_v60 = vpop.f32.mrf.mxu1 }
 0x20a   : > { %v2313_v61 = vpop.f32.mrf.mxu3 }
 0x20b   : > { %v2563_v15 = vpop.f32.mrf.mxu2  ;;  %v2337_v0 = vadd.f32 %v2313_v61, %v2254_v43  ;;  %v2091_v61 = vadd.f32 %v4251_v42, %v2008_v10 }
 0x20d   : > { %v2421_v4 = vadd.f32 %v2397_v6, %v2337_v0 }
 0x20e   : > { %v2400_v13 = vpop.f32.mrf.mxu0 }
 0x20f   : > { %v2483_v5 = vpop.f32.mrf.mxu1  ;;  %v2504_v25 = vadd.f32 %v2480_v60, %v2421_v4  ;;  %v2175_v4 = vadd.f32 %v4253_v56, %v2091_v61 }
 0x211   : > { %v2587_v2 = vadd.f32 %v2563_v15, %v2504_v25 }
 0x212   : > { %v2316_v29 = vpop.f32.mrf.mxu3 }
 0x213   : > { %v2566_v16 = vpop.f32.mrf.mxu2  ;;  %2595 = vst.msk [vmem:[%s4295_s15] sm:$0xff] %vm383_vm0, %v2587_v2  ;;  %v2338_v63 = vadd.f32 %v2316_v29, %v2255_v48  ;;  %v2624_v55 = vmul.f32 %v2587_v2, %v2587_v2  ;;  %v2603_v41 = vsel %vm383_vm0, %v2587_v2, 0.0  ;;  %v2258_v2 = vadd.f32 %v4257_v37, %v2175_v4 }
 0x215   : > { %v2422_v54 = vadd.f32 %v2400_v13, %v2338_v63  ;;  %v2632_v3 = vsel %vm383_vm0, %v2624_v55, 0.0  ;;  %v2009_v13 = vadd.f32 %v4263_v23, %v4232_v39 }
 0x216   : > { %v2403_v49 = vpop.f32.mrf.mxu0 }
 0x217   : > { %v2486_v33 = vpop.f32.mrf.mxu1  ;;  %v2505_v34 = vadd.f32 %v2483_v5, %v2422_v54  ;;  %v2092_v29 = vadd.f32 %v4259_v30, %v2009_v13 }
 0x219   : > { %v2588_v27 = vadd.f32 %v2566_v16, %v2505_v34  ;;  %v2176_v54 = vadd.f32 %v4261_v59, %v2092_v29 }
 0x21a   : > { %v2319_v36 = vpop.f32.mrf.mxu3 }
 0x21b   : > { %v2569_v50 = vpop.f32.mrf.mxu2  ;;  %2596 = vst.msk [vmem:[%s4295_s15 + $0x8] sm:$0xff] %vm383_vm0, %v2588_v27  ;;  %v2604_v19 = vsel %vm383_vm0, %v2588_v27, 0.0  ;;  %v2625_v26 = vmul.f32 %v2588_v27, %v2588_v27  ;;  %v2339_v20 = vadd.f32 %v2319_v36, %v2256_v40  ;;  %v2259_v55 = vadd.f32 %v4265_v51, %v2176_v54 }
 0x21c   : > { %v2605_v1 = vadd.f32 %v2604_v19, %v2603_v41 }
 0x21d   : > { %v2633_v32 = vsel %vm383_vm0, %v2625_v26, 0.0  ;;  %v2423_v44 = vadd.f32 %v2403_v49, %v2339_v20  ;;  %v2010_v49 = vadd.f32 %v4271_v11, %v4242_v47  ;;  %v2011_v20 = vadd.f32 %v4281_v18, %v4245_v28 }
 0x21e   : > { %v2406_v57 = vpop.f32.mrf.mxu0  ;;  %v2634_v60 = vadd.f32 %v2633_v32, %v2632_v3 }
 0x21f   : > { %v2489_v6 = vpop.f32.mrf.mxu1  ;;  %v2506_v43 = vadd.f32 %v2486_v33, %v2423_v44  ;;  %v2093_v27 = vadd.f32 %v4267_v46, %v2010_v49  ;;  %v2094_v32 = vadd.f32 %v4276_v62, %v2011_v20 }
 0x221   : > { %v2589_v15 = vadd.f32 %v2569_v50, %v2506_v43  ;;  %v2177_v26 = vadd.f32 %v4269_v14, %v2093_v27 }
 0x222   : > { %v2322_v0 = vpop.f32.mrf.mxu3 }
 0x223   : > { %v2572_v53 = vpop.f32.mrf.mxu2  ;;  %2597 = vst.msk [vmem:[%s4295_s15 + $0x10] sm:$0xff] %vm383_vm0, %v2589_v15  ;;  %v2606_v31 = vsel %vm383_vm0, %v2589_v15, 0.0  ;;  %v2626_v22 = vmul.f32 %v2589_v15, %v2589_v15  ;;  %v2340_v58 = vadd.f32 %v2322_v0, %v2257_v52  ;;  %v2260_v3 = vadd.f32 %v4273_v17, %v2177_v26 }
 0x224   : > { %v2607_v12 = vadd.f32 %v2606_v31, %v2605_v1  ;;  %v2178_v52 = vadd.f32 %v4278_v7, %v2094_v32 }
 0x225   : > { %v2635_v45 = vsel %vm383_vm0, %v2626_v22, 0.0  ;;  %v2424_v5 = vadd.f32 %v2406_v57, %v2340_v58 }
 0x226   : > { %v2409_v42 = vpop.f32.mrf.mxu0  ;;  %v2636_v25 = vadd.f32 %v2635_v45, %v2634_v60  ;;  %v2261_v62 = vadd.f32 %v4283_v38, %v2178_v52 }
 0x227   : > { %v2492_v48 = vpop.f32.mrf.mxu1  ;;  %v2507_v24 = vadd.f32 %v2489_v6, %v2424_v5 }
 0x229   : > { %v2590_v16 = vadd.f32 %v2572_v53, %v2507_v24 }
 0x22a   : > { %v2325_v63 = vpop.f32.mrf.mxu3 }
 0x22b   : > { %v2575_v21 = vpop.f32.mrf.mxu2  ;;  %2598 = vst.msk [vmem:[%s4295_s15 + $0x18] sm:$0xff] %vm383_vm0, %v2590_v16  ;;  %v2608_v56 = vsel %vm383_vm0, %v2590_v16, 0.0  ;;  %v2627_v8 = vmul.f32 %v2590_v16, %v2590_v16  ;;  %v2341_v39 = vadd.f32 %v2325_v63, %v2258_v2 }
 0x22c   : > { %v2609_v23 = vadd.f32 %v2608_v56, %v2607_v12 }
 0x22d   : > { %v2637_v37 = vsel %vm383_vm0, %v2627_v8, 0.0  ;;  %v2425_v33 = vadd.f32 %v2409_v42, %v2341_v39 }
 0x22e   : > { %v2638_v30 = vadd.f32 %v2637_v37, %v2636_v25  ;;  %v2412_v34 = vpop.f32.mrf.mxu0 }
 0x22f   : > { %v2508_v35 = vadd.f32 %v2492_v48, %v2425_v33  ;;  %v2495_v40 = vpop.f32.mrf.mxu1 }
 0x231   : > { %v2591_v36 = vadd.f32 %v2575_v21, %v2508_v35 }
 0x232   : > { %v2328_v50 = vpop.f32.mrf.mxu3 }
 0x233   : > { %v2578_v41 = vpop.f32.mrf.mxu2  ;;  %2599 = vst.msk [vmem:[%s4295_s15 + $0x20] sm:$0xff] %vm383_vm0, %v2591_v36  ;;  %v2610_v59 = vsel %vm383_vm0, %v2591_v36, 0.0  ;;  %v2628_v47 = vmul.f32 %v2591_v36, %v2591_v36  ;;  %v2342_v11 = vadd.f32 %v2328_v50, %v2259_v55 }
 0x234   : > { %v2611_v19 = vadd.f32 %v2610_v59, %v2609_v23 }
 0x235   : > { %v2639_v51 = vsel %vm383_vm0, %v2628_v47, 0.0  ;;  %v2426_v9 = vadd.f32 %v2412_v34, %v2342_v11 }
 0x236   : > { %v2640_v46 = vadd.f32 %v2639_v51, %v2638_v30  ;;  %v2415_v10 = vpop.f32.mrf.mxu0 }
 0x237   : > { %v2509_v1 = vadd.f32 %v2495_v40, %v2426_v9  ;;  %v2498_v6 = vpop.f32.mrf.mxu1 }
 0x239   : > { %v2592_v44 = vadd.f32 %v2578_v41, %v2509_v1 }
 0x23a   : > { %v2331_v57 = vpop.f32.mrf.mxu3 }
 0x23b   : > { %2600 = vst.msk [vmem:[%s4295_s15 + $0x28] sm:$0xff] %vm383_vm0, %v2592_v44  ;;  %v2612_v14 = vsel %vm383_vm0, %v2592_v44, 0.0  ;;  %v2629_v60 = vmul.f32 %v2592_v44, %v2592_v44  ;;  %v2343_v28 = vadd.f32 %v2331_v57, %v2260_v3  ;;  %v2581_v43 = vpop.f32.mrf.mxu2 }
 0x23c   : > { %v2613_v18 = vadd.f32 %v2612_v14, %v2611_v19 }
 0x23d   : > { %v2641_v61 = vsel %vm383_vm0, %v2629_v60, 0.0  ;;  %v2427_v15 = vadd.f32 %v2415_v10, %v2343_v28 }
 0x23e   : > { %v2642_v17 = vadd.f32 %v2641_v61, %v2640_v46  ;;  %v2418_v22 = vpop.f32.mrf.mxu0 }
 0x23f   : > { %v2510_v0 = vadd.f32 %v2498_v6, %v2427_v15  ;;  %v2501_v45 = vpop.f32.mrf.mxu1 }
 0x241   : > { %v2593_v53 = vadd.f32 %v2581_v43, %v2510_v0 }
 0x242   : > { %v2334_v31 = vpop.f32.mrf.mxu3 }
 0x243   : > { %2601 = vst.msk [vmem:[%s4295_s15 + $0x30] sm:$0xff] %vm383_vm0, %v2593_v53  ;;  %v2614_v58 = vsel %vm383_vm0, %v2593_v53, 0.0  ;;  %v2630_v12 = vmul.f32 %v2593_v53, %v2593_v53  ;;  %v2344_v4 = vadd.f32 %v2334_v31, %v2261_v62  ;;  %v2584_v25 = vpop.f32.mrf.mxu2 }
 0x244   : > { %v2615_v13 = vadd.f32 %v2614_v58, %v2613_v18 }
 0x245   : > { %v2643_v7 = vsel %vm383_vm0, %v2630_v12, 0.0  ;;  %v2428_v5 = vadd.f32 %v2418_v22, %v2344_v4 }
 0x246   : > { %v2644_v42 = vadd.f32 %v2643_v7, %v2642_v17 }
 0x247   : > { %v2511_v38 = vadd.f32 %v2501_v45, %v2428_v5 }
 0x249   : > { %v2594_v48 = vadd.f32 %v2584_v25, %v2511_v38 }
 0x24b   : > { %2602 = vst.msk [vmem:[%s4295_s15 + $0x38] sm:$0xff] %vm383_vm0, %v2594_v48  ;;  %v2616_v24 = vsel %vm383_vm0, %v2594_v48, 0.0  ;;  %v2631_v2 = vmul.f32 %v2594_v48, %v2594_v48 }
 0x24c   : > { %v2617_v29 = vadd.f32 %v2616_v24, %v2615_v13 }
 0x24d   : > { %v2645_v16 = vsel %vm383_vm0, %v2631_v2, 0.0 }
 0x24e   : > { %v2618_v63 = vrot.slane %v2617_v29, 4  ;;  %v2646_v21 = vadd.f32 %v2645_v16, %v2644_v42 }
 0x250   : > { %v2619_v56 = vadd.f32 %v2618_v63, %v2617_v29  ;;  %v2647_v8 = vrot.slane %v2646_v21, 4 }
 0x252   : > { %v2620_v39 = vrot.slane %v2619_v56, 2  ;;  %v2648_v23 = vadd.f32 %v2647_v8, %v2646_v21 }
 0x254   : > { %v2621_v54 = vadd.f32 %v2620_v39, %v2619_v56  ;;  %v2649_v49 = vrot.slane %v2648_v23, 2 }
 0x256   : > { %v2622_v37 = vrot.slane %v2621_v54, 1  ;;  %v2650_v33 = vadd.f32 %v2649_v49, %v2648_v23 }
 0x258   : > { %v2651_v30 = vrot.slane %v2650_v33, 1  ;;  %v2623_v34 = vadd.f32 %v2622_v37, %v2621_v54 }
 0x25a   : > { %v2652_v35 = vadd.f32 %v2651_v30, %v2650_v33 }
 0x25c   : > { %v2654_v40 = vsel %vm2653_vm1, %v2623_v34, %v2652_v35 }
 0x25d   : > { %2656 = vst.msk [vmem:[%s363_s26] sm:$0x3] %vm2655_vm2, %v2654_v40 }
 0x25e PF: > { %s16_s22 = sadd.s32 1, %s3327_s22   ;;  %s4378_s18 = smov %s3319_s20 }
 0x25f   : > { %p13_p10 = scmp.ge.s32.totalorder %s16_s22, 18   ;;  %s4379_s19 = smov %s3323_s21 }
 0x260   : > { %s4380_s20 = smov %s4383_s23  ;;  %s4381_s21 = smov %s4387_s24 }
 0x261   :  { %15 = sbr.rel (!%p13_p10) target bundleno = 3 (0x3), region = 116 }

</bundles_post_ra>
